<compile_context>
chip_gen: v7x
topology: tpu7x:2x2x1
jax: 0.10.0
libtpu: 0.0.40
codegen_flags: <defaults>
</compile_context>

<pallas_src>
import functools

import jax
import jax.numpy as jnp
from jax import lax
from jax.experimental import pallas as pl
from jax.experimental.pallas import tpu as pltpu


# ----------------------------------------------------------------------------
# Pallas kernels
# ----------------------------------------------------------------------------

def _gemm_bn_act_kernel(p_ref, w_ref, scale_ref, shift_ref, o_ref, *, relu):
    """One M-tile of conv-as-GEMM: (patches @ W) * scale + shift, optional ReLU.

    Operands are bf16, accumulation and the affine epilogue are f32 (v5e-safe),
    the store dtype follows o_ref (bf16 for intermediate activations).
    """
    acc = jnp.dot(p_ref[...], w_ref[...], preferred_element_type=jnp.float32)
    y = acc * scale_ref[...] + shift_ref[...]
    if relu:
        y = jnp.maximum(y, 0.0)
    o_ref[...] = y.astype(o_ref.dtype)


def _head_kernel(hp_ref, ce_ref, pw_ref, bbs_ref, bbb_ref, ces_ref, ceb_ref,
                 w1a_ref, w1b_ref, b1s_ref, b1b_ref, w2_ref, b2s_ref, b2b_ref,
                 wa_ref, wc_ref, cb_ref,
                 arc_ref, cls_ref):
    """Fused (global-avg-pool + 1x1-proj+BN + neck + ArcFace + classifier) head.

      pooled = mean_spatial(maxpooled stem)            # pool-before-proj (exact)
      proj   = pooled @ W_proj ; affine (proj-BN folded with neck BN0, backbone slice)
      neck   = Linear(no bias) over implicit concat([backbone, cell_emb]) -> ReLU
               -> BN1d -> Linear(no bias) -> BN1d
      arc    = normalize(emb) @ pre-normalized W_arc   (cosine logits)
      cls    = emb @ W_cls + b_cls
    """
    # adaptive_avg_pool2d((1,1)) over the flattened spatial axis.
    pooled = jnp.mean(hp_ref[...].astype(jnp.float32), axis=1)          # (tb, Cpad)

    # 1x1 proj conv (backbone stand-in) as a matmul; pooling first is exact
    # because the conv has no nonlinearity before the pool.
    proj = jnp.dot(pooled.astype(jnp.bfloat16), pw_ref[...],
                   preferred_element_type=jnp.float32)                  # (tb, 1024)

    # proj-BN folded with neck BN0 (backbone slice); neck BN0 (cell-emb slice).
    h_bb = proj * bbs_ref[...] + bbb_ref[...]
    h_ce = ce_ref[...] * ces_ref[...] + ceb_ref[...]

    # Linear(features_num -> embedding, bias=False) applied to the implicit concat
    # [backbone_feats | cell_emb] via a split weight (avoids in-kernel concatenate).
    h = (jnp.dot(h_bb.astype(jnp.bfloat16), w1a_ref[...],
                 preferred_element_type=jnp.float32)
         + jnp.dot(h_ce, w1b_ref[...], preferred_element_type=jnp.float32))
    h = jnp.maximum(h, 0.0)                                             # ReLU
    h = h * b1s_ref[...] + b1b_ref[...]                                 # BN1d(embedding)
    h = jnp.dot(h.astype(jnp.bfloat16), w2_ref[...],
                preferred_element_type=jnp.float32)                     # Linear, bias=False
    emb = h * b2s_ref[...] + b2b_ref[...]                               # BN1d(embedding)

    # ArcMarginProduct: cosine(normalize(emb), normalize(W)).  W is pre-normalized
    # (constant), and the embedding norm uses rsqrt on the EUP.
    inv_norm = lax.rsqrt(jnp.sum(emb * emb, axis=1, keepdims=True) + 1e-24)
    arc_ref[...] = jnp.dot(emb * inv_norm, wa_ref[...],
                           preferred_element_type=jnp.float32)
    cls_ref[...] = (jnp.dot(emb, wc_ref[...], preferred_element_type=jnp.float32)
                    + cb_ref[...])


# ----------------------------------------------------------------------------
# Wrappers (glue: im2col, padding, parameter folding)
# ----------------------------------------------------------------------------

def gemm_bn_act(patches, wmat, scale, shift, *, relu, out_dtype=jnp.bfloat16):
    """Pallas GEMM with fused per-output-channel affine (+ReLU), tiled over M."""
    M, K = patches.shape
    Kw, N = wmat.shape
    assert K == Kw

    # Pad K to a multiple of 128: lane-dense patch loads / aligned MXU K (zeros exact).
    Kp = pl.cdiv(K, 128) * 128
    if Kp != K:
        patches = jnp.pad(patches, ((0, 0), (0, Kp - K)))
        wmat = jnp.pad(wmat, ((0, Kp - K), (0, 0)))
    Kd = Kp

    # bf16 operands: halves DMA bytes and doubles MXU rate; accumulation stays f32.
    patches = patches.astype(jnp.bfloat16)
    wmat = wmat.astype(jnp.bfloat16)

    # M tile: start at 256 (>=2 parallel grid steps at M=512 so both v7x TensorCores
    # get work, ~63-85% of HBM roofline per measured tile sweeps), shrink if the
    # double-buffered blocks would exceed a conservative VMEM budget (v7x-safe).
    out_bytes = jnp.dtype(out_dtype).itemsize
    vmem_budget = 24 * 1024 * 1024

    def _block_bytes(t):
        return 2 * (t * Kd * 2 + Kd * N * 2 + t * N * out_bytes)

    tm = 256
    while tm > 16 and _block_bytes(tm) > vmem_budget:
        tm //= 2
    tm = min(tm, pl.cdiv(M, 16) * 16)          # bf16 sublane packing: keep tm % 16 == 0
    Mp = pl.cdiv(M, tm) * tm
    if Mp != M:
        patches = jnp.pad(patches, ((0, Mp - M), (0, 0)))

    out = pl.pallas_call(
        functools.partial(_gemm_bn_act_kernel, relu=relu),
        out_shape=jax.ShapeDtypeStruct((Mp, N), out_dtype),
        grid=(Mp // tm,),
        in_specs=[
            pl.BlockSpec((tm, Kd), lambda i: (i, 0)),
            pl.BlockSpec((Kd, N), lambda i: (0, 0)),
            pl.BlockSpec((1, N), lambda i: (0, 0)),
            pl.BlockSpec((1, N), lambda i: (0, 0)),
        ],
        out_specs=pl.BlockSpec((tm, N), lambda i: (i, 0)),
        compiler_params=pltpu.CompilerParams(
            dimension_semantics=("parallel",),
            vmem_limit_bytes=32 * 1024 * 1024),
    )(patches, wmat, scale, shift)
    return out[:M] if Mp != M else out


def conv2d_bn_act(x_nhwc, w_oihw, scale, shift, *, stride, pad, relu,
                  out_dtype=jnp.bfloat16):
    """Conv2d (bias=False) + folded eval-mode BN (+ReLU) via im2col + Pallas GEMM.

    Output channels are zero-padded up to a multiple of 128 so stores are full
    128-lane (exact: padded channels have zero weight/scale/shift and are inert
    downstream because the consumers' weight rows for them are zero).
    """
    N, H, W, Cin = x_nhwc.shape
    O, I, kh, kw = w_oihw.shape
    assert I == Cin
    Ho = (H + 2 * pad - kh) // stride + 1
    Wo = (W + 2 * pad - kw) // stride + 1

    # TODO(synk): im2col is XLA glue; for real DenseNet resolutions move the tap
    # accumulation into the Pallas pipeline to avoid the 49x patch blowup in HBM.
    xp = jnp.pad(x_nhwc, ((0, 0), (pad, pad), (pad, pad), (0, 0)))
    cols = []
    for i in range(kh):
        for j in range(kw):
            cols.append(xp[:, i:i + stride * Ho:stride, j:j + stride * Wo:stride, :])
    patches = jnp.stack(cols, axis=3).reshape(N * Ho * Wo, kh * kw * Cin)
    wmat = jnp.transpose(w_oihw, (2, 3, 1, 0)).reshape(kh * kw * Cin, O)

    Op = pl.cdiv(O, 128) * 128
    if Op != O:
        wmat = jnp.pad(wmat, ((0, 0), (0, Op - O)))
        scale = jnp.pad(scale, ((0, 0), (0, Op - O)))
        shift = jnp.pad(shift, ((0, 0), (0, Op - O)))

    out = gemm_bn_act(patches, wmat, scale, shift, relu=relu, out_dtype=out_dtype)
    return out.reshape(N, Ho, Wo, Op)


def forward(params, x_nchw, s):
    """CustomDensenet.forward: returns (arc_margin_logits, classification_logits)."""
    x = jnp.transpose(x_nchw, (0, 2, 3, 1)).astype(jnp.float32)   # NCHW -> NHWC

    # ---- backbone stem: conv0 (6->64, 7x7/2, pad 3) + norm0 + relu0, fused GEMM ----
    h = conv2d_bn_act(x, params["conv0_w"],
                      params["bn_stem_scale"], params["bn_stem_shift"],
                      stride=2, pad=3, relu=True, out_dtype=jnp.bfloat16)

    # pool0: 3x3 max pool, stride 2, pad 1 (tiny XLA glue between the two kernels).
    h = lax.reduce_window(h, jnp.array(-jnp.inf, h.dtype), lax.max,
                          (1, 3, 3, 1), (1, 2, 2, 1),
                          ((0, 0), (1, 1), (1, 1), (0, 0)))
    B, Hh, Ww, Cpad = h.shape
    hp = h.reshape(B, Hh * Ww, Cpad)

    # ---- cell embedding lookup (glue gather) ----
    ce = jnp.take(params["cell_emb"], s[:, 0], axis=0)            # (B, cell_embedding_dim)
    ce_dim = ce.shape[1]

    # ---- fold the 1x1 proj conv + its BN with neck BN0 (backbone slice) ----
    backbone_feats = params["proj_w"].shape[0]
    pw = jnp.transpose(params["proj_w"], (2, 3, 1, 0)).reshape(
        params["proj_w"].shape[1], backbone_feats)
    pw = jnp.pad(pw, ((0, Cpad - pw.shape[0]), (0, 0))).astype(jnp.bfloat16)
    bn0_s, bn0_b = params["neck_bn0_scale"], params["neck_bn0_shift"]
    bbs = params["bn_proj_scale"] * bn0_s[:, :backbone_feats]
    bbb = (params["bn_proj_shift"] * bn0_s[:, :backbone_feats]
           + bn0_b[:, :backbone_feats])
    ces = bn0_s[:, backbone_feats:]
    ceb = bn0_b[:, backbone_feats:]
    w1a = params["neck_w1"][:backbone_feats].astype(jnp.bfloat16)
    w1b = params["neck_w1"][backbone_feats:]                       # tiny (12,512), keep f32
    w2 = params["neck_w2"].astype(jnp.bfloat16)
    num_classes = params["cls_b"].shape[1]

    # ---- fused avg-pool + proj + neck + ArcMarginProduct + classifier (Pallas) ----
    tb = B if B <= 128 else 128
    Bp = pl.cdiv(B, tb) * tb
    if Bp != B:
        hp = jnp.pad(hp, ((0, Bp - B), (0, 0), (0, 0)))
        ce = jnp.pad(ce, ((0, Bp - B), (0, 0)))
    full = lambda i: (0, 0)

    arc, cls = pl.pallas_call(
        _head_kernel,
        out_shape=(jax.ShapeDtypeStruct((Bp, num_classes), jnp.float32),
                   jax.ShapeDtypeStruct((Bp, num_classes), jnp.float32)),
        grid=(Bp // tb,),
        in_specs=[
            pl.BlockSpec((tb, Hh * Ww, Cpad), lambda i: (i, 0, 0)),   # hp
            pl.BlockSpec((tb, ce_dim), lambda i: (i, 0)),             # ce
            pl.BlockSpec(pw.shape, full),                             # proj weight
            pl.BlockSpec(bbs.shape, full),                            # folded proj/BN0 scale
            pl.BlockSpec(bbb.shape, full),                            # folded proj/BN0 shift
            pl.BlockSpec(ces.shape, full),                            # BN0 scale (cell slice)
            pl.BlockSpec(ceb.shape, full),                            # BN0 shift (cell slice)
            pl.BlockSpec(w1a.shape, full),                            # neck W1 (backbone rows)
            pl.BlockSpec(w1b.shape, full),                            # neck W1 (cell rows)
            pl.BlockSpec(params["neck_bn1_scale"].shape, full),
            pl.BlockSpec(params["neck_bn1_shift"].shape, full),
            pl.BlockSpec(w2.shape, full),                             # neck W2
            pl.BlockSpec(params["neck_bn2_scale"].shape, full),
            pl.BlockSpec(params["neck_bn2_shift"].shape, full),
            pl.BlockSpec(params["arc_w_n"].shape, full),              # pre-normalized arc W
            pl.BlockSpec(params["cls_w"].shape, full),
            pl.BlockSpec(params["cls_b"].shape, full),
        ],
        out_specs=(pl.BlockSpec((tb, num_classes), lambda i: (i, 0)),
                   pl.BlockSpec((tb, num_classes), lambda i: (i, 0))),
        compiler_params=pltpu.CompilerParams(
            dimension_semantics=("parallel",),
            vmem_limit_bytes=32 * 1024 * 1024),
    )(hp, ce, pw, bbs, bbb, ces, ceb, w1a, w1b,
      params["neck_bn1_scale"], params["neck_bn1_shift"], w2,
      params["neck_bn2_scale"], params["neck_bn2_shift"],
      params["arc_w_n"], params["cls_w"], params["cls_b"])

    if Bp != B:
        arc, cls = arc[:B], cls[:B]
    return arc, cls


# ----------------------------------------------------------------------------
# Deterministic synthetic parameters
# ----------------------------------------------------------------------------

def _affine_bn(key, n):
    """Eval-mode BatchNorm folded to per-channel (scale, shift); shapes (1, n)."""
    k1, k2, k3, k4 = jax.random.split(key, 4)
    gamma = jax.random.uniform(k1, (n,), jnp.float32, 0.5, 1.5)
    beta = 0.1 * jax.random.normal(k2, (n,), jnp.float32)
    rmean = 0.1 * jax.random.normal(k3, (n,), jnp.float32)
    rvar = jax.random.uniform(k4, (n,), jnp.float32, 0.5, 1.5)
    scale = gamma * lax.rsqrt(rvar + 1e-5)
    shift = beta - rmean * scale
    return scale.reshape(1, n), shift.reshape(1, n)


def init_params(key, num_classes, embedding_size=512, cell_embedding_dim=12):
    stem_ch = 64                       # densenet121 stem width
    backbone_feats = 1024              # densenet121 classifier.in_features
    features_num = backbone_feats + cell_embedding_dim
    ks = jax.random.split(key, 12)
    p = {}
    p["conv0_w"] = (jax.random.normal(ks[0], (stem_ch, 6, 7, 7), jnp.float32)
                    * (1.0 / jnp.sqrt(6 * 7 * 7)))
    p["bn_stem_scale"], p["bn_stem_shift"] = _affine_bn(ks[1], stem_ch)
    p["proj_w"] = (jax.random.normal(ks[2], (backbone_feats, stem_ch, 1, 1), jnp.float32)
                   * (1.0 / jnp.sqrt(stem_ch)))
    p["bn_proj_scale"], p["bn_proj_shift"] = _affine_bn(ks[3], backbone_feats)
    p["cell_emb"] = jax.random.normal(ks[4], (4, cell_embedding_dim), jnp.float32)
    p["neck_bn0_scale"], p["neck_bn0_shift"] = _affine_bn(ks[5], features_num)
    p["neck_w1"] = (jax.random.normal(ks[6], (features_num, embedding_size), jnp.float32)
                    * (1.0 / jnp.sqrt(features_num)))
    p["neck_bn1_scale"], p["neck_bn1_shift"] = _affine_bn(ks[7], embedding_size)
    p["neck_w2"] = (jax.random.normal(ks[8], (embedding_size, embedding_size), jnp.float32)
                    * (1.0 / jnp.sqrt(embedding_size)))
    p["neck_bn2_scale"], p["neck_bn2_shift"] = _affine_bn(ks[9], embedding_size)
    # ArcFace weight, pre-normalized along the embedding axis (hoisted out of the
    # forward kernel; exact at inference since the weight is a constant).
    arc_w = (jax.random.normal(ks[10], (embedding_size, num_classes), jnp.float32)
             * (1.0 / jnp.sqrt(embedding_size)))
    p["arc_w_n"] = arc_w * lax.rsqrt(jnp.sum(arc_w * arc_w, axis=0, keepdims=True) + 1e-24)
    kc1, kc2 = jax.random.split(ks[11])
    p["cls_w"] = (jax.random.normal(kc1, (embedding_size, num_classes), jnp.float32)
                  * (1.0 / jnp.sqrt(embedding_size)))
    p["cls_b"] = 0.01 * jax.random.normal(kc2, (1, num_classes), jnp.float32)
    return p


# ----------------------------------------------------------------------------
# Main
# ----------------------------------------------------------------------------

if __name__ == "__main__":
    num_classes = 16
    root = jax.random.PRNGKey(0)
    k_params, k_x, k_s = jax.random.split(root, 3)

    params = init_params(k_params, num_classes=num_classes)
    x = jax.random.normal(k_x, (2, 6, 32, 32), jnp.float32)            # NCHW, 6-channel input
    s = jax.random.randint(k_s, (2, 1), 0, 4, dtype=jnp.int32)         # cell type ids

    arc_logits, cls_logits = jax.jit(forward)(params, x, s)
    jax.block_until_ready((arc_logits, cls_logits))

    assert arc_logits.shape == (2, num_classes)
    assert cls_logits.shape == (2, num_classes)
    assert bool(jnp.all(jnp.isfinite(arc_logits)))
    assert bool(jnp.all(jnp.isfinite(cls_logits)))
    assert bool(jnp.all(jnp.abs(arc_logits) <= 1.0 + 1e-5))   # ArcFace cosine logits
    print("KERNEL_OK")
</pallas_src>

<mosaic_0001>
module attributes {stable_mosaic.version = 11 : i64} {
  func.func @_gemm_bn_act_kernel(%arg0: i32, %arg1: memref<256x384xbf16, #tpu.memory_space<vmem>>, %arg2: memref<384x128xbf16, #tpu.memory_space<vmem>>, %arg3: memref<1x128xf32, #tpu.memory_space<vmem>>, %arg4: memref<1x128xf32, #tpu.memory_space<vmem>>, %arg5: memref<256x128xbf16, #tpu.memory_space<vmem>>) attributes {dimension_semantics = [#tpu.dimension_semantics<parallel>], iteration_bounds = array<i64: 2>, scalar_prefetch = 0 : i64, scratch_operands = 0 : i64, tpu.core_type = #tpu.core_type<tc>, window_params = [{transform_indices = @transform_0, window_bounds = array<i64: 256, 384>}, {pipeline_mode = #tpu.pipeline_mode<synchronous>, transform_indices = @transform_1, window_bounds = array<i64: 384, 128>}, {pipeline_mode = #tpu.pipeline_mode<synchronous>, transform_indices = @transform_2, window_bounds = array<i64: 1, 128>}, {pipeline_mode = #tpu.pipeline_mode<synchronous>, transform_indices = @transform_3, window_bounds = array<i64: 1, 128>}, {transform_indices = @transform_4, window_bounds = array<i64: 256, 128>}]} {
    %c0 = arith.constant 0 : index
    %c0_0 = arith.constant 0 : index
    %0 = vector.load %arg1[%c0, %c0_0] : memref<256x384xbf16, #tpu.memory_space<vmem>>, vector<256x384xbf16>
    %c0_1 = arith.constant 0 : index
    %c0_2 = arith.constant 0 : index
    %1 = vector.load %arg2[%c0_1, %c0_2] : memref<384x128xbf16, #tpu.memory_space<vmem>>, vector<384x128xbf16>
    %cst = arith.constant dense<0.000000e+00> : vector<256x128xf32>
    %2 = tpu.matmul %0, %1, %cst {dimension_numbers = #tpu.dot_dimension_numbers<[1], [0], [0], [1], [0, 0, 1, 1], [], []>} : vector<256x384xbf16>, vector<384x128xbf16>, vector<256x128xf32> -> vector<256x128xf32>
    %c0_3 = arith.constant 0 : index
    %c0_4 = arith.constant 0 : index
    %3 = vector.load %arg3[%c0_3, %c0_4] : memref<1x128xf32, #tpu.memory_space<vmem>>, vector<1x128xf32>
    %4 = vector.broadcast %3 : vector<1x128xf32> to vector<256x128xf32>
    %5 = arith.mulf %2, %4 : vector<256x128xf32>
    %c0_5 = arith.constant 0 : index
    %c0_6 = arith.constant 0 : index
    %6 = vector.load %arg4[%c0_5, %c0_6] : memref<1x128xf32, #tpu.memory_space<vmem>>, vector<1x128xf32>
    %7 = vector.broadcast %6 : vector<1x128xf32> to vector<256x128xf32>
    %8 = arith.addf %5, %7 : vector<256x128xf32>
    %cst_7 = arith.constant 0.000000e+00 : f32
    %9 = vector.broadcast %cst_7 : f32 to vector<256x128xf32>
    %10 = arith.maximumf %8, %9 : vector<256x128xf32>
    %11 = arith.truncf %10 : vector<256x128xf32> to vector<256x128xbf16>
    %c0_8 = arith.constant 0 : index
    %c0_9 = arith.constant 0 : index
    %12 = vector.load %arg5[%c0_8, %c0_9] : memref<256x128xbf16, #tpu.memory_space<vmem>>, vector<256x128xbf16>
    tpu.vector_store %arg5[%c0_8, %c0_9], %11 {strides = array<i32>} : memref<256x128xbf16, #tpu.memory_space<vmem>>, vector<256x128xbf16>,
    return
  }
  func.func @transform_0(%arg0: i32) -> (i32, i32) {
    %c0_i32 = arith.constant 0 : i32
    %c0_i32_0 = arith.constant 0 : i32
    return %arg0, %c0_i32 : i32, i32
  }
  func.func @transform_1(%arg0: i32) -> (i32, i32) {
    %c0_i32 = arith.constant 0 : i32
    %c0_i32_0 = arith.constant 0 : i32
    %c0_i32_1 = arith.constant 0 : i32
    return %c0_i32, %c0_i32_0 : i32, i32
  }
  func.func @transform_2(%arg0: i32) -> (i32, i32) {
    %c0_i32 = arith.constant 0 : i32
    %c0_i32_0 = arith.constant 0 : i32
    %c0_i32_1 = arith.constant 0 : i32
    return %c0_i32, %c0_i32_0 : i32, i32
  }
  func.func @transform_3(%arg0: i32) -> (i32, i32) {
    %c0_i32 = arith.constant 0 : i32
    %c0_i32_0 = arith.constant 0 : i32
    %c0_i32_1 = arith.constant 0 : i32
    return %c0_i32, %c0_i32_0 : i32, i32
  }
  func.func @transform_4(%arg0: i32) -> (i32, i32) {
    %c0_i32 = arith.constant 0 : i32
    %c0_i32_0 = arith.constant 0 : i32
    return %arg0, %c0_i32 : i32, i32
  }
}

module attributes {stable_mosaic.version = 11 : i64} {
  func.func @_head_kernel(%arg0: i32, %arg1: memref<2x64x128xbf16, #tpu.memory_space<vmem>>, %arg2: memref<2x12xf32, #tpu.memory_space<vmem>>, %arg3: memref<128x1024xbf16, #tpu.memory_space<vmem>>, %arg4: memref<1x1024xf32, #tpu.memory_space<vmem>>, %arg5: memref<1x1024xf32, #tpu.memory_space<vmem>>, %arg6: memref<1x12xf32, #tpu.memory_space<vmem>>, %arg7: memref<1x12xf32, #tpu.memory_space<vmem>>, %arg8: memref<1024x512xbf16, #tpu.memory_space<vmem>>, %arg9: memref<12x512xf32, #tpu.memory_space<vmem>>, %arg10: memref<1x512xf32, #tpu.memory_space<vmem>>, %arg11: memref<1x512xf32, #tpu.memory_space<vmem>>, %arg12: memref<512x512xbf16, #tpu.memory_space<vmem>>, %arg13: memref<1x512xf32, #tpu.memory_space<vmem>>, %arg14: memref<1x512xf32, #tpu.memory_space<vmem>>, %arg15: memref<512x16xf32, #tpu.memory_space<vmem>>, %arg16: memref<512x16xf32, #tpu.memory_space<vmem>>, %arg17: memref<1x16xf32, #tpu.memory_space<vmem>>, %arg18: memref<2x16xf32, #tpu.memory_space<vmem>>, %arg19: memref<2x16xf32, #tpu.memory_space<vmem>>) attributes {dimension_semantics = [#tpu.dimension_semantics<parallel>], iteration_bounds = array<i64: 1>, scalar_prefetch = 0 : i64, scratch_operands = 0 : i64, tpu.core_type = #tpu.core_type<tc>, window_params = [{transform_indices = @transform_0, window_bounds = array<i64: 2, 64, 128>}, {transform_indices = @transform_1, window_bounds = array<i64: 2, 12>}, {pipeline_mode = #tpu.pipeline_mode<synchronous>, transform_indices = @transform_2, window_bounds = array<i64: 128, 1024>}, {pipeline_mode = #tpu.pipeline_mode<synchronous>, transform_indices = @transform_3, window_bounds = array<i64: 1, 1024>}, {pipeline_mode = #tpu.pipeline_mode<synchronous>, transform_indices = @transform_4, window_bounds = array<i64: 1, 1024>}, {pipeline_mode = #tpu.pipeline_mode<synchronous>, transform_indices = @transform_5, window_bounds = array<i64: 1, 12>}, {pipeline_mode = #tpu.pipeline_mode<synchronous>, transform_indices = @transform_6, window_bounds = array<i64: 1, 12>}, {pipeline_mode = #tpu.pipeline_mode<synchronous>, transform_indices = @transform_7, window_bounds = array<i64: 1024, 512>}, {pipeline_mode = #tpu.pipeline_mode<synchronous>, transform_indices = @transform_8, window_bounds = array<i64: 12, 512>}, {pipeline_mode = #tpu.pipeline_mode<synchronous>, transform_indices = @transform_9, window_bounds = array<i64: 1, 512>}, {pipeline_mode = #tpu.pipeline_mode<synchronous>, transform_indices = @transform_10, window_bounds = array<i64: 1, 512>}, {pipeline_mode = #tpu.pipeline_mode<synchronous>, transform_indices = @transform_11, window_bounds = array<i64: 512, 512>}, {pipeline_mode = #tpu.pipeline_mode<synchronous>, transform_indices = @transform_12, window_bounds = array<i64: 1, 512>}, {pipeline_mode = #tpu.pipeline_mode<synchronous>, transform_indices = @transform_13, window_bounds = array<i64: 1, 512>}, {pipeline_mode = #tpu.pipeline_mode<synchronous>, transform_indices = @transform_14, window_bounds = array<i64: 512, 16>}, {pipeline_mode = #tpu.pipeline_mode<synchronous>, transform_indices = @transform_15, window_bounds = array<i64: 512, 16>}, {pipeline_mode = #tpu.pipeline_mode<synchronous>, transform_indices = @transform_16, window_bounds = array<i64: 1, 16>}, {transform_indices = @transform_17, window_bounds = array<i64: 2, 16>}, {transform_indices = @transform_18, window_bounds = array<i64: 2, 16>}]} {
    %c0 = arith.constant 0 : index
    %c0_0 = arith.constant 0 : index
    %c0_1 = arith.constant 0 : index
    %0 = vector.load %arg1[%c0, %c0_0, %c0_1] : memref<2x64x128xbf16, #tpu.memory_space<vmem>>, vector<2x64x128xbf16>
    %1 = arith.extf %0 : vector<2x64x128xbf16> to vector<2x64x128xf32>
    %cst = arith.constant dense<0.000000e+00> : vector<2x128xf32>
    %2 = vector.multi_reduction <add>, %1, %cst [1] : vector<2x64x128xf32> to vector<2x128xf32>
    %cst_2 = arith.constant 6.400000e+01 : f32
    %3 = vector.broadcast %cst_2 : f32 to vector<2x128xf32>
    %4 = arith.divf %2, %3 : vector<2x128xf32>
    %5 = arith.truncf %4 : vector<2x128xf32> to vector<2x128xbf16>
    %c0_3 = arith.constant 0 : index
    %c0_4 = arith.constant 0 : index
    %6 = vector.load %arg3[%c0_3, %c0_4] : memref<128x1024xbf16, #tpu.memory_space<vmem>>, vector<128x1024xbf16>
    %cst_5 = arith.constant dense<0.000000e+00> : vector<2x1024xf32>
    %7 = tpu.matmul %5, %6, %cst_5 {dimension_numbers = #tpu.dot_dimension_numbers<[1], [0], [0], [1], [0, 0, 1, 1], [], []>} : vector<2x128xbf16>, vector<128x1024xbf16>, vector<2x1024xf32> -> vector<2x1024xf32>
    %c0_6 = arith.constant 0 : index
    %c0_7 = arith.constant 0 : index
    %8 = vector.load %arg4[%c0_6, %c0_7] : memref<1x1024xf32, #tpu.memory_space<vmem>>, vector<1x1024xf32>
    %9 = vector.broadcast %8 : vector<1x1024xf32> to vector<2x1024xf32>
    %10 = arith.mulf %7, %9 : vector<2x1024xf32>
    %c0_8 = arith.constant 0 : index
    %c0_9 = arith.constant 0 : index
    %11 = vector.load %arg5[%c0_8, %c0_9] : memref<1x1024xf32, #tpu.memory_space<vmem>>, vector<1x1024xf32>
    %12 = vector.broadcast %11 : vector<1x1024xf32> to vector<2x1024xf32>
    %13 = arith.addf %10, %12 : vector<2x1024xf32>
    %c0_10 = arith.constant 0 : index
    %c0_11 = arith.constant 0 : index
    %14 = vector.load %arg2[%c0_10, %c0_11] : memref<2x12xf32, #tpu.memory_space<vmem>>, vector<2x12xf32>
    %c0_12 = arith.constant 0 : index
    %c0_13 = arith.constant 0 : index
    %15 = vector.load %arg6[%c0_12, %c0_13] : memref<1x12xf32, #tpu.memory_space<vmem>>, vector<1x12xf32>
    %16 = vector.broadcast %15 : vector<1x12xf32> to vector<2x12xf32>
    %17 = arith.mulf %14, %16 : vector<2x12xf32>
    %c0_14 = arith.constant 0 : index
    %c0_15 = arith.constant 0 : index
    %18 = vector.load %arg7[%c0_14, %c0_15] : memref<1x12xf32, #tpu.memory_space<vmem>>, vector<1x12xf32>
    %19 = vector.broadcast %18 : vector<1x12xf32> to vector<2x12xf32>
    %20 = arith.addf %17, %19 : vector<2x12xf32>
    %21 = arith.truncf %13 : vector<2x1024xf32> to vector<2x1024xbf16>
    %c0_16 = arith.constant 0 : index
    %c0_17 = arith.constant 0 : index
    %22 = vector.load %arg8[%c0_16, %c0_17] : memref<1024x512xbf16, #tpu.memory_space<vmem>>, vector<1024x512xbf16>
    %cst_18 = arith.constant dense<0.000000e+00> : vector<2x512xf32>
    %23 = tpu.matmul %21, %22, %cst_18 {dimension_numbers = #tpu.dot_dimension_numbers<[1], [0], [0], [1], [0, 0, 1, 1], [], []>} : vector<2x1024xbf16>, vector<1024x512xbf16>, vector<2x512xf32> -> vector<2x512xf32>
    %c0_19 = arith.constant 0 : index
    %c0_20 = arith.constant 0 : index
    %24 = vector.load %arg9[%c0_19, %c0_20] : memref<12x512xf32, #tpu.memory_space<vmem>>, vector<12x512xf32>
    %cst_21 = arith.constant dense<0.000000e+00> : vector<2x512xf32>
    %25 = tpu.matmul %20, %24, %cst_21 {dimension_numbers = #tpu.dot_dimension_numbers<[1], [0], [0], [1], [0, 0, 1, 1], [], []>} : vector<2x12xf32>, vector<12x512xf32>, vector<2x512xf32> -> vector<2x512xf32>
    %26 = arith.addf %23, %25 : vector<2x512xf32>
    %cst_22 = arith.constant 0.000000e+00 : f32
    %27 = vector.broadcast %cst_22 : f32 to vector<2x512xf32>
    %28 = arith.maximumf %26, %27 : vector<2x512xf32>
    %c0_23 = arith.constant 0 : index
    %c0_24 = arith.constant 0 : index
    %29 = vector.load %arg10[%c0_23, %c0_24] : memref<1x512xf32, #tpu.memory_space<vmem>>, vector<1x512xf32>
    %30 = vector.broadcast %29 : vector<1x512xf32> to vector<2x512xf32>
    %31 = arith.mulf %28, %30 : vector<2x512xf32>
    %c0_25 = arith.constant 0 : index
    %c0_26 = arith.constant 0 : index
    %32 = vector.load %arg11[%c0_25, %c0_26] : memref<1x512xf32, #tpu.memory_space<vmem>>, vector<1x512xf32>
    %33 = vector.broadcast %32 : vector<1x512xf32> to vector<2x512xf32>
    %34 = arith.addf %31, %33 : vector<2x512xf32>
    %35 = arith.truncf %34 : vector<2x512xf32> to vector<2x512xbf16>
    %c0_27 = arith.constant 0 : index
    %c0_28 = arith.constant 0 : index
    %36 = vector.load %arg12[%c0_27, %c0_28] : memref<512x512xbf16, #tpu.memory_space<vmem>>, vector<512x512xbf16>
    %cst_29 = arith.constant dense<0.000000e+00> : vector<2x512xf32>
    %37 = tpu.matmul %35, %36, %cst_29 {dimension_numbers = #tpu.dot_dimension_numbers<[1], [0], [0], [1], [0, 0, 1, 1], [], []>} : vector<2x512xbf16>, vector<512x512xbf16>, vector<2x512xf32> -> vector<2x512xf32>
    %c0_30 = arith.constant 0 : index
    %c0_31 = arith.constant 0 : index
    %38 = vector.load %arg13[%c0_30, %c0_31] : memref<1x512xf32, #tpu.memory_space<vmem>>, vector<1x512xf32>
    %39 = vector.broadcast %38 : vector<1x512xf32> to vector<2x512xf32>
    %40 = arith.mulf %37, %39 : vector<2x512xf32>
    %c0_32 = arith.constant 0 : index
    %c0_33 = arith.constant 0 : index
    %41 = vector.load %arg14[%c0_32, %c0_33] : memref<1x512xf32, #tpu.memory_space<vmem>>, vector<1x512xf32>
    %42 = vector.broadcast %41 : vector<1x512xf32> to vector<2x512xf32>
    %43 = arith.addf %40, %42 : vector<2x512xf32>
    %44 = arith.mulf %43, %43 : vector<2x512xf32>
    %cst_34 = arith.constant dense<0.000000e+00> : vector<2xf32>
    %45 = vector.multi_reduction <add>, %44, %cst_34 [1] : vector<2x512xf32> to vector<2xf32>
    %46 = vector.shape_cast %45 : vector<2xf32> to vector<2x1xf32>
    %cst_35 = arith.constant 1.000000e-24 : f32
    %47 = vector.broadcast %cst_35 : f32 to vector<2x1xf32>
    %48 = arith.addf %46, %47 : vector<2x1xf32>
    %49 = math.rsqrt %48 : vector<2x1xf32>
    %50 = vector.broadcast %49 : vector<2x1xf32> to vector<2x512xf32>
    %51 = arith.mulf %43, %50 : vector<2x512xf32>
    %c0_36 = arith.constant 0 : index
    %c0_37 = arith.constant 0 : index
    %52 = vector.load %arg15[%c0_36, %c0_37] : memref<512x16xf32, #tpu.memory_space<vmem>>, vector<512x16xf32>
    %cst_38 = arith.constant dense<0.000000e+00> : vector<2x16xf32>
    %53 = tpu.matmul %51, %52, %cst_38 {dimension_numbers = #tpu.dot_dimension_numbers<[1], [0], [0], [1], [0, 0, 1, 1], [], []>} : vector<2x512xf32>, vector<512x16xf32>, vector<2x16xf32> -> vector<2x16xf32>
    %c0_39 = arith.constant 0 : index
    %c0_40 = arith.constant 0 : index
    %54 = vector.load %arg18[%c0_39, %c0_40] : memref<2x16xf32, #tpu.memory_space<vmem>>, vector<2x16xf32>
    tpu.vector_store %arg18[%c0_39, %c0_40], %53 {strides = array<i32>} : memref<2x16xf32, #tpu.memory_space<vmem>>, vector<2x16xf32>,
    %c0_41 = arith.constant 0 : index
    %c0_42 = arith.constant 0 : index
    %55 = vector.load %arg16[%c0_41, %c0_42] : memref<512x16xf32, #tpu.memory_space<vmem>>, vector<512x16xf32>
    %cst_43 = arith.constant dense<0.000000e+00> : vector<2x16xf32>
    %56 = tpu.matmul %43, %55, %cst_43 {dimension_numbers = #tpu.dot_dimension_numbers<[1], [0], [0], [1], [0, 0, 1, 1], [], []>} : vector<2x512xf32>, vector<512x16xf32>, vector<2x16xf32> -> vector<2x16xf32>
    %c0_44 = arith.constant 0 : index
    %c0_45 = arith.constant 0 : index
    %57 = vector.load %arg17[%c0_44, %c0_45] : memref<1x16xf32, #tpu.memory_space<vmem>>, vector<1x16xf32>
    %58 = vector.broadcast %57 : vector<1x16xf32> to vector<2x16xf32>
    %59 = arith.addf %56, %58 : vector<2x16xf32>
    %c0_46 = arith.constant 0 : index
    %c0_47 = arith.constant 0 : index
    %60 = vector.load %arg19[%c0_46, %c0_47] : memref<2x16xf32, #tpu.memory_space<vmem>>, vector<2x16xf32>
    tpu.vector_store %arg19[%c0_46, %c0_47], %59 {strides = array<i32>} : memref<2x16xf32, #tpu.memory_space<vmem>>, vector<2x16xf32>,
    return
  }
  func.func @transform_0(%arg0: i32) -> (i32, i32, i32) {
    %c0_i32 = arith.constant 0 : i32
    %c0_i32_0 = arith.constant 0 : i32
    %c0_i32_1 = arith.constant 0 : i32
    return %arg0, %c0_i32, %c0_i32_0 : i32, i32, i32
  }
  func.func @transform_1(%arg0: i32) -> (i32, i32) {
    %c0_i32 = arith.constant 0 : i32
    %c0_i32_0 = arith.constant 0 : i32
    return %arg0, %c0_i32 : i32, i32
  }
  func.func @transform_2(%arg0: i32) -> (i32, i32) {
    %c0_i32 = arith.constant 0 : i32
    %c0_i32_0 = arith.constant 0 : i32
    %c0_i32_1 = arith.constant 0 : i32
    return %c0_i32, %c0_i32_0 : i32, i32
  }
  func.func @transform_3(%arg0: i32) -> (i32, i32) {
    %c0_i32 = arith.constant 0 : i32
    %c0_i32_0 = arith.constant 0 : i32
    %c0_i32_1 = arith.constant 0 : i32
    return %c0_i32, %c0_i32_0 : i32, i32
  }
  func.func @transform_4(%arg0: i32) -> (i32, i32) {
    %c0_i32 = arith.constant 0 : i32
    %c0_i32_0 = arith.constant 0 : i32
    %c0_i32_1 = arith.constant 0 : i32
    return %c0_i32, %c0_i32_0 : i32, i32
  }
  func.func @transform_5(%arg0: i32) -> (i32, i32) {
    %c0_i32 = arith.constant 0 : i32
    %c0_i32_0 = arith.constant 0 : i32
    %c0_i32_1 = arith.constant 0 : i32
    return %c0_i32, %c0_i32_0 : i32, i32
  }
  func.func @transform_6(%arg0: i32) -> (i32, i32) {
    %c0_i32 = arith.constant 0 : i32
    %c0_i32_0 = arith.constant 0 : i32
    %c0_i32_1 = arith.constant 0 : i32
    return %c0_i32, %c0_i32_0 : i32, i32
  }
  func.func @transform_7(%arg0: i32) -> (i32, i32) {
    %c0_i32 = arith.constant 0 : i32
    %c0_i32_0 = arith.constant 0 : i32
    %c0_i32_1 = arith.constant 0 : i32
    return %c0_i32, %c0_i32_0 : i32, i32
  }
  func.func @transform_8(%arg0: i32) -> (i32, i32) {
    %c0_i32 = arith.constant 0 : i32
    %c0_i32_0 = arith.constant 0 : i32
    %c0_i32_1 = arith.constant 0 : i32
    return %c0_i32, %c0_i32_0 : i32, i32
  }
  func.func @transform_9(%arg0: i32) -> (i32, i32) {
    %c0_i32 = arith.constant 0 : i32
    %c0_i32_0 = arith.constant 0 : i32
    %c0_i32_1 = arith.constant 0 : i32
    return %c0_i32, %c0_i32_0 : i32, i32
  }
  func.func @transform_10(%arg0: i32) -> (i32, i32) {
    %c0_i32 = arith.constant 0 : i32
    %c0_i32_0 = arith.constant 0 : i32
    %c0_i32_1 = arith.constant 0 : i32
    return %c0_i32, %c0_i32_0 : i32, i32
  }
  func.func @transform_11(%arg0: i32) -> (i32, i32) {
    %c0_i32 = arith.constant 0 : i32
    %c0_i32_0 = arith.constant 0 : i32
    %c0_i32_1 = arith.constant 0 : i32
    return %c0_i32, %c0_i32_0 : i32, i32
  }
  func.func @transform_12(%arg0: i32) -> (i32, i32) {
    %c0_i32 = arith.constant 0 : i32
    %c0_i32_0 = arith.constant 0 : i32
    %c0_i32_1 = arith.constant 0 : i32
    return %c0_i32, %c0_i32_0 : i32, i32
  }
  func.func @transform_13(%arg0: i32) -> (i32, i32) {
    %c0_i32 = arith.constant 0 : i32
    %c0_i32_0 = arith.constant 0 : i32
    %c0_i32_1 = arith.constant 0 : i32
    return %c0_i32, %c0_i32_0 : i32, i32
  }
  func.func @transform_14(%arg0: i32) -> (i32, i32) {
    %c0_i32 = arith.constant 0 : i32
    %c0_i32_0 = arith.constant 0 : i32
    %c0_i32_1 = arith.constant 0 : i32
    return %c0_i32, %c0_i32_0 : i32, i32
  }
  func.func @transform_15(%arg0: i32) -> (i32, i32) {
    %c0_i32 = arith.constant 0 : i32
    %c0_i32_0 = arith.constant 0 : i32
    %c0_i32_1 = arith.constant 0 : i32
    return %c0_i32, %c0_i32_0 : i32, i32
  }
  func.func @transform_16(%arg0: i32) -> (i32, i32) {
    %c0_i32 = arith.constant 0 : i32
    %c0_i32_0 = arith.constant 0 : i32
    %c0_i32_1 = arith.constant 0 : i32
    return %c0_i32, %c0_i32_0 : i32, i32
  }
  func.func @transform_17(%arg0: i32) -> (i32, i32) {
    %c0_i32 = arith.constant 0 : i32
    %c0_i32_0 = arith.constant 0 : i32
    return %arg0, %c0_i32 : i32, i32
  }
  func.func @transform_18(%arg0: i32) -> (i32, i32) {
    %c0_i32 = arith.constant 0 : i32
    %c0_i32_0 = arith.constant 0 : i32
    return %arg0, %c0_i32 : i32, i32
  }
}

</mosaic_0001>

<bundles_post_ra>
// kernel: forward.2
= control target key start
LH: loop header
LB: loop body
LE: loop exit
PB: predicated region body
PF: predicated region fallthrough
CT: control target
= control target key end

     0   :  { %s1939_s15 = smov 0   ;;  %s2204_s0 = inlined_call_operand.vmem [shape: bf16[512,384], index: 0, kind: input, shape index: {}]   ;;  %s2205_s1 = inlined_call_operand.vmem [shape: bf16[384,128], index: 1, kind: input, shape index: {}]   ;;  %s2206_s2 = inlined_call_operand.vmem [shape: f32[1,128], index: 2, kind: input, shape index: {}]   ;;  %s2207_s3 = inlined_call_operand.vmem [shape: f32[1,128], index: 3, kind: input, shape index: {}]   ;;  %s2208_s4 = inlined_call_operand.vmem [shape: bf16[512,128], index: 4, kind: output, shape index: {}]  }
   0x1 LB: > { %s1365_s16 = sadd.s32 4294967295, %s1912_s15   ;;  %p1369_p0 = scmp.ge.s32.totalorder %s1912_s15, 1  ;;  %s1912_s15 = sphi %s1939_s15, %s14_s15  }
   0x2   : > { %p164_p1 = scmp.lt.s32.totalorder %s1912_s15, 3 }
   0x4   : > { %p165_p2 = pnand %p1369_p0, %p164_p1 }
   0x5   : > { %v1818_v0 = vld [vmem:[%s2205_s1 + $0x40] sm:$0xff] (!%p165_p2)   ;;  %s1370_s19 = sshll.u32 (!%p165_p2), %s1365_s16, 5  ;;  %v1820_v2 = vld [vmem:[%s2205_s1 + $0x48] sm:$0xff] (!%p165_p2)   ;;  %v1822_v4 = vld [vmem:[%s2205_s1 + $0x50] sm:$0xff] (!%p165_p2)  }
   0x6   : > { %168 = sbr.rel (%p165_p2) target bundleno = 354 (0x162), region = 36  ;;  %v1819_v1 = vld [vmem:[%s2205_s1] sm:$0xff] (!%p165_p2)   ;;  %1609 = vmatprep.subr.bf16.mxu0 (!%p165_p2), %v1818_v0  ;;  %1793 = vmatprep.subr.bf16.mxu1 (!%p165_p2), %v1818_v0  ;;  %p192_p3 = scmp.lt.s32.totalorder (!%p165_p2), %s1370_s19, 63  ;;  %v1821_v3 = vld [vmem:[%s2205_s1 + $0x8] sm:$0xff] (!%p165_p2)   ;;  %v1823_v5 = vld [vmem:[%s2205_s1 + $0x10] sm:$0xff] (!%p165_p2)  }
   0x7   : > { %1610 = vmatpush3.bf16.msra.mxu0 (!%p165_p2), %v1819_v1  ;;  %1801 = vmatpush3.bf16.msra.mxu1 (!%p165_p2), %v1819_v1  ;;  %v1824_v6 = vld [vmem:[%s2205_s1 + $0x58] sm:$0xff] (!%p165_p2)   ;;  %v1826_v8 = vld [vmem:[%s2205_s1 + $0x60] sm:$0xff] (!%p165_p2)   ;;  %v1828_v10 = vld [vmem:[%s2205_s1 + $0x68] sm:$0xff] (!%p165_p2)  }
   0x8   : > { %1611 = vmatprep.subr.bf16.mxu0 (!%p165_p2), %v1820_v2  ;;  %1794 = vmatprep.subr.bf16.mxu1 (!%p165_p2), %v1820_v2  ;;  %v1825_v7 = vld [vmem:[%s2205_s1 + $0x18] sm:$0xff] (!%p165_p2)   ;;  %v1827_v9 = vld [vmem:[%s2205_s1 + $0x20] sm:$0xff] (!%p165_p2)   ;;  %v1829_v13 = vld [vmem:[%s2205_s1 + $0x28] sm:$0xff] (!%p165_p2)  }
   0x9   : > { %v1830_v14 = vld [vmem:[%s2205_s1 + $0x70] sm:$0xff] (!%p165_p2)   ;;  %v1832_v16 = vld [vmem:[%s2205_s1 + $0x78] sm:$0xff] (!%p165_p2)   ;;  %v1840_v18 = vld [vmem:[%s2205_s1 + $0x80] sm:$0xff] (!%p165_p2)  }
   0xa   : > { %v1831_v15 = vld [vmem:[%s2205_s1 + $0x30] sm:$0xff] (!%p165_p2)   ;;  %v1833_v17 = vld [vmem:[%s2205_s1 + $0x38] sm:$0xff] (!%p165_p2)   ;;  %v1841_v22 = vld [vmem:[%s2205_s1 + $0x88] sm:$0xff] (!%p165_p2)  }
   0xb   : > { %1612 = vmatpush3.bf16.msra.mxu0 (!%p165_p2), %v1821_v3  ;;  %1802 = vmatpush3.bf16.msra.mxu1 (!%p165_p2), %v1821_v3  ;;  %v1848_v25 = vld [vmem:[%s2205_s1 + $0x90] sm:$0xff] (!%p165_p2)   ;;  %v1849_v27 = vld [vmem:[%s2205_s1 + $0x98] sm:$0xff] (!%p165_p2)   ;;  %v1856_v30 = vld [vmem:[%s2205_s1 + $0xa0] sm:$0xff] (!%p165_p2)  }
   0xc   : > { %1613 = vmatprep.subr.bf16.mxu0 (!%p165_p2), %v1822_v4  ;;  %1795 = vmatprep.subr.bf16.mxu1 (!%p165_p2), %v1822_v4  ;;  %v1857_v33 = vld [vmem:[%s2205_s1 + $0xa8] sm:$0xff] (!%p165_p2)   ;;  %v1864_v36 = vld [vmem:[%s2205_s1 + $0xb0] sm:$0xff] (!%p165_p2)   ;;  %v1865_v40 = vld [vmem:[%s2205_s1 + $0xb8] sm:$0xff] (!%p165_p2)  }
   0xd   : > { %s2210_s19 = smov (!%p192_p3, %s1370_s19), 63 }
   0xe   : > { %s1809_s6 = smul.u32 12, %s2210_s19  ;;  %s1373_s26 = sshll.u32 %s2210_s19, 2 }
   0xf   : > { %1614 = vmatpush3.bf16.msra.mxu0 %v1823_v5  ;;  %1803 = vmatpush3.bf16.msra.mxu1 %v1823_v5  ;;  %s2113_s29 = scalar_lea.vmem %s2208_s4, %s1373_s26 }
  0x10   : > { %1615 = vmatprep.subr.bf16.mxu0 %v1824_v6  ;;  %1796 = vmatprep.subr.bf16.mxu1 %v1824_v6  ;;  %s1980_s13 = scalar_lea.vmem %s2204_s0, %s1809_s6 }
  0x11   : > { %v1836_v11 = vld [vmem:[%s1980_s13 + $0x4] ss:$12 sps:$4 sm:$0xff]   ;;  %v1834_v19 = vld [vmem:[%s1980_s13] ss:$12 sps:$4 sm:$0xff]   ;;  %v1842_v21 = vld [vmem:[%s1980_s13 + $0x1c] ss:$12 sps:$4 sm:$0xff]  }
  0x12   : > { %v1839_v12 = vld [vmem:[%s1980_s13 + $0x124] ss:$12 sps:$4 sm:$0xff]   ;;  %749 = vmatprep.mubr.bf16.mxu0 %v1836_v11  ;;  %v1837_v20 = vld [vmem:[%s1980_s13 + $0x120] ss:$12 sps:$4 sm:$0xff]   ;;  %v1844_v23 = vld [vmem:[%s1980_s13 + $0x13c] ss:$12 sps:$4 sm:$0xff]  }
  0x13   : > { %1616 = vmatpush3.bf16.msra.mxu0 %v1825_v7  ;;  %1804 = vmatpush3.bf16.msra.mxu1 %v1825_v7  ;;  %v1846_v24 = vld [vmem:[%s1980_s13 + $0x18] ss:$12 sps:$4 sm:$0xff]   ;;  %v1850_v28 = vld [vmem:[%s1980_s13 + $0x34] ss:$12 sps:$4 sm:$0xff]   ;;  %v1854_v31 = vld [vmem:[%s1980_s13 + $0x30] ss:$12 sps:$4 sm:$0xff]  }
  0x14   : > { %1617 = vmatprep.subr.bf16.mxu0 %v1826_v8  ;;  %1797 = vmatprep.subr.bf16.mxu1 %v1826_v8  ;;  %v1847_v26 = vld [vmem:[%s1980_s13 + $0x138] ss:$12 sps:$4 sm:$0xff]   ;;  %v1852_v29 = vld [vmem:[%s1980_s13 + $0x154] ss:$12 sps:$4 sm:$0xff]   ;;  %v1855_v32 = vld [vmem:[%s1980_s13 + $0x150] ss:$12 sps:$4 sm:$0xff]  }
  0x15   : > { %845 = vmatprep.mubr.bf16.mxu1 %v1839_v12  ;;  %v1858_v34 = vld [vmem:[%s1980_s13 + $0x4c] ss:$12 sps:$4 sm:$0xff]   ;;  %v1862_v37 = vld [vmem:[%s1980_s13 + $0x48] ss:$12 sps:$4 sm:$0xff]   ;;  %v1866_v39 = vld [vmem:[%s1980_s13 + $0x64] ss:$12 sps:$4 sm:$0xff]  }
  0x16   : > { %v1860_v35 = vld [vmem:[%s1980_s13 + $0x16c] ss:$12 sps:$4 sm:$0xff]   ;;  %v1863_v38 = vld [vmem:[%s1980_s13 + $0x168] ss:$12 sps:$4 sm:$0xff]   ;;  %v1875_v47 = vld [vmem:[%s1980_s13 + $0x50] ss:$12 sps:$4 sm:$0xff]  }
  0x17   : > { %1618 = vmatpush3.bf16.msra.mxu0 %v1827_v9  ;;  %1805 = vmatpush3.bf16.msra.mxu1 %v1827_v9  ;;  %v1868_v41 = vld [vmem:[%s1980_s13 + $0x8] ss:$12 sps:$4 sm:$0xff]   ;;  %v1869_v42 = vld [vmem:[%s1980_s13 + $0x60] ss:$12 sps:$4 sm:$0xff]   ;;  %v1873_v45 = vld [vmem:[%s1980_s13 + $0x38] ss:$12 sps:$4 sm:$0xff]  }
  0x18   : > { %1619 = vmatprep.subr.bf16.mxu0 %v1828_v10  ;;  %1798 = vmatprep.subr.bf16.mxu1 %v1828_v10  ;;  %v1870_v43 = vld [vmem:[%s1980_s13 + $0x20] ss:$12 sps:$4 sm:$0xff]   ;;  %v1871_v44 = vld [vmem:[%s1980_s13 + $0x7c] ss:$12 sps:$4 sm:$0xff]   ;;  %v1874_v46 = vld [vmem:[%s1980_s13 + $0x78] ss:$12 sps:$4 sm:$0xff]  }
  0x19   : > { %v1876_v48 = vld [vmem:[%s1980_s13 + $0x94] ss:$12 sps:$4 sm:$0xff]   ;;  %v1879_v50 = vld [vmem:[%s1980_s13 + $0x90] ss:$12 sps:$4 sm:$0xff]   ;;  %v1881_v52 = vld [vmem:[%s1980_s13 + $0xac] ss:$12 sps:$4 sm:$0xff]  }
  0x1a   : > { %v1878_v49 = vld [vmem:[%s1980_s13 + $0x68] ss:$12 sps:$4 sm:$0xff]   ;;  %v1880_v51 = vld [vmem:[%s1980_s13 + $0x80] ss:$12 sps:$4 sm:$0xff]   ;;  %v1883_v53 = vld [vmem:[%s1980_s13 + $0x98] ss:$12 sps:$4 sm:$0xff]  }
  0x1b   : > { %1620 = vmatpush3.bf16.msra.mxu0 %v1829_v13  ;;  %1806 = vmatpush3.bf16.msra.mxu1 %v1829_v13  ;;  %v1884_v54 = vld [vmem:[%s1980_s13 + $0xa8] ss:$12 sps:$4 sm:$0xff]   ;;  %v1885_v55 = vld [vmem:[%s1980_s13 + $0xb0] ss:$12 sps:$4 sm:$0xff]   ;;  %v1889_v58 = vld [vmem:[%s1980_s13 + $0xc0] ss:$12 sps:$4 sm:$0xff]  }
  0x1c   : > { %1621 = vmatprep.subr.bf16.mxu0 %v1830_v14  ;;  %1799 = vmatprep.subr.bf16.mxu1 %v1830_v14  ;;  %v1886_v56 = vld [vmem:[%s1980_s13 + $0xc4] ss:$12 sps:$4 sm:$0xff]   ;;  %v1888_v57 = vld [vmem:[%s1980_s13 + $0xc8] ss:$12 sps:$4 sm:$0xff]   ;;  %v1890_v59 = vld [vmem:[%s1980_s13 + $0xe0] ss:$12 sps:$4 sm:$0xff]  }
  0x1d   : > { %v1891_v60 = vld [vmem:[%s1980_s13 + $0xdc] ss:$12 sps:$4 sm:$0xff]   ;;  %v1893_v61 = vld [vmem:[%s1980_s13 + $0xf8] ss:$12 sps:$4 sm:$0xff]   ;;  %v1896_v0 = vld [vmem:[%s1980_s13 + $0xf4] ss:$12 sps:$4 sm:$0xff]  }
  0x1e   : > { %v1894_v62 = vld [vmem:[%s1980_s13 + $0xd8] ss:$12 sps:$4 sm:$0xff]   ;;  %v1895_v63 = vld [vmem:[%s1980_s13 + $0x110] ss:$12 sps:$4 sm:$0xff]   ;;  %v1898_v1 = vld [vmem:[%s1980_s13 + $0x128] ss:$12 sps:$4 sm:$0xff]  }
  0x1f   : > { %1622 = vmatpush3.bf16.msra.mxu0 %v1831_v15  ;;  %1807 = vmatpush3.bf16.msra.mxu1 %v1831_v15  ;;  %v1899_v2 = vld [vmem:[%s1980_s13 + $0xf0] ss:$12 sps:$4 sm:$0xff]   ;;  %v1900_v3 = vld [vmem:[%s1980_s13 + $0x140] ss:$12 sps:$4 sm:$0xff]   ;;  %v1903_v5 = vld [vmem:[%s1980_s13 + $0x158] ss:$12 sps:$4 sm:$0xff]  }
  0x20   : > { %1623 = vmatprep.subr.bf16.mxu0 %v1832_v16  ;;  %1800 = vmatprep.subr.bf16.mxu1 %v1832_v16  ;;  %v1901_v4 = vld [vmem:[%s1980_s13 + $0x10c] ss:$12 sps:$4 sm:$0xff]   ;;  %v1904_v6 = vld [vmem:[%s1980_s13 + $0x108] ss:$12 sps:$4 sm:$0xff]   ;;  %v1905_v7 = vld [vmem:[%s1980_s13 + $0x170] ss:$12 sps:$4 sm:$0xff]  }
  0x23   : > { %1624 = vmatpush3.bf16.msra.mxu0 %v1833_v17  ;;  %1808 = vmatpush3.bf16.msra.mxu1 %v1833_v17 }
  0x24   : > { %1745 = vmatprep.subr.bf16.mxu1 %v1840_v18 }
  0x26   : > { %750 = vmatmul.mubr.bf16.vlgmr.msra.gmra.mrb[0].mxu0 %v1834_v19  ;;  %846 = vmatmul.mubr.bf16.vlgmr.msra.gmra.mrb[0].mxu1 %v1837_v20 }
  0x27   : > { %1746 = vmatpush3.bf16.msra.mxu1 %v1840_v18  ;;  %757 = vmatprep.mubr.bf16.mxu0 %v1842_v21 }
  0x28   : > { %1747 = vmatprep.subr.bf16.mxu1 %v1841_v22  ;;  %853 = vmatprep.mubr.bf16.mxu1 %v1844_v23 }
  0x2b   : > { %1748 = vmatpush3.bf16.msra.mxu1 %v1841_v22 }
  0x2c   : > { %1749 = vmatprep.subr.bf16.mxu1 %v1848_v25 }
  0x2e   : > { %758 = vmatmul.mubr.bf16.gmra.mrb[4].mxu0 %v1846_v24  ;;  %854 = vmatmul.mubr.bf16.gmra.mrb[4].mxu1 %v1847_v26 }
  0x2f   : > { %1750 = vmatpush3.bf16.msra.mxu1 %v1848_v25  ;;  %765 = vmatprep.mubr.bf16.mxu0 %v1850_v28 }
  0x30   : > { %1751 = vmatprep.subr.bf16.mxu1 %v1849_v27  ;;  %861 = vmatprep.mubr.bf16.mxu1 %v1852_v29 }
  0x33   : > { %1752 = vmatpush3.bf16.msra.mxu1 %v1849_v27 }
  0x34   : > { %1753 = vmatprep.subr.bf16.mxu1 %v1856_v30 }
  0x36   : > { %766 = vmatmul.mubr.bf16.gmra.mrb[8].mxu0 %v1854_v31  ;;  %862 = vmatmul.mubr.bf16.gmra.mrb[8].mxu1 %v1855_v32 }
  0x37   : > { %1754 = vmatpush3.bf16.msra.mxu1 %v1856_v30  ;;  %773 = vmatprep.mubr.bf16.mxu0 %v1858_v34 }
  0x38   : > { %1755 = vmatprep.subr.bf16.mxu1 %v1857_v33  ;;  %869 = vmatprep.mubr.bf16.mxu1 %v1860_v35 }
  0x3b   : > { %1756 = vmatpush3.bf16.msra.mxu1 %v1857_v33 }
  0x3c   : > { %1757 = vmatprep.subr.bf16.mxu1 %v1864_v36 }
  0x3e   : > { %774 = vmatmul.mubr.bf16.gmra.mrb[12].mxu0 %v1862_v37  ;;  %870 = vmatmul.mubr.bf16.gmra.mrb[12].mxu1 %v1863_v38 }
  0x3f   : > { %1758 = vmatpush3.bf16.msra.mxu1 %v1864_v36  ;;  %781 = vmatprep.mubr.bf16.mxu0 %v1866_v39 }
  0x40   : > { %1759 = vmatprep.subr.bf16.mxu1 %v1865_v40  ;;  %1761 = vmatprep.mubr.bf16.mxu1 %v1868_v41 }
  0x43   : > { %1760 = vmatpush3.bf16.msra.mxu1 %v1865_v40 }
  0x46   : > { %782 = vmatmul.mubr.bf16.gmra.mrb[16].mxu0 %v1869_v42  ;;  %1762 = vmatmul.mubr.bf16.vlgmr.msra.gmra.mrb[16].mxu1 %v1870_v43 }
  0x47   : > { %789 = vmatprep.mubr.bf16.mxu0 %v1871_v44  ;;  %1765 = vmatprep.mubr.bf16.mxu1 %v1873_v45 }
  0x4e   : > { %790 = vmatmul.mubr.bf16.gmra.mrb[20].mxu0 %v1874_v46  ;;  %1766 = vmatmul.mubr.bf16.gmra.mrb[20].mxu1 %v1875_v47 }
  0x4f   : > { %797 = vmatprep.mubr.bf16.mxu0 %v1876_v48  ;;  %1769 = vmatprep.mubr.bf16.mxu1 %v1878_v49 }
  0x56   : > { %798 = vmatmul.mubr.bf16.gmra.mrb[24].mxu0 %v1879_v50  ;;  %1770 = vmatmul.mubr.bf16.gmra.mrb[24].mxu1 %v1880_v51 }
  0x57   : > { %805 = vmatprep.mubr.bf16.mxu0 %v1881_v52  ;;  %1773 = vmatprep.mubr.bf16.mxu1 %v1883_v53 }
  0x5e   : > { %806 = vmatmul.mubr.bf16.gmra.mrb[28].mxu0 %v1884_v54  ;;  %1774 = vmatmul.mubr.bf16.gmra.mrb[28].mxu1 %v1885_v55 }
  0x5f   : > { %813 = vmatprep.mubr.bf16.mxu0 %v1886_v56  ;;  %1777 = vmatprep.mubr.bf16.mxu1 %v1888_v57 }
  0x66   : > { %814 = vmatmul.mubr.bf16.gmra.mrb[32].mxu0 %v1889_v58  ;;  %1778 = vmatmul.mubr.bf16.gmra.mrb[32].mxu1 %v1890_v59  ;;  %v2094_v58 = vld [vmem:[%s2206_s2] ss:$0 sm:$0xff] }
  0x67   : > { %821 = vmatprep.mubr.bf16.mxu0 %v1891_v60  ;;  %1781 = vmatprep.mubr.bf16.mxu1 %v1893_v61 }
  0x6e   : > { %822 = vmatmul.mubr.bf16.gmra.mrb[36].mxu0 %v1894_v62  ;;  %1782 = vmatmul.mubr.bf16.gmra.mrb[36].mxu1 %v1895_v63  ;;  %v2099_v62 = vld [vmem:[%s2207_s3] ss:$0 sm:$0xff] }
  0x6f   : > { %829 = vmatprep.mubr.bf16.mxu0 %v1896_v0  ;;  %1785 = vmatprep.mubr.bf16.mxu1 %v1898_v1 }
  0x76   : > { %830 = vmatmul.mubr.bf16.gmra.mrb[40].mxu0 %v1899_v2  ;;  %1786 = vmatmul.mubr.bf16.gmra.mrb[40].mxu1 %v1900_v3 }
  0x77   : > { %837 = vmatprep.mubr.bf16.mxu0 %v1901_v4  ;;  %1789 = vmatprep.mubr.bf16.mxu1 %v1903_v5 }
  0x7e   : > { %838 = vmatmul.mubr.bf16.gmra.mrb[44].mxu0 %v1904_v6  ;;  %1790 = vmatmul.mubr.bf16.gmra.mrb[44].mxu1 %v1905_v7 }
  0xf9   : > { %v1625_v8 = vpop.f32.mrb[0].mxu0  ;;  %v1697_v9 = vpop.f32.mrb[0].mxu1 }
  0xfa   : > { %v1626_v10 = vpop.f32.mrb[1].mxu0  ;;  %v1698_v11 = vpop.f32.mrb[1].mxu1 }
  0xfb   : > { %v1627_v12 = vadd.f32 %v1626_v10, %v1625_v8  ;;  %v2075_v13 = vadd.f32 %v1698_v11, %v1697_v9  ;;  %v1628_v14 = vpop.f32.mrb[2].mxu0  ;;  %v1700_v15 = vpop.f32.mrb[2].mxu1 }
  0xfc   : > { %v1629_v16 = vpop.f32.mrb[3].mxu0  ;;  %v1701_v17 = vpop.f32.mrb[3].mxu1 }
  0xfd   : > { %v1630_v18 = vadd.f32 %v1629_v16, %v1628_v14  ;;  %v2077_v19 = vadd.f32 %v1701_v17, %v1700_v15 }
 0x101   : > { %v1631_v20 = vpop.f32.mrb[4].mxu0  ;;  %v1703_v21 = vpop.f32.mrb[4].mxu1 }
 0x102   : > { %v1632_v22 = vpop.f32.mrb[5].mxu0  ;;  %v1704_v23 = vpop.f32.mrb[5].mxu1 }
 0x103   : > { %v1633_v24 = vadd.f32 %v1632_v22, %v1631_v20  ;;  %v2079_v25 = vadd.f32 %v1704_v23, %v1703_v21  ;;  %v1634_v26 = vpop.f32.mrb[6].mxu0  ;;  %v1706_v27 = vpop.f32.mrb[6].mxu1 }
 0x104   : > { %v1635_v28 = vpop.f32.mrb[7].mxu0  ;;  %v1707_v29 = vpop.f32.mrb[7].mxu1 }
 0x105   : > { %v1636_v30 = vadd.f32 %v1635_v28, %v1634_v26  ;;  %v2081_v31 = vadd.f32 %v1707_v29, %v1706_v27 }
 0x109   : > { %v1637_v32 = vpop.f32.mrb[8].mxu0  ;;  %v1709_v33 = vpop.f32.mrb[8].mxu1 }
 0x10a   : > { %v1638_v34 = vpop.f32.mrb[9].mxu0  ;;  %v1710_v35 = vpop.f32.mrb[9].mxu1 }
 0x10b   : > { %v1639_v36 = vadd.f32 %v1638_v34, %v1637_v32  ;;  %v2083_v37 = vadd.f32 %v1710_v35, %v1709_v33  ;;  %v1640_v38 = vpop.f32.mrb[10].mxu0  ;;  %v1712_v39 = vpop.f32.mrb[10].mxu1 }
 0x10c   : > { %v1641_v40 = vpop.f32.mrb[11].mxu0  ;;  %v1713_v41 = vpop.f32.mrb[11].mxu1 }
 0x10d   : > { %v1642_v42 = vadd.f32 %v1641_v40, %v1640_v38  ;;  %v2085_v43 = vadd.f32 %v1713_v41, %v1712_v39 }
 0x111   : > { %v1643_v44 = vpop.f32.mrb[12].mxu0  ;;  %v1715_v45 = vpop.f32.mrb[12].mxu1 }
 0x112   : > { %v1644_v46 = vpop.f32.mrb[13].mxu0  ;;  %v1716_v47 = vpop.f32.mrb[13].mxu1 }
 0x113   : > { %v1645_v48 = vadd.f32 %v1644_v46, %v1643_v44  ;;  %v2087_v49 = vadd.f32 %v1716_v47, %v1715_v45  ;;  %v1646_v50 = vpop.f32.mrb[14].mxu0  ;;  %v1718_v51 = vpop.f32.mrb[14].mxu1 }
 0x114   : > { %v1647_v52 = vpop.f32.mrb[15].mxu0  ;;  %v1719_v53 = vpop.f32.mrb[15].mxu1 }
 0x115   : > { %v1648_v54 = vadd.f32 %v1647_v52, %v1646_v50  ;;  %v2089_v55 = vadd.f32 %v1719_v53, %v1718_v51 }
 0x119   : > { %v1649_v56 = vpop.f32.mrb[16].mxu0  ;;  %v1763_v57 = vpop.f32.mrb[16].mxu1 }
 0x11a   : > { %v921_v59 = vadd.f32 %v1763_v57, %v1633_v24  ;;  %v1650_v60 = vpop.f32.mrb[17].mxu0  ;;  %v912_v61 = vpop.f32.mrb[17].mxu1 }
 0x11b   : > { %v1651_v63 = vadd.f32 %v1650_v60, %v1649_v56  ;;  %v913_v0 = vadd.f32 %v1627_v12, %v912_v61  ;;  %v1652_v1 = vpop.f32.mrb[18].mxu0  ;;  %v1764_v2 = vpop.f32.mrb[18].mxu1 }
 0x11c   : > { %v1048_v3 = vmul.f32 %v2094_v58, %v921_v59  ;;  %v924_v4 = vadd.f32 %v1764_v2, %v1636_v30  ;;  %v1653_v5 = vpop.f32.mrb[19].mxu0  ;;  %v915_v6 = vpop.f32.mrb[19].mxu1 }
 0x11d   : > { %v1046_v7 = vmul.f32 %v2094_v58, %v913_v0  ;;  %v1654_v8 = vadd.f32 %v1653_v5, %v1652_v1  ;;  %v916_v9 = vadd.f32 %v1630_v18, %v915_v6 }
 0x11e   : > { %v1087_v10 = vadd.f32 %v2099_v62, %v1048_v3  ;;  %v1049_v11 = vmul.f32 %v2094_v58, %v924_v4 }
 0x11f   : > { %v1085_v14 = vadd.f32 %v2099_v62, %v1046_v7  ;;  %v1047_v15 = vmul.f32 %v2094_v58, %v916_v9 }
 0x120   : > { %v1088_v12 = vadd.f32 %v2099_v62, %v1049_v11  ;;  %v1119_v21 = vmax.f32 %v1087_v10, 0.0 }
 0x121   : > { %v1086_v16 = vadd.f32 %v2099_v62, %v1047_v15  ;;  %v1655_v17 = vpop.f32.mrb[20].mxu0  ;;  %v1767_v20 = vpop.f32.mrb[20].mxu1  ;;  %v1117_v26 = vmax.f32 %v1085_v14, 0.0 }
 0x122   : > { %v1120_v22 = vmax.f32 %v1088_v12, 0.0  ;;  %v937_v23 = vadd.f32 %v1767_v20, %v1645_v48  ;;  %v1656_v24 = vpop.f32.mrb[21].mxu0  ;;  %v928_v18 = vpop.f32.mrb[21].mxu1 }
 0x123   : > { %v1118_v27 = vmax.f32 %v1086_v16, 0.0  ;;  %v1657_v28 = vadd.f32 %v1656_v24, %v1655_v17  ;;  %v929_v29 = vadd.f32 %v1639_v36, %v928_v18  ;;  %v1658_v30 = vpop.f32.mrb[22].mxu0  ;;  %v1768_v32 = vpop.f32.mrb[22].mxu1 }
 0x124   : > { %v1522_v33 = vpack.c.bf16 %v1120_v22, %v1119_v21  ;;  %v1052_v34 = vmul.f32 %v2094_v58, %v937_v23  ;;  %v940_v35 = vadd.f32 %v1768_v32, %v1648_v54  ;;  %v1659_v38 = vpop.f32.mrb[23].mxu0  ;;  %v931_v39 = vpop.f32.mrb[23].mxu1 }
 0x125   : > { %v1517_v40 = vpack.c.bf16 %v1118_v27, %v1117_v26  ;;  %v1050_v41 = vmul.f32 %v2094_v58, %v929_v29  ;;  %v1660_v44 = vadd.f32 %v1659_v38, %v1658_v30  ;;  %v932_v45 = vadd.f32 %v1642_v42, %v931_v39 }
 0x126   : > { %1594 = vst [vmem:[%s2113_s29 + $0x8] sm:$0xff] %v1522_v33   ;;  %v1091_v46 = vadd.f32 %v2099_v62, %v1052_v34  ;;  %v1053_v47 = vmul.f32 %v2094_v58, %v940_v35 }
 0x127   : > { %1518 = vst [vmem:[%s2113_s29] sm:$0xff] %v1517_v40   ;;  %v1089_v36 = vadd.f32 %v2099_v62, %v1050_v41  ;;  %v1051_v48 = vmul.f32 %v2094_v58, %v932_v45 }
 0x128   : > { %v1092_v50 = vadd.f32 %v2099_v62, %v1053_v47  ;;  %v1123_v54 = vmax.f32 %v1091_v46, 0.0 }
 0x129   : > { %v1090_v51 = vadd.f32 %v2099_v62, %v1051_v48  ;;  %v1661_v52 = vpop.f32.mrb[24].mxu0  ;;  %v1771_v53 = vpop.f32.mrb[24].mxu1  ;;  %v1121_v60 = vmax.f32 %v1089_v36, 0.0 }
 0x12a   : > { %v1124_v56 = vmax.f32 %v1092_v50, 0.0  ;;  %v953_v57 = vadd.f32 %v1771_v53, %v1657_v28  ;;  %v1662_v42 = vpop.f32.mrb[25].mxu0  ;;  %v944_v59 = vpop.f32.mrb[25].mxu1 }
 0x12b   : > { %v1122_v61 = vmax.f32 %v1090_v51, 0.0  ;;  %v1663_v0 = vadd.f32 %v1662_v42, %v1661_v52  ;;  %v945_v1 = vadd.f32 %v1651_v63, %v944_v59  ;;  %v1664_v2 = vpop.f32.mrb[26].mxu0  ;;  %v1772_v3 = vpop.f32.mrb[26].mxu1 }
 0x12c   : > { %v1532_v4 = vpack.c.bf16 %v1124_v56, %v1123_v54  ;;  %v1056_v5 = vmul.f32 %v2094_v58, %v953_v57  ;;  %v956_v6 = vadd.f32 %v1772_v3, %v1660_v44  ;;  %v1665_v7 = vpop.f32.mrb[27].mxu0  ;;  %v947_v9 = vpop.f32.mrb[27].mxu1 }
 0x12d   : > { %v1527_v10 = vpack.c.bf16 %v1122_v61, %v1121_v60  ;;  %v1054_v11 = vmul.f32 %v2094_v58, %v945_v1  ;;  %v1666_v14 = vadd.f32 %v1665_v7, %v1664_v2  ;;  %v948_v15 = vadd.f32 %v1654_v8, %v947_v9 }
 0x12e   : > { %1596 = vst [vmem:[%s2113_s29 + $0x18] sm:$0xff] %v1532_v4   ;;  %v1095_v12 = vadd.f32 %v2099_v62, %v1056_v5  ;;  %v1057_v16 = vmul.f32 %v2094_v58, %v956_v6 }
 0x12f   : > { %1595 = vst [vmem:[%s2113_s29 + $0x10] sm:$0xff] %v1527_v10   ;;  %v1093_v63 = vadd.f32 %v2099_v62, %v1054_v11  ;;  %v1055_v17 = vmul.f32 %v2094_v58, %v948_v15 }
 0x130   : > { %v1096_v20 = vadd.f32 %v2099_v62, %v1057_v16  ;;  %v1127_v24 = vmax.f32 %v1095_v12, 0.0 }
 0x131   : > { %v1094_v21 = vadd.f32 %v2099_v62, %v1055_v17  ;;  %v1667_v22 = vpop.f32.mrb[28].mxu0  ;;  %v1775_v23 = vpop.f32.mrb[28].mxu1  ;;  %v1125_v27 = vmax.f32 %v1093_v63, 0.0 }
 0x132   : > { %v1128_v18 = vmax.f32 %v1096_v20, 0.0  ;;  %v1668_v8 = vpop.f32.mrb[29].mxu0  ;;  %v960_v26 = vpop.f32.mrb[29].mxu1 }
 0x133   : > { %v1126_v28 = vmax.f32 %v1094_v21, 0.0  ;;  %v1669_v29 = vadd.f32 %v1668_v8, %v1667_v22  ;;  %v961_v30 = vadd.f32 %v1663_v0, %v960_v26  ;;  %v1670_v32 = vpop.f32.mrb[30].mxu0  ;;  %v1776_v33 = vpop.f32.mrb[30].mxu1 }
 0x134   : > { %v1542_v34 = vpack.c.bf16 %v1128_v18, %v1127_v24  ;;  %v1671_v35 = vpop.f32.mrb[31].mxu0  ;;  %v963_v38 = vpop.f32.mrb[31].mxu1 }
 0x135   : > { %v1537_v39 = vpack.c.bf16 %v1126_v28, %v1125_v27  ;;  %v969_v40 = vadd.f32 %v1775_v23, %v1669_v29  ;;  %v1058_v41 = vmul.f32 %v2094_v58, %v961_v30  ;;  %v1672_v44 = vadd.f32 %v1671_v35, %v1670_v32 }
 0x136   : > { %1598 = vst [vmem:[%s2113_s29 + $0x28] sm:$0xff] %v1542_v34   ;;  %v964_v45 = vadd.f32 %v1666_v14, %v963_v38 }
 0x137   : > { %1597 = vst [vmem:[%s2113_s29 + $0x20] sm:$0xff] %v1537_v39   ;;  %v1060_v46 = vmul.f32 %v2094_v58, %v969_v40  ;;  %v972_v47 = vadd.f32 %v1776_v33, %v1672_v44  ;;  %v1097_v36 = vadd.f32 %v2099_v62, %v1058_v41 }
 0x138   : > { %v1059_v48 = vmul.f32 %v2094_v58, %v964_v45 }
 0x139   : > { %v1099_v50 = vadd.f32 %v2099_v62, %v1060_v46  ;;  %v1061_v51 = vmul.f32 %v2094_v58, %v972_v47  ;;  %v1673_v52 = vpop.f32.mrb[32].mxu0  ;;  %v1779_v53 = vpop.f32.mrb[32].mxu1  ;;  %v1129_v0 = vmax.f32 %v1097_v36, 0.0 }
 0x13a   : > { %v1098_v54 = vadd.f32 %v2099_v62, %v1059_v48  ;;  %v1674_v56 = vpop.f32.mrb[33].mxu0  ;;  %v976_v57 = vpop.f32.mrb[33].mxu1 }
 0x13b   : > { %v1100_v42 = vadd.f32 %v2099_v62, %v1061_v51  ;;  %v1675_v59 = vadd.f32 %v1674_v56, %v1673_v52  ;;  %v1676_v60 = vpop.f32.mrb[34].mxu0  ;;  %v1780_v61 = vpop.f32.mrb[34].mxu1  ;;  %v1131_v4 = vmax.f32 %v1099_v50, 0.0 }
 0x13c   : > { %v1130_v1 = vmax.f32 %v1098_v54, 0.0  ;;  %v1677_v2 = vpop.f32.mrb[35].mxu0  ;;  %v979_v3 = vpop.f32.mrb[35].mxu1 }
 0x13d   : > { %v1132_v5 = vmax.f32 %v1100_v42, 0.0  ;;  %v977_v6 = vadd.f32 %v1675_v59, %v976_v57  ;;  %v1678_v7 = vadd.f32 %v1677_v2, %v1676_v60 }
 0x13e   : > { %v1547_v9 = vpack.c.bf16 %v1130_v1, %v1129_v0 }
 0x13f   : > { %v1552_v10 = vpack.c.bf16 %v1132_v5, %v1131_v4  ;;  %v1062_v11 = vmul.f32 %v2094_v58, %v977_v6  ;;  %v980_v14 = vadd.f32 %v1678_v7, %v979_v3 }
 0x140   : > { %1599 = vst [vmem:[%s2113_s29 + $0x30] sm:$0xff] %v1547_v9  }
 0x141   : > { %1600 = vst [vmem:[%s2113_s29 + $0x38] sm:$0xff] %v1552_v10   ;;  %v1101_v15 = vadd.f32 %v2099_v62, %v1062_v11  ;;  %v1063_v12 = vmul.f32 %v2094_v58, %v980_v14  ;;  %v1679_v16 = vpop.f32.mrb[36].mxu0  ;;  %v2150_v63 = vpop.f32.mrb[36].mxu1 }
 0x142   : > { %v1680_v17 = vpop.f32.mrb[37].mxu0  ;;  %v992_v20 = vpop.f32.mrb[37].mxu1 }
 0x143   : > { %v1102_v21 = vadd.f32 %v2099_v62, %v1063_v12  ;;  %v1681_v22 = vadd.f32 %v1680_v17, %v1679_v16  ;;  %v1682_v23 = vpop.f32.mrb[38].mxu0  ;;  %v2153_v24 = vpop.f32.mrb[38].mxu1  ;;  %v1133_v26 = vmax.f32 %v1101_v15, 0.0 }
 0x144   : > { %v1683_v18 = vpop.f32.mrb[39].mxu0  ;;  %v995_v8 = vpop.f32.mrb[39].mxu1 }
 0x145   : > { %v1134_v27 = vmax.f32 %v1102_v21, 0.0  ;;  %v985_v28 = vadd.f32 %v1779_v53, %v1681_v22  ;;  %v1684_v29 = vadd.f32 %v1683_v18, %v1682_v23 }
 0x147   : > { %v1557_v30 = vpack.c.bf16 %v1134_v27, %v1133_v26  ;;  %v1064_v32 = vmul.f32 %v2094_v58, %v985_v28  ;;  %v988_v33 = vadd.f32 %v1780_v61, %v1684_v29 }
 0x149   : > { %1601 = vst [vmem:[%s2113_s29 + $0x40] sm:$0xff] %v1557_v30   ;;  %v1103_v34 = vadd.f32 %v2099_v62, %v1064_v32  ;;  %v1065_v35 = vmul.f32 %v2094_v58, %v988_v33  ;;  %v1685_v38 = vpop.f32.mrb[40].mxu0  ;;  %v1787_v39 = vpop.f32.mrb[40].mxu1 }
 0x14a   : > { %v1017_v40 = vadd.f32 %v1787_v39, %v2079_v25  ;;  %v1686_v41 = vpop.f32.mrb[41].mxu0  ;;  %v1008_v44 = vpop.f32.mrb[41].mxu1 }
 0x14b   : > { %v1104_v45 = vadd.f32 %v2099_v62, %v1065_v35  ;;  %v1687_v46 = vadd.f32 %v1686_v41, %v1685_v38  ;;  %v1009_v47 = vadd.f32 %v2075_v13, %v1008_v44  ;;  %v1688_v36 = vpop.f32.mrb[42].mxu0  ;;  %v1788_v48 = vpop.f32.mrb[42].mxu1  ;;  %v1135_v50 = vmax.f32 %v1103_v34, 0.0 }
 0x14c   : > { %v1072_v51 = vmul.f32 %v2094_v58, %v1017_v40  ;;  %v1020_v52 = vadd.f32 %v1788_v48, %v2081_v31  ;;  %v1689_v53 = vpop.f32.mrb[43].mxu0  ;;  %v1011_v54 = vpop.f32.mrb[43].mxu1 }
 0x14d   : > { %v1136_v56 = vmax.f32 %v1104_v45, 0.0  ;;  %v993_v57 = vadd.f32 %v1687_v46, %v992_v20  ;;  %v1070_v25 = vmul.f32 %v2094_v58, %v1009_v47  ;;  %v1690_v42 = vadd.f32 %v1689_v53, %v1688_v36 }
 0x14e   : > { %v1111_v59 = vadd.f32 %v2099_v62, %v1072_v51  ;;  %v1073_v60 = vmul.f32 %v2094_v58, %v1020_v52  ;;  %v1012_v13 = vadd.f32 %v2077_v19, %v1011_v54 }
 0x14f   : > { %v1562_v61 = vpack.c.bf16 %v1136_v56, %v1135_v50  ;;  %v1066_v0 = vmul.f32 %v2094_v58, %v993_v57  ;;  %v1109_v1 = vadd.f32 %v2099_v62, %v1070_v25  ;;  %v996_v31 = vadd.f32 %v1690_v42, %v995_v8 }
 0x150   : > { %v1112_v2 = vadd.f32 %v2099_v62, %v1073_v60  ;;  %v1071_v3 = vmul.f32 %v2094_v58, %v1012_v13  ;;  %v1143_v4 = vmax.f32 %v1111_v59, 0.0 }
 0x151   : > { %1602 = vst [vmem:[%s2113_s29 + $0x48] sm:$0xff] %v1562_v61   ;;  %v1105_v5 = vadd.f32 %v2099_v62, %v1066_v0  ;;  %v1067_v6 = vmul.f32 %v2094_v58, %v996_v31  ;;  %v1691_v7 = vpop.f32.mrb[44].mxu0  ;;  %v1791_v9 = vpop.f32.mrb[44].mxu1  ;;  %v1141_v10 = vmax.f32 %v1109_v1, 0.0 }
 0x152   : > { %v1144_v19 = vmax.f32 %v1112_v2, 0.0  ;;  %v1110_v11 = vadd.f32 %v2099_v62, %v1071_v3  ;;  %v1033_v14 = vadd.f32 %v1791_v9, %v2087_v49  ;;  %v1692_v15 = vpop.f32.mrb[45].mxu0  ;;  %v1024_v12 = vpop.f32.mrb[45].mxu1 }
 0x153   : > { %v1137_v16 = vmax.f32 %v1105_v5, 0.0  ;;  %v1106_v17 = vadd.f32 %v2099_v62, %v1067_v6  ;;  %v1693_v20 = vadd.f32 %v1692_v15, %v1691_v7  ;;  %v1025_v21 = vadd.f32 %v2083_v37, %v1024_v12  ;;  %v1694_v22 = vpop.f32.mrb[46].mxu0  ;;  %v1792_v23 = vpop.f32.mrb[46].mxu1 }
 0x154   : > { %v1582_v18 = vpack.c.bf16 %v1144_v19, %v1143_v4  ;;  %v1142_v8 = vmax.f32 %v1110_v11, 0.0  ;;  %v1076_v26 = vmul.f32 %v2094_v58, %v1033_v14  ;;  %v1036_v27 = vadd.f32 %v1792_v23, %v2089_v55  ;;  %v1695_v28 = vpop.f32.mrb[47].mxu0  ;;  %v1027_v49 = vpop.f32.mrb[47].mxu1 }
 0x155   : > { %v1138_v29 = vmax.f32 %v1106_v17, 0.0  ;;  %v1001_v30 = vadd.f32 %v2150_v63, %v1693_v20  ;;  %v1074_v32 = vmul.f32 %v2094_v58, %v1025_v21  ;;  %v1696_v33 = vadd.f32 %v1695_v28, %v1694_v22 }
 0x156   : > { %1606 = vst [vmem:[%s2113_s29 + $0x68] sm:$0xff] %v1582_v18   ;;  %v1577_v37 = vpack.c.bf16 %v1142_v8, %v1141_v10  ;;  %v1115_v34 = vadd.f32 %v2099_v62, %v1076_v26  ;;  %v1077_v35 = vmul.f32 %v2094_v58, %v1036_v27  ;;  %v1028_v38 = vadd.f32 %v2085_v43, %v1027_v49 }
 0x157   : > { %v1567_v39 = vpack.c.bf16 %v1138_v29, %v1137_v16  ;;  %v1068_v55 = vmul.f32 %v2094_v58, %v1001_v30  ;;  %v1004_v40 = vadd.f32 %v2153_v24, %v1696_v33  ;;  %v1113_v63 = vadd.f32 %v2099_v62, %v1074_v32 }
 0x158   : > { %1605 = vst [vmem:[%s2113_s29 + $0x60] sm:$0xff] %v1577_v37   ;;  %v1116_v41 = vadd.f32 %v2099_v62, %v1077_v35  ;;  %v1075_v44 = vmul.f32 %v2094_v58, %v1028_v38  ;;  %v1147_v46 = vmax.f32 %v1115_v34, 0.0 }
 0x159   : > { %1603 = vst [vmem:[%s2113_s29 + $0x50] sm:$0xff] %v1567_v39   ;;  %v1107_v45 = vadd.f32 %v2099_v62, %v1068_v55  ;;  %v1069_v43 = vmul.f32 %v2094_v58, %v1004_v40  ;;  %v1145_v48 = vmax.f32 %v1113_v63, 0.0 }
 0x15a   : > { %v1148_v47 = vmax.f32 %v1116_v41, 0.0  ;;  %v1114_v36 = vadd.f32 %v2099_v62, %v1075_v44 }
 0x15b   : > { %v1108_v24 = vadd.f32 %v2099_v62, %v1069_v43  ;;  %v1139_v52 = vmax.f32 %v1107_v45, 0.0 }
 0x15c   : > { %v1592_v50 = vpack.c.bf16 %v1148_v47, %v1147_v46  ;;  %v1146_v51 = vmax.f32 %v1114_v36, 0.0 }
 0x15d   : > { %v1140_v53 = vmax.f32 %v1108_v24, 0.0 }
 0x15e   : > { %1608 = vst [vmem:[%s2113_s29 + $0x78] sm:$0xff] %v1592_v50   ;;  %v1587_v54 = vpack.c.bf16 %v1146_v51, %v1145_v48 }
 0x15f   : > { %v1572_v56 = vpack.c.bf16 %v1140_v53, %v1139_v52 }
 0x160   : > { %1607 = vst [vmem:[%s2113_s29 + $0x70] sm:$0xff] %v1587_v54  }
 0x161   : > { %1604 = vst [vmem:[%s2113_s29 + $0x58] sm:$0xff] %v1572_v56  }
 0x162 PF: > { %s14_s15 = sadd.s32 1, %s1912_s15  }
 0x163   : > { %p11_p4 = scmp.ge.s32.totalorder %s14_s15, 4  }
 0x165   :  { %13 = sbr.rel (!%p11_p4) target bundleno = 1 (0x1), region = 66 }

// kernel: forward.3
= control target key start
LH: loop header
LB: loop body
LE: loop exit
PB: predicated region body
PF: predicated region fallthrough
CT: control target
= control target key end

     0   :  { %s7900_s0 = inlined_call_operand.vmem [shape: bf16[2,64,128], index: 0, kind: input, shape index: {}]   ;;  %s7901_s1 = inlined_call_operand.vmem [shape: f32[2,12], index: 1, kind: input, shape index: {}]   ;;  %s7902_s2 = inlined_call_operand.vmem [shape: bf16[128,1024], index: 2, kind: input, shape index: {}]   ;;  %s7903_s3 = inlined_call_operand.vmem [shape: f32[1,1024], index: 3, kind: input, shape index: {}]   ;;  %s7904_s4 = inlined_call_operand.vmem [shape: f32[1,1024], index: 4, kind: input, shape index: {}]   ;;  %s7905_s5 = inlined_call_operand.vmem [shape: f32[1,12], index: 5, kind: input, shape index: {}]   ;;  %s7906_s6 = inlined_call_operand.vmem [shape: f32[1,12], index: 6, kind: input, shape index: {}]   ;;  %s7907_s7 = inlined_call_operand.vmem [shape: bf16[1024,512], index: 7, kind: input, shape index: {}]   ;;  %s7908_s8 = inlined_call_operand.vmem [shape: f32[12,512], index: 8, kind: input, shape index: {}]   ;;  %s7909_s9 = inlined_call_operand.vmem [shape: f32[1,512], index: 9, kind: input, shape index: {}]   ;;  %s7910_s10 = inlined_call_operand.vmem [shape: f32[1,512], index: 10, kind: input, shape index: {}]   ;;  %s7911_s11 = inlined_call_operand.vmem [shape: bf16[512,512], index: 11, kind: input, shape index: {}]   ;;  %s7912_s12 = inlined_call_operand.vmem [shape: f32[1,512], index: 12, kind: input, shape index: {}]   ;;  %s7913_s13 = inlined_call_operand.vmem [shape: f32[1,512], index: 13, kind: input, shape index: {}]   ;;  %s7914_s14 = inlined_call_operand.vmem [shape: f32[512,16], index: 14, kind: input, shape index: {}]   ;;  %s7915_s15 = inlined_call_operand.vmem [shape: f32[512,16], index: 15, kind: input, shape index: {}]   ;;  %s7916_s16 = inlined_call_operand.vmem [shape: f32[1,16], index: 16, kind: input, shape index: {}]   ;;  %s7917_s17 = inlined_call_operand.hbm [shape: f32[2,16], index: 17, kind: output, shape index: {0}]   ;;  %s7918_s18 = inlined_call_operand.hbm [shape: f32[2,16], index: 18, kind: output, shape index: {1}]  }
   0x1   :  { %7921 = sst [smem:[#allocation8_spill]] %s7900_s0 }
   0x2   :  { %7922 = sst [smem:[#allocation9_spill]] %s7901_s1 }
   0x3   :  { %7923 = sst [smem:[#allocation10_spill]] %s7902_s2 }
   0x4   :  { %24 = vsyncpa [#allocation3], 0  ;;  %s7924_s29 = sld [smem:[#allocation10_spill]]  ;;  %v5781_v8 = vmov 0   ;;  %s7925_s23 = sld [smem:[#allocation8_spill]]  ;;  %vm192_vm0 = vcmask 1041409  }
   0x5   :  { %548 = vmatprep.mubr.bf16.mxu0 %v5781_v8  ;;  %589 = vmatprep.mubr.bf16.mxu1 %v5781_v8  ;;  %vm1073_vm1 = vcmask 1043456   ;;  %vm5782_vm2 = vmmov 1   ;;  %s7928_s2 = sld [smem:[#allocation9_spill]]  ;;  %vm1069_vm4 = vcmask 97280  }
   0x6   :  { %vm6105_vm3 = vmpackc.low %vm1073_vm1, %vm5782_vm2 }
   0xa   :  { %v124_v0 = vld [vmem:[%s7924_s29] sm:$0xff]  ;;  %v125_v2 = vld [vmem:[%s7924_s29 + $0x8] sm:$0xff]  ;;  %v4836_v50 = vld [vmem:[%s7925_s23 + $0x10] sm:$0xff]  }
   0xb   :  { %v128_v1 = vld [vmem:[%s7924_s29 + $0x20] sm:$0xff]  ;;  %v129_v4 = vld [vmem:[%s7924_s29 + $0x28] sm:$0xff]  ;;  %v4840_v52 = vld [vmem:[%s7925_s23 + $0x30] sm:$0xff]  }
   0xc   :  { %v4347_v3 = vcombine.high %v124_v0, %v128_v1  ;;  %v4346_v5 = vcombine.low %v124_v0, %v128_v1  ;;  %v132_v6 = vld [vmem:[%s7924_s29 + $0x40] sm:$0xff]  ;;  %v4349_v9 = vcombine.high %v125_v2, %v129_v4  ;;  %v4348_v10 = vcombine.low %v125_v2, %v129_v4  ;;  %v133_v12 = vld [vmem:[%s7924_s29 + $0x48] sm:$0xff] }
   0xd   :  { %v136_v7 = vld [vmem:[%s7924_s29 + $0x60] sm:$0xff]  ;;  %v137_v13 = vld [vmem:[%s7924_s29 + $0x68] sm:$0xff]  ;;  %v4813_v0 = vunpack.c.l.bf16 %v4836_v50  ;;  %v4829_v1 = vunpack.c.l.bf16 %v4840_v52 }
   0xe   :  { %v4355_v11 = vcombine.high %v132_v6, %v136_v7  ;;  %v140_v14 = vld [vmem:[%s7924_s29 + $0x80] sm:$0xff]  ;;  %516 = vmatprep.subr.bf16.mxu0 %v4347_v3  ;;  %v4357_v15 = vcombine.high %v133_v12, %v137_v13  ;;  %v141_v17 = vld [vmem:[%s7924_s29 + $0x88] sm:$0xff]  ;;  %557 = vmatprep.subr.bf16.mxu1 %v4349_v9  ;;  %v4354_v19 = vcombine.low %v132_v6, %v136_v7  ;;  %v4841_v6 = vld [vmem:[%s7925_s23 + $0x38] sm:$0xff]  }
   0xf   :  { %v144_v16 = vld [vmem:[%s7924_s29 + $0xa0] sm:$0xff]  ;;  %v145_v18 = vld [vmem:[%s7924_s29 + $0xa8] sm:$0xff]  ;;  %517 = vmatpush1.bf16.msra.mxu0 %v4346_v5  ;;  %558 = vmatpush1.bf16.msra.mxu1 %v4348_v10  ;;  %v4356_v20 = vcombine.low %v133_v12, %v137_v13  ;;  %v4837_v5 = vld [vmem:[%s7925_s23 + $0x18] sm:$0xff]   ;;  %v4814_v10 = vunpack.c.h.bf16 %v4836_v50 }
  0x10   :  { %518 = vmatprep.subr.bf16.mxu0 %v4355_v11  ;;  %v4363_v21 = vcombine.high %v140_v14, %v144_v16  ;;  %559 = vmatprep.subr.bf16.mxu1 %v4357_v15  ;;  %v4365_v22 = vcombine.high %v141_v17, %v145_v18  ;;  %v148_v23 = vld [vmem:[%s7924_s29 + $0xc0] sm:$0xff]  ;;  %v149_v25 = vld [vmem:[%s7924_s29 + $0xc8] sm:$0xff]  ;;  %v4362_v27 = vcombine.low %v140_v14, %v144_v16  ;;  %v4830_v11 = vunpack.c.h.bf16 %v4840_v52 }
  0x11   :  { %v152_v24 = vld [vmem:[%s7924_s29 + $0xe0] sm:$0xff]  ;;  %v153_v26 = vld [vmem:[%s7924_s29 + $0xe8] sm:$0xff]  ;;  %v4364_v28 = vcombine.low %v141_v17, %v145_v18  ;;  %v4817_v17 = vunpack.c.l.bf16 %v4837_v5  ;;  %v4833_v18 = vunpack.c.l.bf16 %v4841_v6 }
  0x12   :  { %v4371_v29 = vcombine.high %v148_v23, %v152_v24  ;;  %v4373_v30 = vcombine.high %v149_v25, %v153_v26  ;;  %v156_v31 = vld [vmem:[%s7924_s29 + $0x100] sm:$0xff]  ;;  %v157_v34 = vld [vmem:[%s7924_s29 + $0x108] sm:$0xff]  ;;  %v4370_v39 = vcombine.low %v148_v23, %v152_v24  ;;  %v4372_v40 = vcombine.low %v149_v25, %v153_v26 }
  0x13   :  { %519 = vmatpush1.bf16.msra.mxu0 %v4354_v19  ;;  %560 = vmatpush1.bf16.msra.mxu1 %v4356_v20  ;;  %v160_v32 = vld [vmem:[%s7924_s29 + $0x120] sm:$0xff]  ;;  %v161_v35 = vld [vmem:[%s7924_s29 + $0x128] sm:$0xff]  ;;  %v4818_v26 = vunpack.c.h.bf16 %v4837_v5 }
  0x14   :  { %520 = vmatprep.subr.bf16.mxu0 %v4363_v21  ;;  %561 = vmatprep.subr.bf16.mxu1 %v4365_v22  ;;  %v4804_v33 = vld [vmem:[%s7925_s23] sm:$0xff]   ;;  %v4835_v38 = vld [vmem:[%s7925_s23 + $0x8] sm:$0xff]   ;;  %v4379_v43 = vcombine.high %v156_v31, %v160_v32  ;;  %v4381_v49 = vcombine.high %v157_v34, %v161_v35  ;;  %v4378_v59 = vcombine.low %v156_v31, %v160_v32 }
  0x15   :  { %v4805_v36 = vunpack.c.l.bf16 %v4804_v33  ;;  %v4806_v37 = vunpack.c.h.bf16 %v4804_v33  ;;  %v4838_v41 = vld [vmem:[%s7925_s23 + $0x20] sm:$0xff]   ;;  %v4839_v42 = vld [vmem:[%s7925_s23 + $0x28] sm:$0xff]   ;;  %v4809_v46 = vunpack.c.l.bf16 %v4835_v38  ;;  %v4810_v55 = vunpack.c.h.bf16 %v4835_v38 }
  0x16   :  { %v164_v44 = vld [vmem:[%s7924_s29 + $0x140] sm:$0xff]  ;;  %v4821_v47 = vunpack.c.l.bf16 %v4838_v41  ;;  %v4822_v48 = vunpack.c.h.bf16 %v4838_v41  ;;  %v4825_v51 = vunpack.c.l.bf16 %v4839_v42  ;;  %v165_v53 = vld [vmem:[%s7924_s29 + $0x148] sm:$0xff]  ;;  %v4826_v56 = vunpack.c.h.bf16 %v4839_v42  ;;  %v131_v41 = vld [vmem:[%s7924_s29 + $0x38] sm:$0xff] }
  0x17   :  { %521 = vmatpush1.bf16.msra.mxu0 %v4362_v27  ;;  %562 = vmatpush1.bf16.msra.mxu1 %v4364_v28  ;;  %v168_v45 = vld [vmem:[%s7924_s29 + $0x160] sm:$0xff]  ;;  %v169_v54 = vld [vmem:[%s7924_s29 + $0x168] sm:$0xff]  ;;  %v93_v57 = vadd.f32 %v4806_v37, %v4805_v36  ;;  %v4380_v60 = vcombine.low %v157_v34, %v161_v35  ;;  %v4834_v27 = vunpack.c.h.bf16 %v4841_v6  ;;  %v126_v36 = vld [vmem:[%s7924_s29 + $0x10] sm:$0xff] }
  0x18   :  { %522 = vmatprep.subr.bf16.mxu0 %v4371_v29  ;;  %563 = vmatprep.subr.bf16.mxu1 %v4373_v30  ;;  %v106_v58 = vadd.f32 %v4822_v48, %v4821_v47  ;;  %v4387_v61 = vcombine.high %v164_v44, %v168_v45  ;;  %v172_v62 = vld [vmem:[%s7924_s29 + $0x180] sm:$0xff]  ;;  %v4389_v4 = vcombine.high %v165_v53, %v169_v54  ;;  %v173_v7 = vld [vmem:[%s7924_s29 + $0x188] sm:$0xff]  ;;  %v130_v37 = vld [vmem:[%s7924_s29 + $0x30] sm:$0xff] }
  0x19   :  { %v176_v63 = vld [vmem:[%s7924_s29 + $0x1a0] sm:$0xff]  ;;  %v94_v2 = vadd.f32 %v4809_v46, %v93_v57  ;;  %v177_v9 = vld [vmem:[%s7924_s29 + $0x1a8] sm:$0xff]  ;;  %v4386_v14 = vcombine.low %v164_v44, %v168_v45  ;;  %v4388_v15 = vcombine.low %v165_v53, %v169_v54  ;;  %v4351_v46 = vcombine.high %v126_v36, %v130_v37 }
  0x1a   :  { %v107_v3 = vadd.f32 %v4825_v51, %v106_v58  ;;  %v4395_v16 = vcombine.high %v172_v62, %v176_v63  ;;  %v4397_v21 = vcombine.high %v173_v7, %v177_v9  ;;  %v180_v22 = vld [vmem:[%s7924_s29 + $0x1c0] sm:$0xff]  ;;  %v181_v24 = vld [vmem:[%s7924_s29 + $0x1c8] sm:$0xff]  ;;  %v4394_v30 = vcombine.low %v172_v62, %v176_v63  ;;  %v134_v62 = vld [vmem:[%s7924_s29 + $0x50] sm:$0xff] }
  0x1b   :  { %523 = vmatpush1.bf16.msra.mxu0 %v4370_v39  ;;  %564 = vmatpush1.bf16.msra.mxu1 %v4372_v40  ;;  %v95_v12 = vadd.f32 %v4810_v55, %v94_v2  ;;  %v184_v23 = vld [vmem:[%s7924_s29 + $0x1e0] sm:$0xff]  ;;  %v185_v25 = vld [vmem:[%s7924_s29 + $0x1e8] sm:$0xff]  ;;  %v4396_v31 = vcombine.low %v173_v7, %v177_v9  ;;  %v127_v40 = vld [vmem:[%s7924_s29 + $0x18] sm:$0xff]  ;;  %v4350_v5 = vcombine.low %v126_v36, %v130_v37 }
  0x1c   :  { %524 = vmatprep.subr.bf16.mxu0 %v4379_v43  ;;  %565 = vmatprep.subr.bf16.mxu1 %v4381_v49  ;;  %v108_v13 = vadd.f32 %v4826_v56, %v107_v3  ;;  %v4403_v32 = vcombine.high %v180_v22, %v184_v23  ;;  %v4405_v35 = vcombine.high %v181_v24, %v185_v25  ;;  %v135_v2 = vld [vmem:[%s7924_s29 + $0x58] sm:$0xff]  ;;  %v142_v9 = vld [vmem:[%s7924_s29 + $0x90] sm:$0xff] }
  0x1d   :  { %v96_v19 = vadd.f32 %v4813_v0, %v95_v12  ;;  %v4402_v42 = vcombine.low %v180_v22, %v184_v23  ;;  %v4404_v43 = vcombine.low %v181_v24, %v185_v25  ;;  %v4353_v47 = vcombine.high %v127_v40, %v131_v41  ;;  %v139_v3 = vld [vmem:[%s7924_s29 + $0x78] sm:$0xff]  ;;  %v158_v25 = vld [vmem:[%s7924_s29 + $0x110] sm:$0xff] }
  0x1e   :  { %v109_v20 = vadd.f32 %v4829_v1, %v108_v13  ;;  %v138_v1 = vld [vmem:[%s7924_s29 + $0x70] sm:$0xff]  ;;  %v4361_v12 = vcombine.high %v135_v2, %v139_v3  ;;  %v143_v13 = vld [vmem:[%s7924_s29 + $0x98] sm:$0xff] }
  0x1f   :  { %525 = vmatpush1.bf16.msra.mxu0 %v4378_v59  ;;  %566 = vmatpush1.bf16.msra.mxu1 %v4380_v60  ;;  %v97_v28 = vadd.f32 %v4814_v10, %v96_v19  ;;  %v4359_v7 = vcombine.high %v134_v62, %v138_v1  ;;  %v4352_v10 = vcombine.low %v127_v40, %v131_v41  ;;  %v154_v19 = vld [vmem:[%s7924_s29 + $0xf0] sm:$0xff]  ;;  %v155_v22 = vld [vmem:[%s7924_s29 + $0xf8] sm:$0xff] }
  0x20   :  { %526 = vmatprep.subr.bf16.mxu0 %v4387_v61  ;;  %567 = vmatprep.subr.bf16.mxu1 %v4389_v4  ;;  %v110_v29 = vadd.f32 %v4830_v11, %v109_v20  ;;  %v146_v11 = vld [vmem:[%s7924_s29 + $0xb0] sm:$0xff]  ;;  %v167_v36 = vld [vmem:[%s7924_s29 + $0x158] sm:$0xff] }
  0x21   :  { %v98_v33 = vadd.f32 %v4817_v17, %v97_v28  ;;  %v150_v17 = vld [vmem:[%s7924_s29 + $0xd0] sm:$0xff]  ;;  %v4366_v23 = vcombine.low %v142_v9, %v146_v11  ;;  %v159_v28 = vld [vmem:[%s7924_s29 + $0x118] sm:$0xff] }
  0x22   :  { %v111_v34 = vadd.f32 %v4833_v18, %v110_v29  ;;  %v4360_v18 = vcombine.low %v135_v2, %v139_v3  ;;  %v4375_v24 = vcombine.high %v150_v17, %v154_v19  ;;  %v163_v29 = vld [vmem:[%s7924_s29 + $0x138] sm:$0xff]  ;;  %v178_v40 = vld [vmem:[%s7924_s29 + $0x1b0] sm:$0xff] }
  0x23   :  { %527 = vmatpush1.bf16.msra.mxu0 %v4386_v14  ;;  %568 = vmatpush1.bf16.msra.mxu1 %v4388_v15  ;;  %v99_v38 = vadd.f32 %v4818_v26, %v98_v33  ;;  %v147_v14 = vld [vmem:[%s7924_s29 + $0xb8] sm:$0xff]  ;;  %v4358_v15 = vcombine.low %v134_v62, %v138_v1  ;;  %v1063_v2 = vld [vmem:[%s7908_s8 + $0x10] sm:$0xff] }
  0x24   :  { %528 = vmatprep.subr.bf16.mxu0 %v4395_v16  ;;  %569 = vmatprep.subr.bf16.mxu1 %v4397_v21  ;;  %v112_v39 = vadd.f32 %v4834_v27, %v111_v34  ;;  %v4367_v16 = vcombine.high %v142_v9, %v146_v11  ;;  %v4369_v20 = vcombine.high %v143_v13, %v147_v14  ;;  %v151_v21 = vld [vmem:[%s7924_s29 + $0xd8] sm:$0xff]  ;;  %v170_v34 = vld [vmem:[%s7924_s29 + $0x170] sm:$0xff]  ;;  %v780_v9 = vld [vmem:[%s7928_s2] sm:$0x3] }
  0x25   :  { %v100_v44 = vrot.slane %v99_v38, 4  ;;  %v4368_v26 = vcombine.low %v143_v13, %v147_v14  ;;  %v4377_v27 = vcombine.high %v151_v21, %v155_v22  ;;  %v4376_v33 = vcombine.low %v151_v21, %v155_v22  ;;  %v171_v37 = vld [vmem:[%s7924_s29 + $0x178] sm:$0xff]  ;;  %v1067_v3 = vld [vmem:[%s7908_s8 + $0x30] sm:$0xf]  ;;  %v5160_v14 = vld [vmem:[%s7907_s7 + $0x204] ss:$16 sps:$4 sm:$0xff]  }
  0x26   :  { %v113_v45 = vrot.slane %v112_v39, 4  ;;  %v4991_v13 = vpack.c.bf16 %v1067_v3, %v1063_v2  ;;  %v5166_v21 = vld [vmem:[%s7907_s7 + $0x224] ss:$16 sps:$4 sm:$0xff]   ;;  %v5161_v22 = vld [vmem:[%s7907_s7 + $0x20] ss:$16 sps:$4 sm:$0xff]  }
  0x27   :  { %529 = vmatpush1.bf16.msra.mxu0 %v4394_v30  ;;  %570 = vmatpush1.bf16.msra.mxu1 %v4396_v31  ;;  %v101_v48 = vadd.f32 %v100_v44, %v99_v38  ;;  %v4374_v30 = vcombine.low %v150_v17, %v154_v19  ;;  %v4393_v44 = vcombine.high %v167_v36, %v171_v37  ;;  %v5783_v17 = vmov 0.0   ;;  %v5230_v2 = vld [vmem:[%s7907_s7 + $0x380] ss:$16 sps:$4 sm:$0xff]   ;;  %v5235_v3 = vld [vmem:[%s7907_s7 + $0x1a4] ss:$16 sps:$4 sm:$0xff]  }
  0x28   :  { %530 = vmatprep.subr.bf16.mxu0 %v4403_v32  ;;  %571 = vmatprep.subr.bf16.mxu1 %v4405_v35  ;;  %v114_v49 = vadd.f32 %v113_v45, %v112_v39  ;;  %v166_v32 = vld [vmem:[%s7924_s29 + $0x150] sm:$0xff]  ;;  %v4385_v35 = vcombine.high %v159_v28, %v163_v29  ;;  %v179_v45 = vld [vmem:[%s7924_s29 + $0x1b8] sm:$0xff] }
  0x29   :  { %v102_v50 = vrot.slane %v101_v48, 2  ;;  %v174_v39 = vld [vmem:[%s7924_s29 + $0x190] sm:$0xff]  ;;  %v4391_v41 = vcombine.high %v166_v32, %v170_v34 }
  0x2a   :  { %v115_v51 = vrot.slane %v114_v49, 2 }
  0x2b   :  { %531 = vmatpush1.bf16.msra.mxu0 %v4402_v42  ;;  %572 = vmatpush1.bf16.msra.mxu1 %v4404_v43  ;;  %v103_v52 = vadd.f32 %v102_v50, %v101_v48  ;;  %v4384_v42 = vcombine.low %v159_v28, %v163_v29  ;;  %v175_v43 = vld [vmem:[%s7924_s29 + $0x198] sm:$0xff]  ;;  %v186_v48 = vld [vmem:[%s7924_s29 + $0x1f0] sm:$0xff]  ;;  %v4392_v50 = vcombine.low %v167_v36, %v171_v37 }
  0x2c   :  { %598 = vmatprep.subr.bf16.mxu0 %v4351_v46  ;;  %639 = vmatprep.subr.bf16.mxu1 %v4353_v47  ;;  %v116_v53 = vadd.f32 %v115_v51, %v114_v49  ;;  %v4390_v46 = vcombine.low %v166_v32, %v170_v34  ;;  %v182_v47 = vld [vmem:[%s7924_s29 + $0x1d0] sm:$0xff]  ;;  %v4399_v49 = vcombine.high %v174_v39, %v178_v40  ;;  %v183_v51 = vld [vmem:[%s7924_s29 + $0x1d8] sm:$0xff] }
  0x2d   :  { %v104_v54 = vrot.slane %v103_v52, 1  ;;  %v4406_v1 = vcombine.low %v182_v47, %v186_v48  ;;  %v5178_v28 = vld [vmem:[%s7907_s7 + $0x264] ss:$16 sps:$4 sm:$0xff]   ;;  %v5173_v29 = vld [vmem:[%s7907_s7 + $0x60] ss:$16 sps:$4 sm:$0xff]  }
  0x2e   :  { %v117_v55 = vrot.slane %v116_v53, 1  ;;  %v5184_v32 = vld [vmem:[%s7907_s7 + $0x284] ss:$16 sps:$4 sm:$0xff]   ;;  %v5182_v34 = vld [vmem:[%s7907_s7 + $0x280] ss:$16 sps:$4 sm:$0xff]  }
  0x2f   :  { %v105_v56 = vadd.f32 %v104_v54, %v103_v52  ;;  %v187_v52 = vld [vmem:[%s7924_s29 + $0x1f8] sm:$0xff]  ;;  %v5190_v36 = vld [vmem:[%s7907_s7 + $0x2a4] ss:$16 sps:$4 sm:$0xff]   ;;  %v5185_v37 = vld [vmem:[%s7907_s7 + $0xa0] ss:$16 sps:$4 sm:$0xff]  }
  0x30   :  { %v118_v57 = vadd.f32 %v117_v55, %v116_v53  ;;  %v4401_v53 = vcombine.high %v175_v43, %v179_v45  ;;  %v4398_v55 = vcombine.low %v174_v39, %v178_v40  ;;  %v4409_v62 = vcombine.high %v183_v51, %v187_v52  ;;  %v5193_v39 = vld [vmem:[%s7907_s7 + $0xc4] ss:$16 sps:$4 sm:$0xff]   ;;  %v5212_v54 = vld [vmem:[%s7907_s7 + $0x320] ss:$16 sps:$4 sm:$0xff]  }
  0x31   :  { %v120_v58 = vmul.f32 0.015625, %v105_v56  ;;  %v1062_v56 = vld [vmem:[%s7908_s8 + $0x8] sm:$0xff]  ;;  %v5196_v40 = vld [vmem:[%s7907_s7 + $0x2c4] ss:$16 sps:$4 sm:$0xff]  }
  0x32   :  { %v121_v59 = vmul.f32 0.015625, %v118_v57  ;;  %v1066_v57 = vld [vmem:[%s7908_s8 + $0x28] sm:$0xf] }
  0x33   :  { %v122_v60 = vpack.c.bf16 %v120_v58, %v120_v58  ;;  %v4407_v58 = vcombine.high %v182_v47, %v186_v48  ;;  %v5205_v47 = vld [vmem:[%s7907_s7 + $0x104] ss:$16 sps:$4 sm:$0xff]  }
  0x34   :  { %v123_v61 = vpack.c.bf16 %v121_v59, %v121_v59  ;;  %v4400_v59 = vcombine.low %v175_v43, %v179_v45  ;;  %v5199_v43 = vld [vmem:[%s7907_s7 + $0xe4] ss:$16 sps:$4 sm:$0xff]   ;;  %v5197_v45 = vld [vmem:[%s7907_s7 + $0xe0] ss:$16 sps:$4 sm:$0xff]  }
  0x35   :  { %v190_v63 = vunpack.c.l.b16 %v122_v60  ;;  %v1064_v60 = vld [vmem:[%s7908_s8 + $0x18] sm:$0xff]  ;;  %v5208_v48 = vld [vmem:[%s7907_s7 + $0x304] ss:$16 sps:$4 sm:$0xff]  }
  0x36   :  { %v191_v0 = vunpack.c.l.b16 %v123_v61  ;;  %v1068_v61 = vld [vmem:[%s7908_s8 + $0x38] sm:$0xf] }
  0x38   :  { %v193_v4 = vsel %vm192_vm0, %v191_v0, %v190_v63  ;;  %v1061_v63 = vld [vmem:[%s7908_s8] sm:$0xff] }
  0x39   :  { %v6027_v6 = vpack.c.b16 %v193_v4, %v193_v4  ;;  %v1065_v0 = vld [vmem:[%s7908_s8 + $0x20] sm:$0xf]  ;;  %v4408_v4 = vcombine.low %v183_v51, %v187_v52  ;;  %v5211_v51 = vld [vmem:[%s7907_s7 + $0x124] ss:$16 sps:$4 sm:$0xff]  }
  0x3a   :  { %v4985_v11 = vpack.c.bf16 %v1065_v0, %v1061_v63  ;;  %v5214_v52 = vld [vmem:[%s7907_s7 + $0x324] ss:$16 sps:$4 sm:$0xff]  }
  0x3b   :  { %549 = vmatmul.mubr.bf16.vlgmr.msra.gmra.mrb[0].mxu0 %v6027_v6  ;;  %590 = vmatmul.mubr.bf16.vlgmr.msra.gmra.mrb[0].mxu1 %v6027_v6  ;;  %v5229_v63 = vld [vmem:[%s7907_s7 + $0x184] ss:$16 sps:$4 sm:$0xff]  }
  0x3c   :  { %599 = vmatpush1.bf16.msra.mxu0 %v4350_v5  ;;  %630 = vmatprep.mubr.bf16.mxu0 %v5781_v8  ;;  %v4982_v5 = vpack.c.bf16 %v1066_v57, %v1062_v56  ;;  %v5220_v56 = vld [vmem:[%s7907_s7 + $0x344] ss:$16 sps:$4 sm:$0xff]   ;;  %v5215_v57 = vld [vmem:[%s7907_s7 + $0x140] ss:$16 sps:$4 sm:$0xff]  }
  0x3d   :  { %600 = vmatprep.subr.bf16.mxu0 %v4359_v7  ;;  %640 = vmatpush1.bf16.msra.mxu1 %v4352_v10  ;;  %v4988_v7 = vpack.c.bf16 %v1068_v61, %v1064_v60  ;;  %v4410_v10 = vld [vmem:[%s7905_s5] ss:$0 sm:$0xff]  ;;  %v5226_v60 = vld [vmem:[%s7907_s7 + $0x364] ss:$16 sps:$4 sm:$0xff]  }
  0x3e   :  { %641 = vmatprep.subr.bf16.mxu1 %v4361_v12  ;;  %671 = vmatprep.mubr.bf16.mxu1 %v5781_v8  ;;  %v162_v8 = vld [vmem:[%s7924_s29 + $0x130] sm:$0xff] }
  0x3f   :  { %v4383_v31 = vcombine.high %v158_v25, %v162_v8  ;;  %v4382_v38 = vcombine.low %v158_v25, %v162_v8  ;;  %v5157_v12 = vld [vmem:[%s7907_s7 + $0x4] ss:$16 sps:$4 sm:$0xff]   ;;  %v5170_v8 = vld [vmem:[%s7907_s7 + $0x240] ss:$16 sps:$4 sm:$0xff]  }
  0x40   :  { %601 = vmatpush1.bf16.msra.mxu0 %v4358_v15  ;;  %v4411_v15 = vld [vmem:[%s7906_s6] ss:$0 sm:$0xff]  ;;  %v5172_v25 = vld [vmem:[%s7907_s7 + $0x244] ss:$16 sps:$4 sm:$0xff]  }
  0x41   :  { %602 = vmatprep.subr.bf16.mxu0 %v4367_v16  ;;  %642 = vmatpush1.bf16.msra.mxu1 %v4360_v18  ;;  %v788_v16 = vmul.f32 %v4410_v10, %v780_v9  ;;  %v5155_v18 = vld [vmem:[%s7907_s7] ss:$16 sps:$4 sm:$0xff]   ;;  %v5232_v0 = vld [vmem:[%s7907_s7 + $0x384] ss:$16 sps:$4 sm:$0xff]  }
  0x42   :  { %643 = vmatprep.subr.bf16.mxu1 %v4369_v20  ;;  %v5158_v20 = vld [vmem:[%s7907_s7 + $0x200] ss:$16 sps:$4 sm:$0xff]   ;;  %v5241_v9 = vld [vmem:[%s7907_s7 + $0x1c4] ss:$16 sps:$4 sm:$0xff]  }
  0x43   :  { %v796_v19 = vadd.f32 %v4411_v15, %v788_v16  ;;  %v5221_v61 = vld [vmem:[%s7907_s7 + $0x160] ss:$16 sps:$4 sm:$0xff]   ;;  %v5244_v10 = vld [vmem:[%s7907_s7 + $0x3c4] ss:$16 sps:$4 sm:$0xff]  }
  0x44   :  { %603 = vmatpush1.bf16.msra.mxu0 %v4366_v23  ;;  %v5164_v23 = vld [vmem:[%s7907_s7 + $0x220] ss:$16 sps:$4 sm:$0xff]  }
  0x45   :  { %604 = vmatprep.subr.bf16.mxu0 %v4375_v24  ;;  %644 = vmatpush1.bf16.msra.mxu1 %v4368_v26  ;;  %v5169_v24 = vld [vmem:[%s7907_s7 + $0x44] ss:$16 sps:$4 sm:$0xff]   ;;  %v5167_v26 = vld [vmem:[%s7907_s7 + $0x40] ss:$16 sps:$4 sm:$0xff]  }
  0x46   :  { %645 = vmatprep.subr.bf16.mxu1 %v4377_v27  ;;  %v5175_v27 = vld [vmem:[%s7907_s7 + $0x64] ss:$16 sps:$4 sm:$0xff]   ;;  %v5245_v15 = vld [vmem:[%s7907_s7 + $0x1e0] ss:$16 sps:$4 sm:$0xff]  }
  0x47   :  { %v5248_v16 = vld [vmem:[%s7907_s7 + $0x3e0] ss:$16 sps:$4 sm:$0xff]  }
  0x48   :  { %605 = vmatpush1.bf16.msra.mxu0 %v4374_v30  ;;  %v5176_v30 = vld [vmem:[%s7907_s7 + $0x260] ss:$16 sps:$4 sm:$0xff]  }
  0x49   :  { %606 = vmatprep.subr.bf16.mxu0 %v4383_v31  ;;  %646 = vmatpush1.bf16.msra.mxu1 %v4376_v33  ;;  %v5181_v31 = vld [vmem:[%s7907_s7 + $0x84] ss:$16 sps:$4 sm:$0xff]   ;;  %v5179_v33 = vld [vmem:[%s7907_s7 + $0x80] ss:$16 sps:$4 sm:$0xff]  }
  0x4a   :  { %647 = vmatprep.subr.bf16.mxu1 %v4385_v35  ;;  %v5187_v35 = vld [vmem:[%s7907_s7 + $0xa4] ss:$16 sps:$4 sm:$0xff]  }
  0x4c   :  { %607 = vmatpush1.bf16.msra.mxu0 %v4382_v38  ;;  %v5188_v38 = vld [vmem:[%s7907_s7 + $0x2a0] ss:$16 sps:$4 sm:$0xff]  }
  0x4d   :  { %608 = vmatprep.subr.bf16.mxu0 %v4391_v41  ;;  %648 = vmatpush1.bf16.msra.mxu1 %v4384_v42  ;;  %v5191_v41 = vld [vmem:[%s7907_s7 + $0xc0] ss:$16 sps:$4 sm:$0xff]  }
  0x4e   :  { %649 = vmatprep.subr.bf16.mxu1 %v4393_v44  ;;  %v5194_v42 = vld [vmem:[%s7907_s7 + $0x2c0] ss:$16 sps:$4 sm:$0xff]   ;;  %v5202_v44 = vld [vmem:[%s7907_s7 + $0x2e4] ss:$16 sps:$4 sm:$0xff]  }
  0x50   :  { %609 = vmatpush1.bf16.msra.mxu0 %v4390_v46  ;;  %v5200_v46 = vld [vmem:[%s7907_s7 + $0x2e0] ss:$16 sps:$4 sm:$0xff]  }
  0x51   :  { %610 = vmatprep.subr.bf16.mxu0 %v4399_v49  ;;  %650 = vmatpush1.bf16.msra.mxu1 %v4392_v50  ;;  %v5203_v49 = vld [vmem:[%s7907_s7 + $0x100] ss:$16 sps:$4 sm:$0xff]  }
  0x52   :  { %651 = vmatprep.subr.bf16.mxu1 %v4401_v53  ;;  %v5206_v50 = vld [vmem:[%s7907_s7 + $0x300] ss:$16 sps:$4 sm:$0xff]  }
  0x53   :  { %v5209_v53 = vld [vmem:[%s7907_s7 + $0x120] ss:$16 sps:$4 sm:$0xff]  }
  0x54   :  { %611 = vmatpush1.bf16.msra.mxu0 %v4398_v55  ;;  %v5217_v55 = vld [vmem:[%s7907_s7 + $0x144] ss:$16 sps:$4 sm:$0xff]  }
  0x55   :  { %612 = vmatprep.subr.bf16.mxu0 %v4407_v58  ;;  %652 = vmatpush1.bf16.msra.mxu1 %v4400_v59  ;;  %v5218_v58 = vld [vmem:[%s7907_s7 + $0x340] ss:$16 sps:$4 sm:$0xff]   ;;  %v5223_v59 = vld [vmem:[%s7907_s7 + $0x164] ss:$16 sps:$4 sm:$0xff]  }
  0x56   :  { %653 = vmatprep.subr.bf16.mxu1 %v4409_v62  ;;  %v5224_v62 = vld [vmem:[%s7907_s7 + $0x360] ss:$16 sps:$4 sm:$0xff]  }
  0x58   :  { %613 = vmatpush1.bf16.msra.mxu0 %v4406_v1  ;;  %v5227_v1 = vld [vmem:[%s7907_s7 + $0x180] ss:$16 sps:$4 sm:$0xff]  }
  0x59   :  { %654 = vmatpush1.bf16.msra.mxu1 %v4408_v4  ;;  %4984 = vmatprep.subr.msk.bf16.mxu0 %vm6105_vm3, %v4982_v5  ;;  %v5238_v4 = vld [vmem:[%s7907_s7 + $0x3a4] ss:$16 sps:$4 sm:$0xff]   ;;  %v5233_v5 = vld [vmem:[%s7907_s7 + $0x1a0] ss:$16 sps:$4 sm:$0xff]  }
  0x5a   :  { %4990 = vmatprep.subr.msk.bf16.mxu1 %vm6105_vm3, %v4988_v7  ;;  %v5236_v7 = vld [vmem:[%s7907_s7 + $0x3a0] ss:$16 sps:$4 sm:$0xff]  }
  0x5b   :  { %631 = vmatmul.mubr.bf16.vlgmr.msra.gmra.mrb[4].mxu0 %v6027_v6 }
  0x5c   :  { %672 = vmatmul.mubr.bf16.vlgmr.msra.gmra.mrb[4].mxu1 %v6027_v6  ;;  %4987 = vmatpush1.bf16.msk.msra.mxu0 %vm6105_vm3, %v4985_v11  ;;  %v5163_v6 = vld [vmem:[%s7907_s7 + $0x24] ss:$16 sps:$4 sm:$0xff]   ;;  %v5239_v11 = vld [vmem:[%s7907_s7 + $0x1c0] ss:$16 sps:$4 sm:$0xff]  }
  0x5d   :  { %4993 = vmatpush1.bf16.msk.msra.mxu1 %vm6105_vm3, %v4991_v13  ;;  %1150 = vmatprep.mubr.f32.mxu0 %v5783_v17  ;;  %v5247_v13 = vld [vmem:[%s7907_s7 + $0x1e4] ss:$16 sps:$4 sm:$0xff]  }
  0x5e   :  { %1221 = vmatprep.mubr.f32.mxu1 %v5783_v17  ;;  %2508 = vmatprep.subr.bf16.mxu0 %v5157_v12  ;;  %v5242_v12 = vld [vmem:[%s7907_s7 + $0x3c0] ss:$16 sps:$4 sm:$0xff]   ;;  %v5253_v17 = vld [vmem:[%s7907_s7 + $0x404] ss:$16 sps:$4 sm:$0xff]  }
  0x5f   :  { %2549 = vmatprep.subr.bf16.mxu1 %v5160_v14  ;;  %v5250_v14 = vld [vmem:[%s7907_s7 + $0x3e4] ss:$16 sps:$4 sm:$0xff]  }
  0x63   :  { %4414 = vmatmul.mubr.msk.f32.vlgmr.msra.gmra.mrb[8].mxu0 %vm1069_vm4, %v796_v19 }
  0x64   :  { %4417 = vmatmul.mubr.msk.f32.vlgmr.msra.gmra.mrb[8].mxu1 %vm1069_vm4, %v796_v19  ;;  %2509 = vmatpush1.bf16.msra.mxu0 %v5155_v18  ;;  %v5256_v18 = vld [vmem:[%s7907_s7 + $0xc] ss:$16 sps:$4 sm:$0xff]  }
  0x65   :  { %2550 = vmatpush1.bf16.msra.mxu1 %v5158_v20  ;;  %2510 = vmatprep.subr.bf16.mxu0 %v5163_v6 }
  0x66   :  { %2551 = vmatprep.subr.bf16.mxu1 %v5166_v21 }
  0x68   :  { %2511 = vmatpush1.bf16.msra.mxu0 %v5161_v22 }
  0x69   :  { %2552 = vmatpush1.bf16.msra.mxu1 %v5164_v23  ;;  %2512 = vmatprep.subr.bf16.mxu0 %v5169_v24 }
  0x6a   :  { %2553 = vmatprep.subr.bf16.mxu1 %v5172_v25 }
  0x6c   :  { %2513 = vmatpush1.bf16.msra.mxu0 %v5167_v26 }
  0x6d   :  { %2554 = vmatpush1.bf16.msra.mxu1 %v5170_v8  ;;  %2514 = vmatprep.subr.bf16.mxu0 %v5175_v27 }
  0x6e   :  { %2555 = vmatprep.subr.bf16.mxu1 %v5178_v28 }
  0x70   :  { %2515 = vmatpush1.bf16.msra.mxu0 %v5173_v29 }
  0x71   :  { %2556 = vmatpush1.bf16.msra.mxu1 %v5176_v30  ;;  %2516 = vmatprep.subr.bf16.mxu0 %v5181_v31 }
  0x72   :  { %2557 = vmatprep.subr.bf16.mxu1 %v5184_v32 }
  0x74   :  { %2517 = vmatpush1.bf16.msra.mxu0 %v5179_v33 }
  0x75   :  { %2558 = vmatpush1.bf16.msra.mxu1 %v5182_v34  ;;  %2518 = vmatprep.subr.bf16.mxu0 %v5187_v35 }
  0x76   :  { %2559 = vmatprep.subr.bf16.mxu1 %v5190_v36 }
  0x78   :  { %2519 = vmatpush1.bf16.msra.mxu0 %v5185_v37 }
  0x79   :  { %2560 = vmatpush1.bf16.msra.mxu1 %v5188_v38  ;;  %2520 = vmatprep.subr.bf16.mxu0 %v5193_v39 }
  0x7a   :  { %2561 = vmatprep.subr.bf16.mxu1 %v5196_v40 }
  0x7c   :  { %2521 = vmatpush1.bf16.msra.mxu0 %v5191_v41 }
  0x7d   :  { %2562 = vmatpush1.bf16.msra.mxu1 %v5194_v42  ;;  %2522 = vmatprep.subr.bf16.mxu0 %v5199_v43 }
  0x7e   :  { %2563 = vmatprep.subr.bf16.mxu1 %v5202_v44 }
  0x80   :  { %2523 = vmatpush1.bf16.msra.mxu0 %v5197_v45 }
  0x81   :  { %2564 = vmatpush1.bf16.msra.mxu1 %v5200_v46  ;;  %2524 = vmatprep.subr.bf16.mxu0 %v5205_v47 }
  0x82   :  { %2565 = vmatprep.subr.bf16.mxu1 %v5208_v48 }
  0x84   :  { %2525 = vmatpush1.bf16.msra.mxu0 %v5203_v49 }
  0x85   :  { %2566 = vmatpush1.bf16.msra.mxu1 %v5206_v50  ;;  %2526 = vmatprep.subr.bf16.mxu0 %v5211_v51 }
  0x86   :  { %2567 = vmatprep.subr.bf16.mxu1 %v5214_v52 }
  0x88   :  { %2527 = vmatpush1.bf16.msra.mxu0 %v5209_v53 }
  0x89   :  { %2568 = vmatpush1.bf16.msra.mxu1 %v5212_v54  ;;  %2528 = vmatprep.subr.bf16.mxu0 %v5217_v55 }
  0x8a   :  { %2569 = vmatprep.subr.bf16.mxu1 %v5220_v56 }
  0x8c   :  { %2529 = vmatpush1.bf16.msra.mxu0 %v5215_v57 }
  0x8d   :  { %2570 = vmatpush1.bf16.msra.mxu1 %v5218_v58  ;;  %2530 = vmatprep.subr.bf16.mxu0 %v5223_v59 }
  0x8e   :  { %2571 = vmatprep.subr.bf16.mxu1 %v5226_v60 }
  0x90   :  { %2531 = vmatpush1.bf16.msra.mxu0 %v5221_v61 }
  0x91   :  { %2572 = vmatpush1.bf16.msra.mxu1 %v5224_v62  ;;  %2532 = vmatprep.subr.bf16.mxu0 %v5229_v63 }
  0x92   :  { %2573 = vmatprep.subr.bf16.mxu1 %v5232_v0 }
  0x94   :  { %2533 = vmatpush1.bf16.msra.mxu0 %v5227_v1 }
  0x95   :  { %2574 = vmatpush1.bf16.msra.mxu1 %v5230_v2  ;;  %2534 = vmatprep.subr.bf16.mxu0 %v5235_v3 }
  0x96   :  { %2575 = vmatprep.subr.bf16.mxu1 %v5238_v4 }
  0x98   :  { %2535 = vmatpush1.bf16.msra.mxu0 %v5233_v5 }
  0x99   :  { %2576 = vmatpush1.bf16.msra.mxu1 %v5236_v7  ;;  %2536 = vmatprep.subr.bf16.mxu0 %v5241_v9 }
  0x9a   :  { %2577 = vmatprep.subr.bf16.mxu1 %v5244_v10 }
  0x9c   :  { %2537 = vmatpush1.bf16.msra.mxu0 %v5239_v11 }
  0x9d   :  { %2578 = vmatpush1.bf16.msra.mxu1 %v5242_v12  ;;  %2538 = vmatprep.subr.bf16.mxu0 %v5247_v13 }
  0x9e   :  { %2579 = vmatprep.subr.bf16.mxu1 %v5250_v14 }
  0xa0   :  { %2539 = vmatpush1.bf16.msra.mxu0 %v5245_v15 }
  0xa1   :  { %2580 = vmatpush1.bf16.msra.mxu1 %v5248_v16  ;;  %2672 = vmatprep.subr.bf16.mxu0 %v5256_v18 }
  0xa2   :  { %2590 = vmatprep.subr.bf16.mxu1 %v5253_v17 }
  0xa3   :  { %25 = vsyncpa [#allocation5], 0  ;;  %v682_v19 = vlaneseq  ;;  %v6361_v22 = vld [vmem:[%s7903_s3] sm:$0xff]  ;;  %v5254_v53 = vld [vmem:[%s7907_s7 + $0x8] ss:$16 sps:$4 sm:$0xff]   ;;  %vm3884_vm5 = vcmask 1041408  }
  0xa4   :  { %v6372_v25 = vld [vmem:[%s7904_s4] sm:$0xff]  ;;  %v5262_v56 = vld [vmem:[%s7907_s7 + $0x2c] ss:$16 sps:$4 sm:$0xff]   ;;  %v5260_v58 = vld [vmem:[%s7907_s7 + $0x28] ss:$16 sps:$4 sm:$0xff]   ;;  %s5784_s6 = smov [#allocation2]  }
  0xa5   :  { %v6350_v20 = vshrl.u32 %v682_v19, 7  ;;  %v5251_v52 = vld [vmem:[%s7907_s7 + $0x400] ss:$16 sps:$4 sm:$0xff]   ;;  %v5259_v55 = vld [vmem:[%s7907_s7 + $0x424] ss:$16 sps:$4 sm:$0xff]   ;;  %s4324_s19 = sshll.u32 %s5784_s6, 4  ;;  %s4325_s19 = int_to_ptr.vmem [resolvable:$true] %s4324_s19 }
  0xa6   :  { %v5257_v57 = vld [vmem:[%s7907_s7 + $0x420] ss:$16 sps:$4 sm:$0xff]   ;;  %v5265_v59 = vld [vmem:[%s7907_s7 + $0x444] ss:$16 sps:$4 sm:$0xff]   ;;  %v5268_v60 = vld [vmem:[%s7907_s7 + $0x4c] ss:$16 sps:$4 sm:$0xff]   ;;  %p5738_p1 = scmp.lt.s32.totalorder %s4325_s19, %s4325_s19 }
  0xa7   :  { %v6353_v6 = vsub.s32 0, %v6350_v20  ;;  %v6356_v21 = vsub.s32 2, %v6350_v20  ;;  %v6364_v23 = vsub.s32 1, %v6350_v20  ;;  %v6367_v24 = vsub.s32 3, %v6350_v20  ;;  %v5263_v61 = vld [vmem:[%s7907_s7 + $0x440] ss:$16 sps:$4 sm:$0xff]  }
  0xa8   :  { %v5266_v62 = vld [vmem:[%s7907_s7 + $0x48] ss:$16 sps:$4 sm:$0xff]   ;;  %v5271_v63 = vld [vmem:[%s7907_s7 + $0x464] ss:$16 sps:$4 sm:$0xff]   ;;  %v5274_v0 = vld [vmem:[%s7907_s7 + $0x6c] ss:$16 sps:$4 sm:$0xff]  }
  0xa9   :  { %v685_v26 = vrot.slane %v6361_v22, %v6353_v6  ;;  %v693_v8 = vrot.slane %v6361_v22, %v6356_v21  ;;  %v689_v27 = vrot.slane %v6361_v22, %v6364_v23  ;;  %v697_v28 = vrot.slane %v6361_v22, %v6367_v24  ;;  %v5269_v1 = vld [vmem:[%s7907_s7 + $0x460] ss:$16 sps:$4 sm:$0xff]   ;;  %v5272_v2 = vld [vmem:[%s7907_s7 + $0x68] ss:$16 sps:$4 sm:$0xff]   ;;  %v5277_v3 = vld [vmem:[%s7907_s7 + $0x484] ss:$16 sps:$4 sm:$0xff]  }
  0xaa   :  { %v735_v29 = vrot.slane %v6372_v25, %v6353_v6  ;;  %v743_v30 = vrot.slane %v6372_v25, %v6356_v21  ;;  %v739_v33 = vrot.slane %v6372_v25, %v6364_v23  ;;  %v747_v34 = vrot.slane %v6372_v25, %v6367_v24  ;;  %v5280_v4 = vld [vmem:[%s7907_s7 + $0x8c] ss:$16 sps:$4 sm:$0xff]   ;;  %v5275_v5 = vld [vmem:[%s7907_s7 + $0x480] ss:$16 sps:$4 sm:$0xff]   ;;  %v5278_v7 = vld [vmem:[%s7907_s7 + $0x88] ss:$16 sps:$4 sm:$0xff]  }
  0xab   :  { %v5283_v9 = vld [vmem:[%s7907_s7 + $0x4a4] ss:$16 sps:$4 sm:$0xff]   ;;  %v5286_v10 = vld [vmem:[%s7907_s7 + $0xac] ss:$16 sps:$4 sm:$0xff]   ;;  %v5281_v11 = vld [vmem:[%s7907_s7 + $0x4a0] ss:$16 sps:$4 sm:$0xff]  }
  0xac   :  { %v5284_v12 = vld [vmem:[%s7907_s7 + $0xa8] ss:$16 sps:$4 sm:$0xff]   ;;  %v704_v13 = vsub.s32 5, %v6350_v20  ;;  %v5289_v14 = vld [vmem:[%s7907_s7 + $0x4c4] ss:$16 sps:$4 sm:$0xff]   ;;  %vm4104_vm6 = vcmask 123904  }
  0xad   :  { %v5292_v15 = vld [vmem:[%s7907_s7 + $0xcc] ss:$16 sps:$4 sm:$0xff]   ;;  %v5287_v16 = vld [vmem:[%s7907_s7 + $0x4c0] ss:$16 sps:$4 sm:$0xff]   ;;  %v5290_v17 = vld [vmem:[%s7907_s7 + $0xc8] ss:$16 sps:$4 sm:$0xff]  }
  0xae   :  { %v705_v18 = vrot.slane %v6361_v22, %v704_v13  ;;  %v5295_v19 = vld [vmem:[%s7907_s7 + $0x4e4] ss:$16 sps:$4 sm:$0xff]  }
 0x10e   :  { %v550_v31 = vpop.f32.mrb[0].mxu0  ;;  %v591_v32 = vpop.f32.mrb[0].mxu1 }
 0x10f   :  { %v722_v35 = vmul.f32 %v685_v26, %v550_v31  ;;  %v724_v36 = vmul.f32 %v693_v8, %v591_v32  ;;  %v552_v37 = vpop.f32.mrb[1].mxu0  ;;  %v593_v38 = vpop.f32.mrb[1].mxu1  ;;  %v5298_v26 = vld [vmem:[%s7907_s7 + $0xec] ss:$16 sps:$4 sm:$0xff]   ;;  %v5296_v31 = vld [vmem:[%s7907_s7 + $0xe8] ss:$16 sps:$4 sm:$0xff]  }
 0x110   :  { %v723_v39 = vmul.f32 %v689_v27, %v552_v37  ;;  %v725_v40 = vmul.f32 %v697_v28, %v593_v38  ;;  %v554_v41 = vpop.f32.mrb[2].mxu0  ;;  %v595_v42 = vpop.f32.mrb[2].mxu1  ;;  %v755_v27 = vrot.slane %v6372_v25, %v704_v13 }
 0x111   :  { %v772_v43 = vadd.f32 %v735_v29, %v722_v35  ;;  %v774_v44 = vadd.f32 %v743_v30, %v724_v36  ;;  %v555_v45 = vpop.f32.mrb[3].mxu0  ;;  %v596_v46 = vpop.f32.mrb[3].mxu1  ;;  %v5293_v30 = vld [vmem:[%s7907_s7 + $0x4e0] ss:$16 sps:$4 sm:$0xff]   ;;  %v5301_v35 = vld [vmem:[%s7907_s7 + $0x504] ss:$16 sps:$4 sm:$0xff]  }
 0x112   :  { %v773_v47 = vadd.f32 %v739_v33, %v723_v39  ;;  %v775_v48 = vadd.f32 %v747_v34, %v725_v40  ;;  %v5304_v36 = vld [vmem:[%s7907_s7 + $0x10c] ss:$16 sps:$4 sm:$0xff]   ;;  %v5299_v41 = vld [vmem:[%s7907_s7 + $0x500] ss:$16 sps:$4 sm:$0xff]   ;;  %v5302_v42 = vld [vmem:[%s7907_s7 + $0x108] ss:$16 sps:$4 sm:$0xff]  }
 0x113   :  { %v6390_v49 = vpack.c.bf16 %v774_v44, %v774_v44  ;;  %v6400_v54 = vpack.c.bf16 %v772_v43, %v772_v43  ;;  %v5307_v44 = vld [vmem:[%s7907_s7 + $0x524] ss:$16 sps:$4 sm:$0xff]   ;;  %v5310_v45 = vld [vmem:[%s7907_s7 + $0x12c] ss:$16 sps:$4 sm:$0xff]  }
 0x114   :  { %v798_v50 = vpack.c.bf16 %v773_v47, %v773_v47  ;;  %v6392_v51 = vpack.c.bf16 %v775_v48, %v775_v48  ;;  %v5305_v48 = vld [vmem:[%s7907_s7 + $0x520] ss:$16 sps:$4 sm:$0xff]  }
 0x116   :  { %2540 = vmatprep.mubr.bf16.mxu0 %v798_v50  ;;  %2581 = vmatprep.mubr.bf16.mxu1 %v6392_v51 }
 0x117   :  { %2541 = vmatmul.mubr.bf16.vlgmr.msra.gmra.mrb[12].mxu0 %v6400_v54  ;;  %2582 = vmatmul.mubr.bf16.vlgmr.msra.gmra.mrb[12].mxu1 %v6390_v49 }
 0x118   :  { %2591 = vmatpush1.bf16.msra.mxu1 %v5251_v52  ;;  %2673 = vmatpush1.bf16.msra.mxu0 %v5254_v53  ;;  %v5313_v52 = vld [vmem:[%s7907_s7 + $0x544] ss:$16 sps:$4 sm:$0xff]   ;;  %v5316_v53 = vld [vmem:[%s7907_s7 + $0x14c] ss:$16 sps:$4 sm:$0xff]  }
 0x119   :  { %2704 = vmatprep.mubr.bf16.mxu0 %v798_v50  ;;  %2592 = vmatprep.subr.bf16.mxu1 %v5259_v55  ;;  %v5308_v50 = vld [vmem:[%s7907_s7 + $0x128] ss:$16 sps:$4 sm:$0xff]   ;;  %v5311_v55 = vld [vmem:[%s7907_s7 + $0x540] ss:$16 sps:$4 sm:$0xff]  }
 0x11a   :  { %2674 = vmatprep.subr.bf16.mxu0 %v5262_v56  ;;  %v5314_v56 = vld [vmem:[%s7907_s7 + $0x148] ss:$16 sps:$4 sm:$0xff]  }
 0x11c   :  { %2593 = vmatpush1.bf16.msra.mxu1 %v5257_v57  ;;  %2675 = vmatpush1.bf16.msra.mxu0 %v5260_v58  ;;  %v5319_v57 = vld [vmem:[%s7907_s7 + $0x564] ss:$16 sps:$4 sm:$0xff]   ;;  %v5322_v58 = vld [vmem:[%s7907_s7 + $0x16c] ss:$16 sps:$4 sm:$0xff]  }
 0x11d   :  { %2594 = vmatprep.subr.bf16.mxu1 %v5265_v59  ;;  %2676 = vmatprep.subr.bf16.mxu0 %v5268_v60  ;;  %v5317_v59 = vld [vmem:[%s7907_s7 + $0x560] ss:$16 sps:$4 sm:$0xff]   ;;  %v5320_v60 = vld [vmem:[%s7907_s7 + $0x168] ss:$16 sps:$4 sm:$0xff]  }
 0x120   :  { %2595 = vmatpush1.bf16.msra.mxu1 %v5263_v61  ;;  %2677 = vmatpush1.bf16.msra.mxu0 %v5266_v62  ;;  %v5325_v61 = vld [vmem:[%s7907_s7 + $0x584] ss:$16 sps:$4 sm:$0xff]   ;;  %v5328_v62 = vld [vmem:[%s7907_s7 + $0x18c] ss:$16 sps:$4 sm:$0xff]  }
 0x121   :  { %2596 = vmatprep.subr.bf16.mxu1 %v5271_v63  ;;  %2678 = vmatprep.subr.bf16.mxu0 %v5274_v0  ;;  %v700_v63 = vsub.s32 4, %v6350_v20  ;;  %v5323_v0 = vld [vmem:[%s7907_s7 + $0x580] ss:$16 sps:$4 sm:$0xff]  }
 0x124   :  { %2597 = vmatpush1.bf16.msra.mxu1 %v5269_v1  ;;  %2679 = vmatpush1.bf16.msra.mxu0 %v5272_v2  ;;  %v5326_v1 = vld [vmem:[%s7907_s7 + $0x188] ss:$16 sps:$4 sm:$0xff]   ;;  %v5331_v2 = vld [vmem:[%s7907_s7 + $0x5a4] ss:$16 sps:$4 sm:$0xff]  }
 0x125   :  { %2598 = vmatprep.subr.bf16.mxu1 %v5277_v3  ;;  %2680 = vmatprep.subr.bf16.mxu0 %v5280_v4  ;;  %v5334_v3 = vld [vmem:[%s7907_s7 + $0x1ac] ss:$16 sps:$4 sm:$0xff]   ;;  %v712_v4 = vsub.s32 7, %v6350_v20 }
 0x128   :  { %2599 = vmatpush1.bf16.msra.mxu1 %v5275_v5  ;;  %2681 = vmatpush1.bf16.msra.mxu0 %v5278_v7  ;;  %v701_v5 = vrot.slane %v6361_v22, %v700_v63  ;;  %v5329_v7 = vld [vmem:[%s7907_s7 + $0x5a0] ss:$16 sps:$4 sm:$0xff]  }
 0x129   :  { %2600 = vmatprep.subr.bf16.mxu1 %v5283_v9  ;;  %2682 = vmatprep.subr.bf16.mxu0 %v5286_v10  ;;  %v5332_v9 = vld [vmem:[%s7907_s7 + $0x1a8] ss:$16 sps:$4 sm:$0xff]   ;;  %v5337_v10 = vld [vmem:[%s7907_s7 + $0x5c4] ss:$16 sps:$4 sm:$0xff]  }
 0x12c   :  { %2601 = vmatpush1.bf16.msra.mxu1 %v5281_v11  ;;  %2683 = vmatpush1.bf16.msra.mxu0 %v5284_v12  ;;  %v5340_v11 = vld [vmem:[%s7907_s7 + $0x1cc] ss:$16 sps:$4 sm:$0xff]   ;;  %v713_v12 = vrot.slane %v6361_v22, %v712_v4 }
 0x12d   :  { %2602 = vmatprep.subr.bf16.mxu1 %v5289_v14  ;;  %2684 = vmatprep.subr.bf16.mxu0 %v5292_v15  ;;  %v751_v14 = vrot.slane %v6372_v25, %v700_v63  ;;  %v5335_v15 = vld [vmem:[%s7907_s7 + $0x5c0] ss:$16 sps:$4 sm:$0xff]   ;;  %v5388_v63 = vld [vmem:[%s7907_s7 + $0x2cc] ss:$16 sps:$4 sm:$0xff]  }
 0x12e   :  { %v6485_v8 = vpop.f32.mrb[4].mxu0 }
 0x12f   :  { %v634_v28 = vpop.f32.mrb[5].mxu0  ;;  %v6488_v29 = vpop.f32.mrb[4].mxu1  ;;  %v726_v13 = vmul.f32 %v701_v5, %v6485_v8  ;;  %v5389_v5 = vld [vmem:[%s7907_s7 + $0x6e0] ss:$16 sps:$4 sm:$0xff]  }
 0x130   :  { %2603 = vmatpush1.bf16.msra.mxu1 %v5287_v16  ;;  %2685 = vmatpush1.bf16.msra.mxu0 %v5290_v17  ;;  %v727_v32 = vmul.f32 %v705_v18, %v634_v28  ;;  %v636_v33 = vpop.f32.mrb[6].mxu0  ;;  %v6496_v34 = vpop.f32.mrb[5].mxu1  ;;  %v5338_v16 = vld [vmem:[%s7907_s7 + $0x1c8] ss:$16 sps:$4 sm:$0xff]   ;;  %v5343_v17 = vld [vmem:[%s7907_s7 + $0x5e4] ss:$16 sps:$4 sm:$0xff]  }
 0x131   :  { %2604 = vmatprep.subr.bf16.mxu1 %v5295_v19  ;;  %2686 = vmatprep.subr.bf16.mxu0 %v5298_v26  ;;  %v637_v37 = vpop.f32.mrb[7].mxu0  ;;  %v677_v38 = vpop.f32.mrb[6].mxu1  ;;  %v5346_v18 = vld [vmem:[%s7907_s7 + $0x1ec] ss:$16 sps:$4 sm:$0xff]   ;;  %v729_v19 = vmul.f32 %v713_v12, %v6496_v34  ;;  %v763_v26 = vrot.slane %v6372_v25, %v712_v4  ;;  %v776_v8 = vadd.f32 %v751_v14, %v726_v13  ;;  %v5344_v28 = vld [vmem:[%s7907_s7 + $0x1e8] ss:$16 sps:$4 sm:$0xff]  }
 0x132   :  { %v777_v39 = vadd.f32 %v755_v27, %v727_v32  ;;  %v678_v40 = vpop.f32.mrb[7].mxu1  ;;  %v5341_v27 = vld [vmem:[%s7907_s7 + $0x5e0] ss:$16 sps:$4 sm:$0xff]   ;;  %v5358_v37 = vld [vmem:[%s7907_s7 + $0x22c] ss:$16 sps:$4 sm:$0xff]  }
 0x133   :  { %v779_v32 = vadd.f32 %v763_v26, %v729_v19  ;;  %v6615_v33 = vpack.c.bf16 %v776_v8, %v776_v8  ;;  %v5347_v34 = vld [vmem:[%s7907_s7 + $0x600] ss:$16 sps:$4 sm:$0xff]   ;;  %v5356_v40 = vld [vmem:[%s7907_s7 + $0x228] ss:$16 sps:$4 sm:$0xff]   ;;  %v5394_v4 = vld [vmem:[%s7907_s7 + $0x2ec] ss:$16 sps:$4 sm:$0xff]  }
 0x134   :  { %2605 = vmatpush1.bf16.msra.mxu1 %v5293_v30  ;;  %2687 = vmatpush1.bf16.msra.mxu0 %v5296_v31  ;;  %v6510_v43 = vpack.c.bf16 %v777_v39, %v777_v39  ;;  %v5349_v30 = vld [vmem:[%s7907_s7 + $0x604] ss:$16 sps:$4 sm:$0xff]   ;;  %v5352_v31 = vld [vmem:[%s7907_s7 + $0x20c] ss:$16 sps:$4 sm:$0xff]   ;;  %v5353_v39 = vld [vmem:[%s7907_s7 + $0x620] ss:$16 sps:$4 sm:$0xff]  }
 0x135   :  { %2606 = vmatprep.subr.bf16.mxu1 %v5301_v35  ;;  %2688 = vmatprep.subr.bf16.mxu0 %v5304_v36  ;;  %v5350_v35 = vld [vmem:[%s7907_s7 + $0x208] ss:$16 sps:$4 sm:$0xff]   ;;  %v5355_v36 = vld [vmem:[%s7907_s7 + $0x624] ss:$16 sps:$4 sm:$0xff]   ;;  %v6629_v38 = vpack.c.bf16 %v779_v32, %v779_v32  ;;  %v5406_v14 = vld [vmem:[%s7907_s7 + $0x32c] ss:$16 sps:$4 sm:$0xff]  }
 0x136   :  { %2622 = vmatprep.mubr.bf16.mxu1 %v6510_v43  ;;  %v6519_v46 = vpop.f32.mrb[8].mxu0  ;;  %v5398_v12 = vld [vmem:[%s7907_s7 + $0x308] ss:$16 sps:$4 sm:$0xff]   ;;  %v5403_v13 = vld [vmem:[%s7907_s7 + $0x724] ss:$16 sps:$4 sm:$0xff]  }
 0x137   :  { %v6521_v47 = vpop.f32.mrb[9].mxu0  ;;  %v5407_v19 = vld [vmem:[%s7907_s7 + $0x740] ss:$16 sps:$4 sm:$0xff]   ;;  %v5410_v26 = vld [vmem:[%s7907_s7 + $0x348] ss:$16 sps:$4 sm:$0xff]  }
 0x138   :  { %2607 = vmatpush1.bf16.msra.mxu1 %v5299_v41  ;;  %2689 = vmatpush1.bf16.msra.mxu0 %v5302_v42  ;;  %v5361_v41 = vld [vmem:[%s7907_s7 + $0x644] ss:$16 sps:$4 sm:$0xff]   ;;  %v5359_v42 = vld [vmem:[%s7907_s7 + $0x640] ss:$16 sps:$4 sm:$0xff]   ;;  %v5424_v32 = vld [vmem:[%s7907_s7 + $0x38c] ss:$16 sps:$4 sm:$0xff]  }
 0x139   :  { %2608 = vmatprep.subr.bf16.mxu1 %v5307_v44  ;;  %2690 = vmatprep.subr.bf16.mxu0 %v5310_v45  ;;  %v5367_v44 = vld [vmem:[%s7907_s7 + $0x664] ss:$16 sps:$4 sm:$0xff]   ;;  %v5370_v45 = vld [vmem:[%s7907_s7 + $0x26c] ss:$16 sps:$4 sm:$0xff]  }
 0x13a   :  { %v5415_v8 = vld [vmem:[%s7907_s7 + $0x764] ss:$16 sps:$4 sm:$0xff]  }
 0x13c   :  { %2609 = vmatpush1.bf16.msra.mxu1 %v5305_v48  ;;  %2691 = vmatpush1.bf16.msra.mxu0 %v5308_v50  ;;  %v5365_v48 = vld [vmem:[%s7907_s7 + $0x660] ss:$16 sps:$4 sm:$0xff]   ;;  %v5368_v50 = vld [vmem:[%s7907_s7 + $0x268] ss:$16 sps:$4 sm:$0xff]  }
 0x13d   :  { %2610 = vmatprep.subr.bf16.mxu1 %v5313_v52  ;;  %2692 = vmatprep.subr.bf16.mxu0 %v5316_v53  ;;  %v5373_v52 = vld [vmem:[%s7907_s7 + $0x684] ss:$16 sps:$4 sm:$0xff]   ;;  %v5376_v53 = vld [vmem:[%s7907_s7 + $0x28c] ss:$16 sps:$4 sm:$0xff]  }
 0x140   :  { %2611 = vmatpush1.bf16.msra.mxu1 %v5311_v55  ;;  %2693 = vmatpush1.bf16.msra.mxu0 %v5314_v56  ;;  %v5371_v55 = vld [vmem:[%s7907_s7 + $0x680] ss:$16 sps:$4 sm:$0xff]   ;;  %v5374_v56 = vld [vmem:[%s7907_s7 + $0x288] ss:$16 sps:$4 sm:$0xff]  }
 0x141   :  { %2612 = vmatprep.subr.bf16.mxu1 %v5319_v57  ;;  %2694 = vmatprep.subr.bf16.mxu0 %v5322_v58  ;;  %v5379_v57 = vld [vmem:[%s7907_s7 + $0x6a4] ss:$16 sps:$4 sm:$0xff]   ;;  %v5382_v58 = vld [vmem:[%s7907_s7 + $0x2ac] ss:$16 sps:$4 sm:$0xff]  }
 0x144   :  { %2613 = vmatpush1.bf16.msra.mxu1 %v5317_v59  ;;  %2695 = vmatpush1.bf16.msra.mxu0 %v5320_v60  ;;  %v5377_v59 = vld [vmem:[%s7907_s7 + $0x6a0] ss:$16 sps:$4 sm:$0xff]   ;;  %v5380_v60 = vld [vmem:[%s7907_s7 + $0x2a8] ss:$16 sps:$4 sm:$0xff]  }
 0x145   :  { %2614 = vmatprep.subr.bf16.mxu1 %v5325_v61  ;;  %2696 = vmatprep.subr.bf16.mxu0 %v5328_v62  ;;  %v6689_v61 = vpop.f32.mrb[8].mxu1  ;;  %v5385_v62 = vld [vmem:[%s7907_s7 + $0x6c4] ss:$16 sps:$4 sm:$0xff]  }
 0x148   :  { %2615 = vmatpush1.bf16.msra.mxu1 %v5323_v0  ;;  %2697 = vmatpush1.bf16.msra.mxu0 %v5326_v1  ;;  %v6697_v0 = vpop.f32.mrb[9].mxu1  ;;  %v5383_v1 = vld [vmem:[%s7907_s7 + $0x6c0] ss:$16 sps:$4 sm:$0xff]  }
 0x149   :  { %2616 = vmatprep.subr.bf16.mxu1 %v5331_v2  ;;  %2698 = vmatprep.subr.bf16.mxu0 %v5334_v3  ;;  %v5386_v2 = vld [vmem:[%s7907_s7 + $0x2c8] ss:$16 sps:$4 sm:$0xff]   ;;  %v5391_v3 = vld [vmem:[%s7907_s7 + $0x6e4] ss:$16 sps:$4 sm:$0xff]  }
 0x14c   :  { %2617 = vmatpush1.bf16.msra.mxu1 %v5329_v7  ;;  %2699 = vmatpush1.bf16.msra.mxu0 %v5332_v9  ;;  %v5392_v7 = vld [vmem:[%s7907_s7 + $0x2e8] ss:$16 sps:$4 sm:$0xff]   ;;  %v5397_v9 = vld [vmem:[%s7907_s7 + $0x704] ss:$16 sps:$4 sm:$0xff]  }
 0x14d   :  { %2618 = vmatprep.subr.bf16.mxu1 %v5337_v10  ;;  %2700 = vmatprep.subr.bf16.mxu0 %v5340_v11  ;;  %v5400_v10 = vld [vmem:[%s7907_s7 + $0x30c] ss:$16 sps:$4 sm:$0xff]   ;;  %v5395_v11 = vld [vmem:[%s7907_s7 + $0x700] ss:$16 sps:$4 sm:$0xff]  }
 0x150   :  { %2619 = vmatpush1.bf16.msra.mxu1 %v5335_v15  ;;  %2701 = vmatpush1.bf16.msra.mxu0 %v5338_v16  ;;  %v5401_v15 = vld [vmem:[%s7907_s7 + $0x720] ss:$16 sps:$4 sm:$0xff]   ;;  %v5404_v16 = vld [vmem:[%s7907_s7 + $0x328] ss:$16 sps:$4 sm:$0xff]  }
 0x151   :  { %2620 = vmatprep.subr.bf16.mxu1 %v5343_v17  ;;  %2702 = vmatprep.subr.bf16.mxu0 %v5346_v18  ;;  %v5409_v17 = vld [vmem:[%s7907_s7 + $0x744] ss:$16 sps:$4 sm:$0xff]   ;;  %v5412_v18 = vld [vmem:[%s7907_s7 + $0x34c] ss:$16 sps:$4 sm:$0xff]  }
 0x154   :  { %2621 = vmatpush1.bf16.msra.mxu1 %v5341_v27  ;;  %2703 = vmatpush1.bf16.msra.mxu0 %v5344_v28  ;;  %v5418_v27 = vld [vmem:[%s7907_s7 + $0x36c] ss:$16 sps:$4 sm:$0xff]   ;;  %v5413_v28 = vld [vmem:[%s7907_s7 + $0x760] ss:$16 sps:$4 sm:$0xff]  }
 0x155   :  { %2631 = vmatprep.subr.bf16.mxu1 %v5349_v30  ;;  %2713 = vmatprep.subr.bf16.mxu0 %v5352_v31  ;;  %v5416_v30 = vld [vmem:[%s7907_s7 + $0x368] ss:$16 sps:$4 sm:$0xff]   ;;  %v5421_v31 = vld [vmem:[%s7907_s7 + $0x784] ss:$16 sps:$4 sm:$0xff]  }
 0x157   :  { %2705 = vmatmul.mubr.bf16.vlgmr.msra.gmra.mrb[16].mxu0 %v6400_v54  ;;  %2623 = vmatmul.mubr.bf16.vlgmr.msra.gmra.mrb[12].mxu1 %v6615_v33  ;;  %v5364_v54 = vld [vmem:[%s7907_s7 + $0x24c] ss:$16 sps:$4 sm:$0xff]  }
 0x158   :  { %2632 = vmatpush1.bf16.msra.mxu1 %v5347_v34  ;;  %2714 = vmatpush1.bf16.msra.mxu0 %v5350_v35  ;;  %v708_v34 = vsub.s32 6, %v6350_v20  ;;  %v5419_v35 = vld [vmem:[%s7907_s7 + $0x780] ss:$16 sps:$4 sm:$0xff]   ;;  %v5430_v20 = vld [vmem:[%s7907_s7 + $0x3ac] ss:$16 sps:$4 sm:$0xff]  }
 0x159   :  { %2745 = vmatprep.mubr.bf16.mxu0 %v6392_v51  ;;  %2633 = vmatprep.subr.bf16.mxu1 %v5355_v36  ;;  %v5362_v51 = vld [vmem:[%s7907_s7 + $0x248] ss:$16 sps:$4 sm:$0xff]  }
 0x15a   :  { %2715 = vmatprep.subr.bf16.mxu0 %v5358_v37  ;;  %2663 = vmatprep.mubr.bf16.mxu1 %v6629_v38  ;;  %v5422_v36 = vld [vmem:[%s7907_s7 + $0x388] ss:$16 sps:$4 sm:$0xff]   ;;  %v5427_v37 = vld [vmem:[%s7907_s7 + $0x7a4] ss:$16 sps:$4 sm:$0xff]  }
 0x15c   :  { %2634 = vmatpush1.bf16.msra.mxu1 %v5353_v39  ;;  %2716 = vmatpush1.bf16.msra.mxu0 %v5356_v40  ;;  %v709_v39 = vrot.slane %v6361_v22, %v708_v34  ;;  %v5425_v40 = vld [vmem:[%s7907_s7 + $0x7a0] ss:$16 sps:$4 sm:$0xff]   ;;  %v5436_v22 = vld [vmem:[%s7907_s7 + $0x3cc] ss:$16 sps:$4 sm:$0xff]  }
 0x15d   :  { %2635 = vmatprep.subr.bf16.mxu1 %v5361_v41  ;;  %2717 = vmatprep.subr.bf16.mxu0 %v5364_v54  ;;  %v5428_v41 = vld [vmem:[%s7907_s7 + $0x3a8] ss:$16 sps:$4 sm:$0xff]   ;;  %v5433_v54 = vld [vmem:[%s7907_s7 + $0x7c4] ss:$16 sps:$4 sm:$0xff]  }
 0x160   :  { %2636 = vmatpush1.bf16.msra.mxu1 %v5359_v42  ;;  %2718 = vmatpush1.bf16.msra.mxu0 %v5362_v51  ;;  %v728_v42 = vmul.f32 %v709_v39, %v6488_v29  ;;  %v759_v51 = vrot.slane %v6372_v25, %v708_v34  ;;  %v5442_v25 = vld [vmem:[%s7907_s7 + $0x3ec] ss:$16 sps:$4 sm:$0xff]   ;;  %v5476_v34 = vld [vmem:[%s7907_s7 + $0x568] ss:$16 sps:$4 sm:$0xff]   ;;  %v5575_v39 = vld [vmem:[%s7911_s11 + $0xc0] ss:$16 sps:$4 sm:$0xff]  }
 0x161   :  { %2637 = vmatprep.subr.bf16.mxu1 %v5367_v44  ;;  %2719 = vmatprep.subr.bf16.mxu0 %v5370_v45  ;;  %v5431_v44 = vld [vmem:[%s7907_s7 + $0x7c0] ss:$16 sps:$4 sm:$0xff]   ;;  %v5434_v45 = vld [vmem:[%s7907_s7 + $0x3c8] ss:$16 sps:$4 sm:$0xff]  }
 0x162   :  { %v778_v29 = vadd.f32 %v759_v51, %v728_v42  ;;  %v5487_v42 = vld [vmem:[%s7907_s7 + $0x5cc] ss:$16 sps:$4 sm:$0xff]   ;;  %v5589_v51 = vld [vmem:[%s7911_s11 + $0x104] ss:$16 sps:$4 sm:$0xff]  }
 0x164   :  { %2638 = vmatpush1.bf16.msra.mxu1 %v5365_v48  ;;  %2720 = vmatpush1.bf16.msra.mxu0 %v5368_v50  ;;  %v5439_v48 = vld [vmem:[%s7907_s7 + $0x7e4] ss:$16 sps:$4 sm:$0xff]   ;;  %v5437_v50 = vld [vmem:[%s7907_s7 + $0x7e0] ss:$16 sps:$4 sm:$0xff]  }
 0x165   :  { %2639 = vmatprep.subr.bf16.mxu1 %v5373_v52  ;;  %2721 = vmatprep.subr.bf16.mxu0 %v5376_v53  ;;  %v5440_v52 = vld [vmem:[%s7907_s7 + $0x3e8] ss:$16 sps:$4 sm:$0xff]   ;;  %v5445_v53 = vld [vmem:[%s7907_s7 + $0x40c] ss:$16 sps:$4 sm:$0xff]  }
 0x168   :  { %2640 = vmatpush1.bf16.msra.mxu1 %v5371_v55  ;;  %2722 = vmatpush1.bf16.msra.mxu0 %v5374_v56  ;;  %v6820_v55 = vpack.c.bf16 %v778_v29, %v778_v29  ;;  %v5443_v56 = vld [vmem:[%s7907_s7 + $0x408] ss:$16 sps:$4 sm:$0xff]  }
 0x169   :  { %2641 = vmatprep.subr.bf16.mxu1 %v5379_v57  ;;  %2723 = vmatprep.subr.bf16.mxu0 %v5382_v58  ;;  %v5448_v57 = vld [vmem:[%s7907_s7 + $0x42c] ss:$16 sps:$4 sm:$0xff]   ;;  %v5446_v58 = vld [vmem:[%s7907_s7 + $0x428] ss:$16 sps:$4 sm:$0xff]  }
 0x16a   :  { %v5488_v29 = vld [vmem:[%s7907_s7 + $0x5e8] ss:$16 sps:$4 sm:$0xff]  }
 0x16c   :  { %2642 = vmatpush1.bf16.msra.mxu1 %v5377_v59  ;;  %2724 = vmatpush1.bf16.msra.mxu0 %v5380_v60  ;;  %v5451_v59 = vld [vmem:[%s7907_s7 + $0x44c] ss:$16 sps:$4 sm:$0xff]   ;;  %v5449_v60 = vld [vmem:[%s7907_s7 + $0x448] ss:$16 sps:$4 sm:$0xff]  }
 0x16d   :  { %2643 = vmatprep.subr.bf16.mxu1 %v5385_v62  ;;  %2725 = vmatprep.subr.bf16.mxu0 %v5388_v63  ;;  %v5457_v62 = vld [vmem:[%s7907_s7 + $0x48c] ss:$16 sps:$4 sm:$0xff]   ;;  %v5455_v63 = vld [vmem:[%s7907_s7 + $0x488] ss:$16 sps:$4 sm:$0xff]  }
 0x170   :  { %2644 = vmatpush1.bf16.msra.mxu1 %v5383_v1  ;;  %2726 = vmatpush1.bf16.msra.mxu0 %v5386_v2  ;;  %v5460_v1 = vld [vmem:[%s7907_s7 + $0x4ac] ss:$16 sps:$4 sm:$0xff]   ;;  %v5458_v2 = vld [vmem:[%s7907_s7 + $0x4a8] ss:$16 sps:$4 sm:$0xff]  }
 0x171   :  { %2645 = vmatprep.subr.bf16.mxu1 %v5391_v3  ;;  %2727 = vmatprep.subr.bf16.mxu0 %v5394_v4  ;;  %v5463_v3 = vld [vmem:[%s7907_s7 + $0x4cc] ss:$16 sps:$4 sm:$0xff]   ;;  %v5461_v4 = vld [vmem:[%s7907_s7 + $0x4c8] ss:$16 sps:$4 sm:$0xff]  }
 0x174   :  { %2646 = vmatpush1.bf16.msra.mxu1 %v5389_v5  ;;  %2728 = vmatpush1.bf16.msra.mxu0 %v5392_v7  ;;  %v5466_v5 = vld [vmem:[%s7907_s7 + $0x4ec] ss:$16 sps:$4 sm:$0xff]   ;;  %v5539_v7 = vld [vmem:[%s7911_s11] ss:$16 sps:$4 sm:$0xff]  }
 0x175   :  { %2647 = vmatprep.subr.bf16.mxu1 %v5397_v9  ;;  %2729 = vmatprep.subr.bf16.mxu0 %v5400_v10  ;;  %v5541_v9 = vld [vmem:[%s7911_s11 + $0x4] ss:$16 sps:$4 sm:$0xff]  }
 0x176   :  { %v5547_v10 = vld [vmem:[%s7911_s11 + $0x24] ss:$16 sps:$4 sm:$0xff]  }
 0x178   :  { %2648 = vmatpush1.bf16.msra.mxu1 %v5395_v11  ;;  %2730 = vmatpush1.bf16.msra.mxu0 %v5398_v12  ;;  %v5464_v11 = vld [vmem:[%s7907_s7 + $0x4e8] ss:$16 sps:$4 sm:$0xff]   ;;  %v5545_v12 = vld [vmem:[%s7911_s11 + $0x20] ss:$16 sps:$4 sm:$0xff]  }
 0x179   :  { %2649 = vmatprep.subr.bf16.mxu1 %v5403_v13  ;;  %2731 = vmatprep.subr.bf16.mxu0 %v5406_v14  ;;  %v5469_v13 = vld [vmem:[%s7907_s7 + $0x50c] ss:$16 sps:$4 sm:$0xff]   ;;  %v5553_v14 = vld [vmem:[%s7911_s11 + $0x44] ss:$16 sps:$4 sm:$0xff]  }
 0x17c   :  { %2650 = vmatpush1.bf16.msra.mxu1 %v5401_v15  ;;  %2732 = vmatpush1.bf16.msra.mxu0 %v5404_v16  ;;  %v5467_v15 = vld [vmem:[%s7907_s7 + $0x508] ss:$16 sps:$4 sm:$0xff]   ;;  %v5551_v16 = vld [vmem:[%s7911_s11 + $0x40] ss:$16 sps:$4 sm:$0xff]  }
 0x17d   :  { %2651 = vmatprep.subr.bf16.mxu1 %v5409_v17  ;;  %2733 = vmatprep.subr.bf16.mxu0 %v5412_v18  ;;  %v5472_v17 = vld [vmem:[%s7907_s7 + $0x52c] ss:$16 sps:$4 sm:$0xff]   ;;  %v5559_v18 = vld [vmem:[%s7911_s11 + $0x64] ss:$16 sps:$4 sm:$0xff]  }
 0x180   :  { %2652 = vmatpush1.bf16.msra.mxu1 %v5407_v19  ;;  %2734 = vmatpush1.bf16.msra.mxu0 %v5410_v26  ;;  %v5470_v19 = vld [vmem:[%s7907_s7 + $0x528] ss:$16 sps:$4 sm:$0xff]   ;;  %v5557_v26 = vld [vmem:[%s7911_s11 + $0x60] ss:$16 sps:$4 sm:$0xff]  }
 0x181   :  { %2653 = vmatprep.subr.bf16.mxu1 %v5415_v8  ;;  %2735 = vmatprep.subr.bf16.mxu0 %v5418_v27  ;;  %v5475_v8 = vld [vmem:[%s7907_s7 + $0x54c] ss:$16 sps:$4 sm:$0xff]   ;;  %v5565_v27 = vld [vmem:[%s7911_s11 + $0x84] ss:$16 sps:$4 sm:$0xff]  }
 0x184   :  { %2654 = vmatpush1.bf16.msra.mxu1 %v5413_v28  ;;  %2736 = vmatpush1.bf16.msra.mxu0 %v5416_v30  ;;  %v5473_v28 = vld [vmem:[%s7907_s7 + $0x548] ss:$16 sps:$4 sm:$0xff]   ;;  %v5563_v30 = vld [vmem:[%s7911_s11 + $0x80] ss:$16 sps:$4 sm:$0xff]  }
 0x185   :  { %2655 = vmatprep.subr.bf16.mxu1 %v5421_v31  ;;  %2737 = vmatprep.subr.bf16.mxu0 %v5424_v32  ;;  %v5478_v31 = vld [vmem:[%s7907_s7 + $0x56c] ss:$16 sps:$4 sm:$0xff]   ;;  %v5571_v32 = vld [vmem:[%s7911_s11 + $0xa4] ss:$16 sps:$4 sm:$0xff]  }
 0x188   :  { %2656 = vmatpush1.bf16.msra.mxu1 %v5419_v35  ;;  %2738 = vmatpush1.bf16.msra.mxu0 %v5422_v36  ;;  %v5569_v35 = vld [vmem:[%s7911_s11 + $0xa0] ss:$16 sps:$4 sm:$0xff]   ;;  %v5481_v36 = vld [vmem:[%s7907_s7 + $0x58c] ss:$16 sps:$4 sm:$0xff]  }
 0x189   :  { %2657 = vmatprep.subr.bf16.mxu1 %v5427_v37  ;;  %2739 = vmatprep.subr.bf16.mxu0 %v5430_v20  ;;  %v5577_v37 = vld [vmem:[%s7911_s11 + $0xc4] ss:$16 sps:$4 sm:$0xff]   ;;  %v5479_v20 = vld [vmem:[%s7907_s7 + $0x588] ss:$16 sps:$4 sm:$0xff]  }
 0x18c   :  { %2658 = vmatpush1.bf16.msra.mxu1 %v5425_v40  ;;  %2740 = vmatpush1.bf16.msra.mxu0 %v5428_v41  ;;  %v5484_v40 = vld [vmem:[%s7907_s7 + $0x5ac] ss:$16 sps:$4 sm:$0xff]   ;;  %v5583_v41 = vld [vmem:[%s7911_s11 + $0xe4] ss:$16 sps:$4 sm:$0xff]  }
 0x18d   :  { %2659 = vmatprep.subr.bf16.mxu1 %v5433_v54  ;;  %2741 = vmatprep.subr.bf16.mxu0 %v5436_v22  ;;  %v5482_v54 = vld [vmem:[%s7907_s7 + $0x5a8] ss:$16 sps:$4 sm:$0xff]   ;;  %v5581_v22 = vld [vmem:[%s7911_s11 + $0xe0] ss:$16 sps:$4 sm:$0xff]  }
 0x190   :  { %2660 = vmatpush1.bf16.msra.mxu1 %v5431_v44  ;;  %2742 = vmatpush1.bf16.msra.mxu0 %v5434_v45  ;;  %v5485_v44 = vld [vmem:[%s7907_s7 + $0x5c8] ss:$16 sps:$4 sm:$0xff]   ;;  %v5587_v45 = vld [vmem:[%s7911_s11 + $0x100] ss:$16 sps:$4 sm:$0xff]  }
 0x191   :  { %2661 = vmatprep.subr.bf16.mxu1 %v5439_v48  ;;  %2743 = vmatprep.subr.bf16.mxu0 %v5442_v25  ;;  %v5490_v48 = vld [vmem:[%s7907_s7 + $0x5ec] ss:$16 sps:$4 sm:$0xff]   ;;  %v5595_v25 = vld [vmem:[%s7911_s11 + $0x124] ss:$16 sps:$4 sm:$0xff]  }
 0x194   :  { %2662 = vmatpush1.bf16.msra.mxu1 %v5437_v50  ;;  %2744 = vmatpush1.bf16.msra.mxu0 %v5440_v52  ;;  %v5593_v50 = vld [vmem:[%s7911_s11 + $0x120] ss:$16 sps:$4 sm:$0xff]   ;;  %v5493_v52 = vld [vmem:[%s7907_s7 + $0x60c] ss:$16 sps:$4 sm:$0xff]  }
 0x195   :  { %2754 = vmatprep.subr.bf16.mxu0 %v5445_v53  ;;  %3664 = vmatprep.subr.bf16.mxu1 %v5541_v9  ;;  %v5601_v53 = vld [vmem:[%s7911_s11 + $0x144] ss:$16 sps:$4 sm:$0xff]  }
 0x197   :  { %2664 = vmatmul.mubr.bf16.vlgmr.msra.gmra.mrb[12].mxu1 %v6820_v55  ;;  %2746 = vmatmul.mubr.bf16.vlgmr.msra.gmra.mrb[20].mxu0 %v6390_v49  ;;  %v5454_v49 = vld [vmem:[%s7907_s7 + $0x46c] ss:$16 sps:$4 sm:$0xff]  }
 0x198   :  { %2755 = vmatpush1.bf16.msra.mxu0 %v5443_v56  ;;  %2786 = vmatprep.mubr.bf16.mxu0 %v6510_v43  ;;  %v5452_v43 = vld [vmem:[%s7907_s7 + $0x468] ss:$16 sps:$4 sm:$0xff]  }
 0x199   :  { %2756 = vmatprep.subr.bf16.mxu0 %v5448_v57  ;;  %3665 = vmatpush1.bf16.msra.mxu1 %v5539_v7  ;;  %v5491_v56 = vld [vmem:[%s7907_s7 + $0x608] ss:$16 sps:$4 sm:$0xff]   ;;  %v5496_v57 = vld [vmem:[%s7907_s7 + $0x62c] ss:$16 sps:$4 sm:$0xff]  }
 0x19a   :  { %3666 = vmatprep.subr.bf16.mxu1 %v5547_v10  ;;  %v5511_v7 = vld [vmem:[%s7907_s7 + $0x6cc] ss:$16 sps:$4 sm:$0xff]   ;;  %v5619_v10 = vld [vmem:[%s7911_s11 + $0x1a4] ss:$16 sps:$4 sm:$0xff]  }
 0x19c   :  { %2757 = vmatpush1.bf16.msra.mxu0 %v5446_v58  ;;  %v5599_v58 = vld [vmem:[%s7911_s11 + $0x140] ss:$16 sps:$4 sm:$0xff]  }
 0x19d   :  { %2758 = vmatprep.subr.bf16.mxu0 %v5451_v59  ;;  %3667 = vmatpush1.bf16.msra.mxu1 %v5545_v12  ;;  %v5607_v59 = vld [vmem:[%s7911_s11 + $0x164] ss:$16 sps:$4 sm:$0xff]  }
 0x19e   :  { %3668 = vmatprep.subr.bf16.mxu1 %v5553_v14 }
 0x1a0   :  { %2759 = vmatpush1.bf16.msra.mxu0 %v5449_v60  ;;  %v5494_v60 = vld [vmem:[%s7907_s7 + $0x628] ss:$16 sps:$4 sm:$0xff]  }
 0x1a1   :  { %2760 = vmatprep.subr.bf16.mxu0 %v5454_v49  ;;  %3669 = vmatpush1.bf16.msra.mxu1 %v5551_v16  ;;  %v5499_v49 = vld [vmem:[%s7907_s7 + $0x64c] ss:$16 sps:$4 sm:$0xff]   ;;  %v5509_v16 = vld [vmem:[%s7907_s7 + $0x6c8] ss:$16 sps:$4 sm:$0xff]  }
 0x1a2   :  { %3670 = vmatprep.subr.bf16.mxu1 %v5559_v18  ;;  %v5625_v18 = vld [vmem:[%s7911_s11 + $0x1c4] ss:$16 sps:$4 sm:$0xff]  }
 0x1a4   :  { %2761 = vmatpush1.bf16.msra.mxu0 %v5452_v43  ;;  %v5605_v43 = vld [vmem:[%s7911_s11 + $0x160] ss:$16 sps:$4 sm:$0xff]  }
 0x1a5   :  { %2762 = vmatprep.subr.bf16.mxu0 %v5457_v62  ;;  %3671 = vmatpush1.bf16.msra.mxu1 %v5557_v26  ;;  %v5502_v62 = vld [vmem:[%s7907_s7 + $0x66c] ss:$16 sps:$4 sm:$0xff]  }
 0x1a6   :  { %3672 = vmatprep.subr.bf16.mxu1 %v5565_v27  ;;  %v5517_v26 = vld [vmem:[%s7907_s7 + $0x70c] ss:$16 sps:$4 sm:$0xff]   ;;  %v5629_v27 = vld [vmem:[%s7911_s11 + $0x1e0] ss:$16 sps:$4 sm:$0xff]  }
 0x1a8   :  { %2763 = vmatpush1.bf16.msra.mxu0 %v5455_v63  ;;  %v5611_v63 = vld [vmem:[%s7911_s11 + $0x180] ss:$16 sps:$4 sm:$0xff]  }
 0x1a9   :  { %2764 = vmatprep.subr.bf16.mxu0 %v5460_v1  ;;  %3673 = vmatpush1.bf16.msra.mxu1 %v5563_v30  ;;  %v5500_v1 = vld [vmem:[%s7907_s7 + $0x668] ss:$16 sps:$4 sm:$0xff]   ;;  %v5520_v30 = vld [vmem:[%s7907_s7 + $0x72c] ss:$16 sps:$4 sm:$0xff]  }
 0x1aa   :  { %3674 = vmatprep.subr.bf16.mxu1 %v5571_v32  ;;  %v5518_v32 = vld [vmem:[%s7907_s7 + $0x728] ss:$16 sps:$4 sm:$0xff]  }
 0x1ac   :  { %2765 = vmatpush1.bf16.msra.mxu0 %v5458_v2  ;;  %v5505_v2 = vld [vmem:[%s7907_s7 + $0x68c] ss:$16 sps:$4 sm:$0xff]  }
 0x1ad   :  { %2766 = vmatprep.subr.bf16.mxu0 %v5463_v3  ;;  %3675 = vmatpush1.bf16.msra.mxu1 %v5569_v35  ;;  %v5503_v3 = vld [vmem:[%s7907_s7 + $0x688] ss:$16 sps:$4 sm:$0xff]  }
 0x1ae   :  { %3676 = vmatprep.subr.bf16.mxu1 %v5577_v37  ;;  %v5521_v35 = vld [vmem:[%s7907_s7 + $0x748] ss:$16 sps:$4 sm:$0xff]  }
 0x1af   :  { %v5524_v37 = vld [vmem:[%s7907_s7 + $0x768] ss:$16 sps:$4 sm:$0xff]  }
 0x1b0   :  { %2767 = vmatpush1.bf16.msra.mxu0 %v5461_v4  ;;  %v5508_v4 = vld [vmem:[%s7907_s7 + $0x6ac] ss:$16 sps:$4 sm:$0xff]  }
 0x1b1   :  { %2768 = vmatprep.subr.bf16.mxu0 %v5466_v5  ;;  %3677 = vmatpush1.bf16.msra.mxu1 %v5575_v39  ;;  %v5506_v5 = vld [vmem:[%s7907_s7 + $0x6a8] ss:$16 sps:$4 sm:$0xff]  }
 0x1b2   :  { %3678 = vmatprep.subr.bf16.mxu1 %v5583_v41  ;;  %v5527_v39 = vld [vmem:[%s7907_s7 + $0x788] ss:$16 sps:$4 sm:$0xff]  }
 0x1b3   :  { %v5530_v41 = vld [vmem:[%s7907_s7 + $0x7a8] ss:$16 sps:$4 sm:$0xff]  }
 0x1b4   :  { %2769 = vmatpush1.bf16.msra.mxu0 %v5464_v11 }
 0x1b5   :  { %2770 = vmatprep.subr.bf16.mxu0 %v5469_v13  ;;  %3679 = vmatpush1.bf16.msra.mxu1 %v5581_v22  ;;  %v5617_v13 = vld [vmem:[%s7911_s11 + $0x1a0] ss:$16 sps:$4 sm:$0xff]   ;;  %v5533_v22 = vld [vmem:[%s7907_s7 + $0x7c8] ss:$16 sps:$4 sm:$0xff]  }
 0x1b6   :  { %3680 = vmatprep.subr.bf16.mxu1 %v5589_v51  ;;  %v5536_v51 = vld [vmem:[%s7907_s7 + $0x7e8] ss:$16 sps:$4 sm:$0xff]  }
 0x1b8   :  { %2771 = vmatpush1.bf16.msra.mxu0 %v5467_v15 }
 0x1b9   :  { %2772 = vmatprep.subr.bf16.mxu0 %v5472_v17  ;;  %3681 = vmatpush1.bf16.msra.mxu1 %v5587_v45  ;;  %v5542_v45 = vld [vmem:[%s7911_s11 + $0x8] ss:$16 sps:$4 sm:$0xff]  }
 0x1ba   :  { %3682 = vmatprep.subr.bf16.mxu1 %v5595_v25  ;;  %v5548_v25 = vld [vmem:[%s7911_s11 + $0x28] ss:$16 sps:$4 sm:$0xff]  }
 0x1bc   :  { %2773 = vmatpush1.bf16.msra.mxu0 %v5470_v19  ;;  %v5512_v19 = vld [vmem:[%s7907_s7 + $0x6e8] ss:$16 sps:$4 sm:$0xff]  }
 0x1bd   :  { %2774 = vmatprep.subr.bf16.mxu0 %v5475_v8  ;;  %3683 = vmatpush1.bf16.msra.mxu1 %v5593_v50  ;;  %v5631_v8 = vld [vmem:[%s7911_s11 + $0x1e4] ss:$16 sps:$4 sm:$0xff]   ;;  %v5554_v50 = vld [vmem:[%s7911_s11 + $0x48] ss:$16 sps:$4 sm:$0xff]  }
 0x1be   :  { %3684 = vmatprep.subr.bf16.mxu1 %v5601_v53  ;;  %v5568_v53 = vld [vmem:[%s7911_s11 + $0x8c] ss:$16 sps:$4 sm:$0xff]  }
 0x1c0   :  { %2775 = vmatpush1.bf16.msra.mxu0 %v5473_v28  ;;  %v5515_v28 = vld [vmem:[%s7907_s7 + $0x708] ss:$16 sps:$4 sm:$0xff]  }
 0x1c1   :  { %2776 = vmatprep.subr.bf16.mxu0 %v5478_v31  ;;  %3685 = vmatpush1.bf16.msra.mxu1 %v5599_v58  ;;  %v5637_v31 = vld [vmem:[%s7911_s11 + $0x204] ss:$16 sps:$4 sm:$0xff]   ;;  %v5572_v58 = vld [vmem:[%s7911_s11 + $0xa8] ss:$16 sps:$4 sm:$0xff]  }
 0x1c2   :  { %3686 = vmatprep.subr.bf16.mxu1 %v5607_v59  ;;  %v5580_v59 = vld [vmem:[%s7911_s11 + $0xcc] ss:$16 sps:$4 sm:$0xff]  }
 0x1c4   :  { %2777 = vmatpush1.bf16.msra.mxu0 %v5476_v34  ;;  %v5523_v34 = vld [vmem:[%s7907_s7 + $0x74c] ss:$16 sps:$4 sm:$0xff]  }
 0x1c5   :  { %2778 = vmatprep.subr.bf16.mxu0 %v5481_v36  ;;  %3687 = vmatpush1.bf16.msra.mxu1 %v5605_v43  ;;  %v5526_v36 = vld [vmem:[%s7907_s7 + $0x76c] ss:$16 sps:$4 sm:$0xff]  }
 0x1c8   :  { %2779 = vmatpush1.bf16.msra.mxu0 %v5479_v20  ;;  %v5529_v20 = vld [vmem:[%s7907_s7 + $0x78c] ss:$16 sps:$4 sm:$0xff]  }
 0x1c9   :  { %2780 = vmatprep.subr.bf16.mxu0 %v5484_v40  ;;  %v5532_v40 = vld [vmem:[%s7907_s7 + $0x7ac] ss:$16 sps:$4 sm:$0xff]  }
 0x1cc   :  { %2781 = vmatpush1.bf16.msra.mxu0 %v5482_v54  ;;  %v5535_v54 = vld [vmem:[%s7907_s7 + $0x7cc] ss:$16 sps:$4 sm:$0xff]  }
 0x1cd   :  { %2782 = vmatprep.subr.bf16.mxu0 %v5487_v42  ;;  %v5538_v42 = vld [vmem:[%s7907_s7 + $0x7ec] ss:$16 sps:$4 sm:$0xff]  }
 0x1d0   :  { %2783 = vmatpush1.bf16.msra.mxu0 %v5485_v44  ;;  %v5544_v44 = vld [vmem:[%s7911_s11 + $0xc] ss:$16 sps:$4 sm:$0xff]  }
 0x1d1   :  { %2784 = vmatprep.subr.bf16.mxu0 %v5490_v48  ;;  %v5550_v48 = vld [vmem:[%s7911_s11 + $0x2c] ss:$16 sps:$4 sm:$0xff]  }
 0x1d4   :  { %2785 = vmatpush1.bf16.msra.mxu0 %v5488_v29  ;;  %v5556_v29 = vld [vmem:[%s7911_s11 + $0x4c] ss:$16 sps:$4 sm:$0xff]  }
 0x1d5   :  { %2795 = vmatprep.subr.bf16.mxu0 %v5493_v52  ;;  %v5560_v52 = vld [vmem:[%s7911_s11 + $0x68] ss:$16 sps:$4 sm:$0xff]  }
 0x1d7   :  { %2787 = vmatmul.mubr.bf16.vlgmr.msra.gmra.mrb[20].mxu0 %v6615_v33  ;;  %v5613_v33 = vld [vmem:[%s7911_s11 + $0x184] ss:$16 sps:$4 sm:$0xff]  }
 0x1d8   :  { %2796 = vmatpush1.bf16.msra.mxu0 %v5491_v56  ;;  %2827 = vmatprep.mubr.bf16.mxu0 %v6629_v38  ;;  %v5497_v38 = vld [vmem:[%s7907_s7 + $0x648] ss:$16 sps:$4 sm:$0xff]  }
 0x1d9   :  { %2797 = vmatprep.subr.bf16.mxu0 %v5496_v57  ;;  %3688 = vmatprep.subr.bf16.mxu1 %v5613_v33  ;;  %v5566_v56 = vld [vmem:[%s7911_s11 + $0x88] ss:$16 sps:$4 sm:$0xff]   ;;  %v5574_v57 = vld [vmem:[%s7911_s11 + $0xac] ss:$16 sps:$4 sm:$0xff]  }
 0x1da   :  { %3689 = vmatpush1.bf16.msra.mxu1 %v5611_v63 }
 0x1db   :  { %3690 = vmatprep.subr.bf16.mxu1 %v5619_v10  ;;  %v5608_v10 = vld [vmem:[%s7911_s11 + $0x168] ss:$16 sps:$4 sm:$0xff]  }
 0x1dc   :  { %2798 = vmatpush1.bf16.msra.mxu0 %v5494_v60 }
 0x1dd   :  { %2799 = vmatprep.subr.bf16.mxu0 %v5499_v49 }
 0x1de   :  { %3691 = vmatpush1.bf16.msra.mxu1 %v5617_v13  ;;  %v5614_v13 = vld [vmem:[%s7911_s11 + $0x188] ss:$16 sps:$4 sm:$0xff]  }
 0x1df   :  { %3692 = vmatprep.subr.bf16.mxu1 %v5625_v18  ;;  %v5634_v18 = vld [vmem:[%s7911_s11 + $0x1ec] ss:$16 sps:$4 sm:$0xff]  }
 0x1e0   :  { %2800 = vmatpush1.bf16.msra.mxu0 %v5497_v38 }
 0x1e1   :  { %2801 = vmatprep.subr.bf16.mxu0 %v5502_v62  ;;  %v5578_v62 = vld [vmem:[%s7911_s11 + $0xc8] ss:$16 sps:$4 sm:$0xff]  }
 0x1e4   :  { %2802 = vmatpush1.bf16.msra.mxu0 %v5500_v1  ;;  %v5586_v1 = vld [vmem:[%s7911_s11 + $0xec] ss:$16 sps:$4 sm:$0xff]  }
 0x1e5   :  { %2803 = vmatprep.subr.bf16.mxu0 %v5505_v2  ;;  %v5590_v2 = vld [vmem:[%s7911_s11 + $0x108] ss:$16 sps:$4 sm:$0xff]  }
 0x1e8   :  { %2804 = vmatpush1.bf16.msra.mxu0 %v5503_v3  ;;  %v5598_v3 = vld [vmem:[%s7911_s11 + $0x12c] ss:$16 sps:$4 sm:$0xff]  }
 0x1e9   :  { %2805 = vmatprep.subr.bf16.mxu0 %v5508_v4  ;;  %v5596_v4 = vld [vmem:[%s7911_s11 + $0x128] ss:$16 sps:$4 sm:$0xff]  }
 0x1ea   :  { %v2542_v9 = vpop.f32.mrb[12].mxu0 }
 0x1eb   :  { %v7041_v11 = vadd.f32 %v2542_v9, %v6519_v46  ;;  %v2544_v12 = vpop.f32.mrb[13].mxu0  ;;  %v5514_v46 = vld [vmem:[%s7907_s7 + $0x6ec] ss:$16 sps:$4 sm:$0xff]  }
 0x1ec   :  { %v7047_v14 = vadd.f32 %v2544_v12, %v6521_v47  ;;  %2806 = vmatpush1.bf16.msra.mxu0 %v5506_v5  ;;  %v2546_v15 = vpop.f32.mrb[14].mxu0  ;;  %v5623_v47 = vld [vmem:[%s7911_s11 + $0x1c0] ss:$16 sps:$4 sm:$0xff]   ;;  %v5604_v5 = vld [vmem:[%s7911_s11 + $0x14c] ss:$16 sps:$4 sm:$0xff]  }
 0x1ed   :  { %v2547_v17 = vpop.f32.mrb[15].mxu0  ;;  %2807 = vmatprep.subr.bf16.mxu0 %v5511_v7  ;;  %3693 = vmatpush1.bf16.msra.mxu1 %v5623_v47  ;;  %v5602_v7 = vld [vmem:[%s7911_s11 + $0x148] ss:$16 sps:$4 sm:$0xff]   ;;  %v5610_v9 = vld [vmem:[%s7911_s11 + $0x16c] ss:$16 sps:$4 sm:$0xff]  }
 0x1ee   :  { %3694 = vmatprep.subr.bf16.mxu1 %v5631_v8  ;;  %v5616_v12 = vld [vmem:[%s7911_s11 + $0x18c] ss:$16 sps:$4 sm:$0xff]   ;;  %v5632_v47 = vld [vmem:[%s7911_s11 + $0x1e8] ss:$16 sps:$4 sm:$0xff]  }
 0x1ef   :  { %v5622_v15 = vld [vmem:[%s7911_s11 + $0x1ac] ss:$16 sps:$4 sm:$0xff]  }
 0x1f0   :  { %2808 = vmatpush1.bf16.msra.mxu0 %v5509_v16  ;;  %v5620_v16 = vld [vmem:[%s7911_s11 + $0x1a8] ss:$16 sps:$4 sm:$0xff]   ;;  %v5628_v17 = vld [vmem:[%s7911_s11 + $0x1cc] ss:$16 sps:$4 sm:$0xff]  }
 0x1f1   :  { %2809 = vmatprep.subr.bf16.mxu0 %v5514_v46  ;;  %3695 = vmatpush1.bf16.msra.mxu1 %v5629_v27  ;;  %v5626_v46 = vld [vmem:[%s7911_s11 + $0x1c8] ss:$16 sps:$4 sm:$0xff]   ;;  %v7235_v27 = vld [vmem:[%s7910_s10] sm:$0xf] }
 0x1f2   :  { %3705 = vmatprep.subr.bf16.mxu1 %v5637_v31 }
 0x1f4   :  { %2810 = vmatpush1.bf16.msra.mxu0 %v5512_v19  ;;  %v5640_v19 = vld [vmem:[%s7911_s11 + $0x20c] ss:$16 sps:$4 sm:$0xff]  }
 0x1f5   :  { %2811 = vmatprep.subr.bf16.mxu0 %v5517_v26  ;;  %v7230_v26 = vld [vmem:[%s7909_s9] sm:$0xf] }
 0x1f8   :  { %2812 = vmatpush1.bf16.msra.mxu0 %v5515_v28 }
 0x1f9   :  { %2813 = vmatprep.subr.bf16.mxu0 %v5520_v30  ;;  %v2845_v30 = vrot.slane %v7230_v26, %v6353_v6 }
 0x1fc   :  { %2814 = vmatpush1.bf16.msra.mxu0 %v5518_v32 }
 0x1fd   :  { %2815 = vmatprep.subr.bf16.mxu0 %v5523_v34  ;;  %v2849_v34 = vrot.slane %v7230_v26, %v6364_v23 }
 0x200   :  { %2816 = vmatpush1.bf16.msra.mxu0 %v5521_v35 }
 0x201   :  { %2817 = vmatprep.subr.bf16.mxu0 %v5526_v36 }
 0x204   :  { %2818 = vmatpush1.bf16.msra.mxu0 %v5524_v37  ;;  %v2871_v37 = vrot.slane %v7235_v27, %v6353_v6 }
 0x205   :  { %2819 = vmatprep.subr.bf16.mxu0 %v5529_v20 }
 0x208   :  { %2820 = vmatpush1.bf16.msra.mxu0 %v5527_v39 }
 0x209   :  { %2821 = vmatprep.subr.bf16.mxu0 %v5532_v40  ;;  %v2875_v40 = vrot.slane %v7235_v27, %v6364_v23 }
 0x20c   :  { %2822 = vmatpush1.bf16.msra.mxu0 %v5530_v41 }
 0x20d   :  { %2823 = vmatprep.subr.bf16.mxu0 %v5535_v54 }
 0x210   :  { %2824 = vmatpush1.bf16.msra.mxu0 %v5533_v22 }
 0x211   :  { %2825 = vmatprep.subr.bf16.mxu0 %v5538_v42 }
 0x214   :  { %2826 = vmatpush1.bf16.msra.mxu0 %v5536_v51  ;;  %v5638_v51 = vld [vmem:[%s7911_s11 + $0x208] ss:$16 sps:$4 sm:$0xff]  }
 0x215   :  { %3746 = vmatprep.subr.bf16.mxu0 %v5544_v44 }
 0x217   :  { %2828 = vmatmul.mubr.bf16.vlgmr.msra.gmra.mrb[20].mxu0 %v6820_v55  ;;  %v5562_v55 = vld [vmem:[%s7911_s11 + $0x6c] ss:$16 sps:$4 sm:$0xff]  }
 0x218   :  { %3747 = vmatpush1.bf16.msra.mxu0 %v5542_v45  ;;  %v5643_v45 = vld [vmem:[%s7911_s11 + $0x224] ss:$16 sps:$4 sm:$0xff]  }
 0x219   :  { %3748 = vmatprep.subr.bf16.mxu0 %v5550_v48  ;;  %v5646_v48 = vld [vmem:[%s7911_s11 + $0x22c] ss:$16 sps:$4 sm:$0xff]  }
 0x21c   :  { %3749 = vmatpush1.bf16.msra.mxu0 %v5548_v25  ;;  %v5641_v25 = vld [vmem:[%s7911_s11 + $0x220] ss:$16 sps:$4 sm:$0xff]  }
 0x21d   :  { %3750 = vmatprep.subr.bf16.mxu0 %v5556_v29  ;;  %v5644_v29 = vld [vmem:[%s7911_s11 + $0x228] ss:$16 sps:$4 sm:$0xff]  }
 0x220   :  { %3751 = vmatpush1.bf16.msra.mxu0 %v5554_v50  ;;  %v5649_v50 = vld [vmem:[%s7911_s11 + $0x244] ss:$16 sps:$4 sm:$0xff]  }
 0x221   :  { %3752 = vmatprep.subr.bf16.mxu0 %v5562_v55  ;;  %v5652_v55 = vld [vmem:[%s7911_s11 + $0x24c] ss:$16 sps:$4 sm:$0xff]  }
 0x224   :  { %3753 = vmatpush1.bf16.msra.mxu0 %v5560_v52  ;;  %v5647_v52 = vld [vmem:[%s7911_s11 + $0x240] ss:$16 sps:$4 sm:$0xff]  }
 0x225   :  { %3754 = vmatprep.subr.bf16.mxu0 %v5568_v53  ;;  %v5650_v53 = vld [vmem:[%s7911_s11 + $0x248] ss:$16 sps:$4 sm:$0xff]  }
 0x228   :  { %3755 = vmatpush1.bf16.msra.mxu0 %v5566_v56  ;;  %v5655_v56 = vld [vmem:[%s7911_s11 + $0x264] ss:$16 sps:$4 sm:$0xff]  }
 0x229   :  { %3756 = vmatprep.subr.bf16.mxu0 %v5574_v57  ;;  %v5658_v57 = vld [vmem:[%s7911_s11 + $0x26c] ss:$16 sps:$4 sm:$0xff]  }
 0x22a   :  { %v2706_v60 = vpop.f32.mrb[16].mxu0 }
 0x22b   :  { %v7162_v49 = vadd.f32 %v2706_v60, %v6689_v61  ;;  %v2708_v43 = vpop.f32.mrb[17].mxu0  ;;  %v5584_v61 = vld [vmem:[%s7911_s11 + $0xe8] ss:$16 sps:$4 sm:$0xff]   ;;  %v5661_v60 = vld [vmem:[%s7911_s11 + $0x284] ss:$16 sps:$4 sm:$0xff]  }
 0x22c   :  { %v7165_v33 = vadd.f32 %v2708_v43, %v6697_v0  ;;  %v2710_v38 = vpop.f32.mrb[18].mxu0  ;;  %3757 = vmatpush1.bf16.msra.mxu0 %v5572_v58  ;;  %v5592_v0 = vld [vmem:[%s7911_s11 + $0x10c] ss:$16 sps:$4 sm:$0xff]   ;;  %v5653_v58 = vld [vmem:[%s7911_s11 + $0x260] ss:$16 sps:$4 sm:$0xff]  }
 0x22d   :  { %v2711_v63 = vpop.f32.mrb[19].mxu0  ;;  %3758 = vmatprep.subr.bf16.mxu0 %v5580_v59  ;;  %v5656_v59 = vld [vmem:[%s7911_s11 + $0x268] ss:$16 sps:$4 sm:$0xff]   ;;  %v5664_v43 = vld [vmem:[%s7911_s11 + $0x28c] ss:$16 sps:$4 sm:$0xff]  }
 0x22e   :  { %v5659_v38 = vld [vmem:[%s7911_s11 + $0x280] ss:$16 sps:$4 sm:$0xff]   ;;  %v5667_v63 = vld [vmem:[%s7911_s11 + $0x2a4] ss:$16 sps:$4 sm:$0xff]  }
 0x230   :  { %3759 = vmatpush1.bf16.msra.mxu0 %v5578_v62  ;;  %v5662_v62 = vld [vmem:[%s7911_s11 + $0x288] ss:$16 sps:$4 sm:$0xff]  }
 0x231   :  { %3760 = vmatprep.subr.bf16.mxu0 %v5586_v1  ;;  %v5670_v1 = vld [vmem:[%s7911_s11 + $0x2ac] ss:$16 sps:$4 sm:$0xff]  }
 0x234   :  { %3761 = vmatpush1.bf16.msra.mxu0 %v5584_v61  ;;  %v5665_v61 = vld [vmem:[%s7911_s11 + $0x2a0] ss:$16 sps:$4 sm:$0xff]  }
 0x235   :  { %3762 = vmatprep.subr.bf16.mxu0 %v5592_v0  ;;  %v5668_v0 = vld [vmem:[%s7911_s11 + $0x2a8] ss:$16 sps:$4 sm:$0xff]  }
 0x238   :  { %3763 = vmatpush1.bf16.msra.mxu0 %v5590_v2  ;;  %v5673_v2 = vld [vmem:[%s7911_s11 + $0x2c4] ss:$16 sps:$4 sm:$0xff]  }
 0x239   :  { %3764 = vmatprep.subr.bf16.mxu0 %v5598_v3  ;;  %v5676_v3 = vld [vmem:[%s7911_s11 + $0x2cc] ss:$16 sps:$4 sm:$0xff]  }
 0x23c   :  { %3765 = vmatpush1.bf16.msra.mxu0 %v5596_v4  ;;  %v5671_v4 = vld [vmem:[%s7911_s11 + $0x2c0] ss:$16 sps:$4 sm:$0xff]  }
 0x23d   :  { %3766 = vmatprep.subr.bf16.mxu0 %v5604_v5  ;;  %v5674_v5 = vld [vmem:[%s7911_s11 + $0x2c8] ss:$16 sps:$4 sm:$0xff]  }
 0x240   :  { %3767 = vmatpush1.bf16.msra.mxu0 %v5602_v7  ;;  %v5679_v7 = vld [vmem:[%s7911_s11 + $0x2e4] ss:$16 sps:$4 sm:$0xff]  }
 0x241   :  { %3768 = vmatprep.subr.bf16.mxu0 %v5610_v9  ;;  %v5682_v9 = vld [vmem:[%s7911_s11 + $0x2ec] ss:$16 sps:$4 sm:$0xff]  }
 0x244   :  { %3769 = vmatpush1.bf16.msra.mxu0 %v5608_v10  ;;  %v5677_v10 = vld [vmem:[%s7911_s11 + $0x2e0] ss:$16 sps:$4 sm:$0xff]  }
 0x245   :  { %3770 = vmatprep.subr.bf16.mxu0 %v5616_v12  ;;  %v5680_v12 = vld [vmem:[%s7911_s11 + $0x2e8] ss:$16 sps:$4 sm:$0xff]  }
 0x248   :  { %3771 = vmatpush1.bf16.msra.mxu0 %v5614_v13  ;;  %v5685_v13 = vld [vmem:[%s7911_s11 + $0x304] ss:$16 sps:$4 sm:$0xff]  }
 0x249   :  { %3772 = vmatprep.subr.bf16.mxu0 %v5622_v15  ;;  %v5688_v15 = vld [vmem:[%s7911_s11 + $0x30c] ss:$16 sps:$4 sm:$0xff]  }
 0x24c   :  { %3773 = vmatpush1.bf16.msra.mxu0 %v5620_v16  ;;  %v5683_v16 = vld [vmem:[%s7911_s11 + $0x300] ss:$16 sps:$4 sm:$0xff]  }
 0x24d   :  { %3774 = vmatprep.subr.bf16.mxu0 %v5628_v17  ;;  %v5686_v17 = vld [vmem:[%s7911_s11 + $0x308] ss:$16 sps:$4 sm:$0xff]  }
 0x250   :  { %3775 = vmatpush1.bf16.msra.mxu0 %v5626_v46  ;;  %v5691_v46 = vld [vmem:[%s7911_s11 + $0x324] ss:$16 sps:$4 sm:$0xff]  }
 0x251   :  { %3776 = vmatprep.subr.bf16.mxu0 %v5634_v18  ;;  %v5694_v18 = vld [vmem:[%s7911_s11 + $0x32c] ss:$16 sps:$4 sm:$0xff]  }
 0x254   :  { %3777 = vmatpush1.bf16.msra.mxu0 %v5632_v47  ;;  %v5689_v47 = vld [vmem:[%s7911_s11 + $0x320] ss:$16 sps:$4 sm:$0xff]  }
 0x255   :  { %3787 = vmatprep.subr.bf16.mxu0 %v5640_v19  ;;  %v5692_v19 = vld [vmem:[%s7911_s11 + $0x328] ss:$16 sps:$4 sm:$0xff]  }
 0x26a   :  { %v2665_v8 = vpop.f32.mrb[12].mxu1 }
 0x26b   :  { %v5122_v28 = vadd.f32 %v2665_v8, %v7041_v11  ;;  %v2667_v31 = vpop.f32.mrb[13].mxu1  ;;  %v5697_v8 = vld [vmem:[%s7911_s11 + $0x344] ss:$16 sps:$4 sm:$0xff]  }
 0x26c   :  { %v5123_v32 = vadd.f32 %v2667_v31, %v7047_v14  ;;  %v2669_v35 = vpop.f32.mrb[14].mxu1  ;;  %v5635_v14 = vld [vmem:[%s7911_s11 + $0x200] ss:$16 sps:$4 sm:$0xff]   ;;  %v5698_v31 = vld [vmem:[%s7911_s11 + $0x348] ss:$16 sps:$4 sm:$0xff]  }
 0x26d   :  { %v2836_v36 = vmax.f32 %v5122_v28, 0.0  ;;  %v2670_v20 = vpop.f32.mrb[15].mxu1  ;;  %v5700_v28 = vld [vmem:[%s7911_s11 + $0x34c] ss:$16 sps:$4 sm:$0xff]   ;;  %v5701_v35 = vld [vmem:[%s7911_s11 + $0x360] ss:$16 sps:$4 sm:$0xff]  }
 0x26e   :  { %v2837_v39 = vmax.f32 %v5123_v32, 0.0  ;;  %v5703_v32 = vld [vmem:[%s7911_s11 + $0x364] ss:$16 sps:$4 sm:$0xff]   ;;  %v5712_v20 = vld [vmem:[%s7911_s11 + $0x38c] ss:$16 sps:$4 sm:$0xff]  }
 0x26f   :  { %v2862_v11 = vmul.f32 %v2845_v30, %v2836_v36  ;;  %v5695_v30 = vld [vmem:[%s7911_s11 + $0x340] ss:$16 sps:$4 sm:$0xff]   ;;  %v5704_v36 = vld [vmem:[%s7911_s11 + $0x368] ss:$16 sps:$4 sm:$0xff]  }
 0x270   :  { %v2863_v41 = vmul.f32 %v2849_v34, %v2837_v39  ;;  %v5706_v34 = vld [vmem:[%s7911_s11 + $0x36c] ss:$16 sps:$4 sm:$0xff]   ;;  %v5707_v39 = vld [vmem:[%s7911_s11 + $0x380] ss:$16 sps:$4 sm:$0xff]  }
 0x271   :  { %v2888_v54 = vadd.f32 %v2871_v37, %v2862_v11  ;;  %v5709_v37 = vld [vmem:[%s7911_s11 + $0x384] ss:$16 sps:$4 sm:$0xff]  }
 0x272   :  { %v2889_v22 = vadd.f32 %v2875_v40, %v2863_v41  ;;  %v5710_v40 = vld [vmem:[%s7911_s11 + $0x388] ss:$16 sps:$4 sm:$0xff]   ;;  %v5715_v11 = vld [vmem:[%s7911_s11 + $0x3a4] ss:$16 sps:$4 sm:$0xff]   ;;  %v5718_v41 = vld [vmem:[%s7911_s11 + $0x3ac] ss:$16 sps:$4 sm:$0xff]  }
 0x273   :  { %v2892_v44 = vpack.c.bf16 %v2888_v54, %v2888_v54  ;;  %v5713_v54 = vld [vmem:[%s7911_s11 + $0x3a0] ss:$16 sps:$4 sm:$0xff]  }
 0x274   :  { %v2893_v42 = vpack.c.bf16 %v2889_v22, %v2889_v22  ;;  %v5716_v22 = vld [vmem:[%s7911_s11 + $0x3a8] ss:$16 sps:$4 sm:$0xff]  }
 0x276   :  { %3696 = vmatprep.mubr.bf16.mxu1 %v2893_v42  ;;  %3778 = vmatprep.mubr.bf16.mxu0 %v2893_v42  ;;  %v5721_v42 = vld [vmem:[%s7911_s11 + $0x3c4] ss:$16 sps:$4 sm:$0xff]  }
 0x277   :  { %3697 = vmatmul.mubr.bf16.vlgmr.msra.gmra.mrb[16].mxu1 %v2892_v44  ;;  %3779 = vmatmul.mubr.bf16.vlgmr.msra.gmra.mrb[24].mxu0 %v2892_v44  ;;  %v5722_v44 = vld [vmem:[%s7911_s11 + $0x3c8] ss:$16 sps:$4 sm:$0xff]  }
 0x278   :  { %3706 = vmatpush1.bf16.msra.mxu1 %v5635_v14  ;;  %3788 = vmatpush1.bf16.msra.mxu0 %v5638_v51  ;;  %v5724_v14 = vld [vmem:[%s7911_s11 + $0x3cc] ss:$16 sps:$4 sm:$0xff]   ;;  %v5719_v51 = vld [vmem:[%s7911_s11 + $0x3c0] ss:$16 sps:$4 sm:$0xff]  }
 0x279   :  { %3707 = vmatprep.subr.bf16.mxu1 %v5643_v45  ;;  %3789 = vmatprep.subr.bf16.mxu0 %v5646_v48  ;;  %v5727_v45 = vld [vmem:[%s7911_s11 + $0x3e4] ss:$16 sps:$4 sm:$0xff]   ;;  %v5730_v48 = vld [vmem:[%s7911_s11 + $0x3ec] ss:$16 sps:$4 sm:$0xff]  }
 0x27c   :  { %3708 = vmatpush1.bf16.msra.mxu1 %v5641_v25  ;;  %3790 = vmatpush1.bf16.msra.mxu0 %v5644_v29  ;;  %v5725_v25 = vld [vmem:[%s7911_s11 + $0x3e0] ss:$16 sps:$4 sm:$0xff]   ;;  %v5728_v29 = vld [vmem:[%s7911_s11 + $0x3e8] ss:$16 sps:$4 sm:$0xff]  }
 0x27d   :  { %3709 = vmatprep.subr.bf16.mxu1 %v5649_v50  ;;  %3791 = vmatprep.subr.bf16.mxu0 %v5652_v55 }
 0x280   :  { %3710 = vmatpush1.bf16.msra.mxu1 %v5647_v52  ;;  %3792 = vmatpush1.bf16.msra.mxu0 %v5650_v53  ;;  %v2853_v52 = vrot.slane %v7230_v26, %v6356_v21 }
 0x281   :  { %3711 = vmatprep.subr.bf16.mxu1 %v5655_v56  ;;  %3793 = vmatprep.subr.bf16.mxu0 %v5658_v57  ;;  %v2857_v57 = vrot.slane %v7230_v26, %v6367_v24  ;;  %v3917_v26 = vld [vmem:[%s7914_s14 + $0x88] sm:$0xff] }
 0x284   :  { %3712 = vmatpush1.bf16.msra.mxu1 %v5653_v58  ;;  %3794 = vmatpush1.bf16.msra.mxu0 %v5656_v59 }
 0x285   :  { %3713 = vmatprep.subr.bf16.mxu1 %v5661_v60  ;;  %3795 = vmatprep.subr.bf16.mxu0 %v5664_v43  ;;  %v2879_v60 = vrot.slane %v7235_v27, %v6356_v21 }
 0x288   :  { %3714 = vmatpush1.bf16.msra.mxu1 %v5659_v38  ;;  %3796 = vmatpush1.bf16.msra.mxu0 %v5662_v62  ;;  %v2883_v62 = vrot.slane %v7235_v27, %v6367_v24  ;;  %v3900_v27 = vld [vmem:[%s7914_s14] sm:$0xff] }
 0x289   :  { %3715 = vmatprep.subr.bf16.mxu1 %v5667_v63  ;;  %3797 = vmatprep.subr.bf16.mxu0 %v5670_v1 }
 0x28c   :  { %3716 = vmatpush1.bf16.msra.mxu1 %v5665_v61  ;;  %3798 = vmatpush1.bf16.msra.mxu0 %v5668_v0 }
 0x28d   :  { %3717 = vmatprep.subr.bf16.mxu1 %v5673_v2  ;;  %3799 = vmatprep.subr.bf16.mxu0 %v5676_v3 }
 0x290   :  { %3718 = vmatpush1.bf16.msra.mxu1 %v5671_v4  ;;  %3800 = vmatpush1.bf16.msra.mxu0 %v5674_v5  ;;  %v3901_v4 = vld [vmem:[%s7914_s14 + $0x8] sm:$0xff]  ;;  %v3918_v5 = vld [vmem:[%s7914_s14 + $0x90] sm:$0xff] }
 0x291   :  { %3719 = vmatprep.subr.bf16.mxu1 %v5679_v7  ;;  %3801 = vmatprep.subr.bf16.mxu0 %v5682_v9  ;;  %v3919_v7 = vld [vmem:[%s7914_s14 + $0x98] sm:$0xff]  ;;  %v4996_v9 = vpack.c.bf16 %v3901_v4, %v3900_v27 }
 0x292   :  { %v3927_v4 = vld [vmem:[%s7914_s14 + $0xd8] sm:$0xff] }
 0x294   :  { %3720 = vmatpush1.bf16.msra.mxu1 %v5677_v10  ;;  %3802 = vmatpush1.bf16.msra.mxu0 %v5680_v12  ;;  %v4998_v10 = vpack.c.bf16 %v3919_v7, %v3918_v5  ;;  %v3902_v12 = vld [vmem:[%s7914_s14 + $0x10] sm:$0xff] }
 0x295   :  { %3721 = vmatprep.subr.bf16.mxu1 %v5685_v13  ;;  %3803 = vmatprep.subr.bf16.mxu0 %v5688_v15  ;;  %v3903_v13 = vld [vmem:[%s7914_s14 + $0x18] sm:$0xff]  ;;  %v3920_v15 = vld [vmem:[%s7914_s14 + $0xa0] sm:$0xff]  ;;  %v3910_v7 = vld [vmem:[%s7914_s14 + $0x50] sm:$0xff] }
 0x298   :  { %3722 = vmatpush1.bf16.msra.mxu1 %v5683_v16  ;;  %3804 = vmatpush1.bf16.msra.mxu0 %v5686_v17  ;;  %v3921_v16 = vld [vmem:[%s7914_s14 + $0xa8] sm:$0xff]  ;;  %v5000_v17 = vpack.c.bf16 %v3903_v13, %v3902_v12 }
 0x299   :  { %3723 = vmatprep.subr.bf16.mxu1 %v5691_v46  ;;  %3805 = vmatprep.subr.bf16.mxu0 %v5694_v18  ;;  %v5002_v46 = vpack.c.bf16 %v3921_v16, %v3920_v15  ;;  %v3904_v18 = vld [vmem:[%s7914_s14 + $0x20] sm:$0xff]  ;;  %v3929_v13 = vld [vmem:[%s7914_s14 + $0xe8] sm:$0xff] }
 0x29a   :  { %v3912_v15 = vld [vmem:[%s7914_s14 + $0x60] sm:$0xff]  ;;  %v3913_v16 = vld [vmem:[%s7914_s14 + $0x68] sm:$0xff] }
 0x29c   :  { %3724 = vmatpush1.bf16.msra.mxu1 %v5689_v47  ;;  %3806 = vmatpush1.bf16.msra.mxu0 %v5692_v19  ;;  %v3905_v47 = vld [vmem:[%s7914_s14 + $0x28] sm:$0xff]  ;;  %v3922_v19 = vld [vmem:[%s7914_s14 + $0xb0] sm:$0xff] }
 0x29d   :  { %3725 = vmatprep.subr.bf16.mxu1 %v5697_v8  ;;  %3807 = vmatprep.subr.bf16.mxu0 %v5700_v28  ;;  %v3923_v8 = vld [vmem:[%s7914_s14 + $0xb8] sm:$0xff]  ;;  %v5004_v28 = vpack.c.bf16 %v3905_v47, %v3904_v18  ;;  %v5020_v47 = vpack.c.bf16 %v3913_v16, %v3912_v15  ;;  %v3946_v16 = vld [vmem:[%s7914_s14 + $0x170] sm:$0xff] }
 0x29e   :  { %v3931_v18 = vld [vmem:[%s7914_s14 + $0xf8] sm:$0xff] }
 0x2a0   :  { %3726 = vmatpush1.bf16.msra.mxu1 %v5695_v30  ;;  %3808 = vmatpush1.bf16.msra.mxu0 %v5698_v31  ;;  %v5006_v30 = vpack.c.bf16 %v3923_v8, %v3922_v19  ;;  %v3906_v31 = vld [vmem:[%s7914_s14 + $0x30] sm:$0xff] }
 0x2a1   :  { %3727 = vmatprep.subr.bf16.mxu1 %v5703_v32  ;;  %3809 = vmatprep.subr.bf16.mxu0 %v5706_v34  ;;  %v3907_v32 = vld [vmem:[%s7914_s14 + $0x38] sm:$0xff]  ;;  %v3914_v8 = vld [vmem:[%s7914_s14 + $0x70] sm:$0xff] }
 0x2a2   :  { %v5008_v34 = vpack.c.bf16 %v3907_v32, %v3906_v31  ;;  %v3948_v31 = vld [vmem:[%s7914_s14 + $0x180] sm:$0xff]  ;;  %v3949_v32 = vld [vmem:[%s7914_s14 + $0x188] sm:$0xff] }
 0x2a4   :  { %3728 = vmatpush1.bf16.msra.mxu1 %v5701_v35  ;;  %3810 = vmatpush1.bf16.msra.mxu0 %v5704_v36  ;;  %v3828_v35 = vld [vmem:[%s7912_s12] sm:$0xf] }
 0x2a5   :  { %3729 = vmatprep.subr.bf16.mxu1 %v5709_v37  ;;  %3811 = vmatprep.subr.bf16.mxu0 %v5712_v20  ;;  %v3854_v36 = vld [vmem:[%s7913_s13] sm:$0xf]  ;;  %v3833_v37 = vrot.slane %v3828_v35, %v6353_v6  ;;  %v3841_v20 = vrot.slane %v3828_v35, %v6356_v21 }
 0x2a8   :  { %3730 = vmatpush1.bf16.msra.mxu1 %v5707_v39  ;;  %3812 = vmatpush1.bf16.msra.mxu0 %v5710_v40  ;;  %v3837_v39 = vrot.slane %v3828_v35, %v6364_v23  ;;  %v3845_v40 = vrot.slane %v3828_v35, %v6367_v24 }
 0x2a9   :  { %3731 = vmatprep.subr.bf16.mxu1 %v5715_v11  ;;  %3813 = vmatprep.subr.bf16.mxu0 %v5718_v41  ;;  %v3859_v11 = vrot.slane %v3854_v36, %v6353_v6  ;;  %v3867_v41 = vrot.slane %v3854_v36, %v6356_v21 }
 0x2ac   :  { %3732 = vmatpush1.bf16.msra.mxu1 %v5713_v54  ;;  %3814 = vmatpush1.bf16.msra.mxu0 %v5716_v22 }
 0x2ad   :  { %3733 = vmatprep.subr.bf16.mxu1 %v5721_v42  ;;  %3815 = vmatprep.subr.bf16.mxu0 %v5724_v14  ;;  %v3863_v42 = vrot.slane %v3854_v36, %v6364_v23  ;;  %v3871_v14 = vrot.slane %v3854_v36, %v6367_v24 }
 0x2b0   :  { %3734 = vmatpush1.bf16.msra.mxu1 %v5719_v51  ;;  %3816 = vmatpush1.bf16.msra.mxu0 %v5722_v44 }
 0x2b1   :  { %3735 = vmatprep.subr.bf16.mxu1 %v5727_v45  ;;  %3817 = vmatprep.subr.bf16.mxu0 %v5730_v48 }
 0x2b4   :  { %3736 = vmatpush1.bf16.msra.mxu1 %v5725_v25  ;;  %3818 = vmatpush1.bf16.msra.mxu0 %v5728_v29 }
 0x2ea   :  { %v2829_v50 = vpop.f32.mrb[20].mxu0 }
 0x2eb   :  { %v5124_v55 = vadd.f32 %v2829_v50, %v7162_v49  ;;  %v2831_v53 = vpop.f32.mrb[21].mxu0 }
 0x2ec   :  { %v5125_v56 = vadd.f32 %v2831_v53, %v7165_v33  ;;  %v2833_v58 = vpop.f32.mrb[22].mxu0  ;;  %v3916_v33 = vld [vmem:[%s7914_s14 + $0x80] sm:$0xff] }
 0x2ed   :  { %v2838_v59 = vmax.f32 %v5124_v55, 0.0  ;;  %v2834_v43 = vpop.f32.mrb[23].mxu0  ;;  %v4994_v3 = vpack.c.bf16 %v3917_v26, %v3916_v33  ;;  %v3908_v33 = vld [vmem:[%s7914_s14 + $0x40] sm:$0xff]  ;;  %v3909_v26 = vld [vmem:[%s7914_s14 + $0x48] sm:$0xff] }
 0x2ee   :  { %v2839_v38 = vmax.f32 %v5125_v56, 0.0  ;;  %v5012_v27 = vpack.c.bf16 %v3909_v26, %v3908_v33  ;;  %v3942_v33 = vld [vmem:[%s7914_s14 + $0x150] sm:$0xff]  ;;  %v3943_v26 = vld [vmem:[%s7914_s14 + $0x158] sm:$0xff] }
 0x2ef   :  { %v2864_v49 = vmul.f32 %v2853_v52, %v2838_v59  ;;  %4995 = vmatprep.subr.bf16.mxu1 %v4994_v3  ;;  %v3926_v3 = vld [vmem:[%s7914_s14 + $0xd0] sm:$0xff] }
 0x2f0   :  { %v2865_v63 = vmul.f32 %v2857_v57, %v2839_v38  ;;  %v5014_v5 = vpack.c.bf16 %v3927_v4, %v3926_v3  ;;  %v3961_v3 = vld [vmem:[%s7914_s14 + $0x1e8] sm:$0xff]  ;;  %v5048_v4 = vpack.c.bf16 %v3943_v26, %v3942_v33  ;;  %v4120_v33 = vld [vmem:[%s7915_s15 + $0x70] sm:$0xff]  ;;  %v4121_v26 = vld [vmem:[%s7915_s15 + $0x78] sm:$0xff] }
 0x2f1   :  { %v2890_v1 = vadd.f32 %v2879_v60, %v2864_v49 }
 0x2f2   :  { %v2891_v61 = vadd.f32 %v2883_v62, %v2865_v63 }
 0x2f3   :  { %v2894_v2 = vpack.c.bf16 %v2890_v1, %v2890_v1 }
 0x2f4   :  { %v2895_v0 = vpack.c.bf16 %v2891_v61, %v2891_v61  ;;  %v3924_v61 = vld [vmem:[%s7914_s14 + $0xc0] sm:$0xff] }
 0x2f6   :  { %3737 = vmatprep.mubr.bf16.mxu1 %v2895_v0  ;;  %3819 = vmatprep.mubr.bf16.mxu0 %v2895_v0  ;;  %v3925_v0 = vld [vmem:[%s7914_s14 + $0xc8] sm:$0xff] }
 0x2f7   :  { %3738 = vmatmul.mubr.bf16.vlgmr.msra.gmra.mrb[16].mxu1 %v2894_v2  ;;  %3820 = vmatmul.mubr.bf16.vlgmr.msra.gmra.mrb[24].mxu0 %v2894_v2  ;;  %v5010_v2 = vpack.c.bf16 %v3925_v0, %v3924_v61  ;;  %v3959_v61 = vld [vmem:[%s7914_s14 + $0x1d8] sm:$0xff] }
 0x2f8   :  { %4997 = vmatpush3.bf16.msra.mxu1 %v4996_v9  ;;  %v3911_v9 = vld [vmem:[%s7914_s14 + $0x58] sm:$0xff] }
 0x2f9   :  { %4999 = vmatprep.subr.bf16.mxu1 %v4998_v10  ;;  %v3928_v10 = vld [vmem:[%s7914_s14 + $0xe0] sm:$0xff]  ;;  %v5016_v12 = vpack.c.bf16 %v3911_v9, %v3910_v7  ;;  %v3945_v9 = vld [vmem:[%s7914_s14 + $0x168] sm:$0xff] }
 0x2fa   :  { %v3944_v7 = vld [vmem:[%s7914_s14 + $0x160] sm:$0xff] }
 0x2fc   :  { %5001 = vmatpush3.bf16.msra.mxu1 %v5000_v17  ;;  %v5018_v17 = vpack.c.bf16 %v3929_v13, %v3928_v10  ;;  %v3962_v10 = vld [vmem:[%s7914_s14 + $0x1f0] sm:$0xff]  ;;  %v5052_v13 = vpack.c.bf16 %v3945_v9, %v3944_v7  ;;  %v4138_v7 = vld [vmem:[%s7915_s15 + $0x100] sm:$0xff]  ;;  %v4139_v9 = vld [vmem:[%s7915_s15 + $0x108] sm:$0xff] }
 0x2fd   :  { %5003 = vmatprep.subr.bf16.mxu1 %v5002_v46  ;;  %v3930_v46 = vld [vmem:[%s7914_s14 + $0xf0] sm:$0xff] }
 0x2fe   :  { %v5022_v19 = vpack.c.bf16 %v3931_v18, %v3930_v46  ;;  %v4122_v46 = vld [vmem:[%s7915_s15 + $0x80] sm:$0xff]  ;;  %v4123_v18 = vld [vmem:[%s7915_s15 + $0x88] sm:$0xff] }
 0x300   :  { %5005 = vmatpush3.bf16.msra.mxu1 %v5004_v28  ;;  %v3915_v28 = vld [vmem:[%s7914_s14 + $0x78] sm:$0xff] }
 0x301   :  { %5007 = vmatprep.subr.bf16.mxu1 %v5006_v30  ;;  %v5024_v30 = vpack.c.bf16 %v3915_v28, %v3914_v8  ;;  %v4106_v8 = vld [vmem:[%s7915_s15] sm:$0xff]  ;;  %v4107_v28 = vld [vmem:[%s7915_s15 + $0x8] sm:$0xff] }
 0x304   :  { %5009 = vmatpush3.bf16.msra.mxu1 %v5008_v34  ;;  %v5026_v34 = vpack.c.bf16 %v3949_v32, %v3948_v31  ;;  %v4125_v31 = vld [vmem:[%s7915_s15 + $0x98] sm:$0xff]  ;;  %v5060_v32 = vpack.c.bf16 %v4107_v28, %v4106_v8  ;;  %v4142_v8 = vld [vmem:[%s7915_s15 + $0x120] sm:$0xff]  ;;  %v4143_v28 = vld [vmem:[%s7915_s15 + $0x128] sm:$0xff] }
 0x305   :  { %5011 = vmatprep.subr.bf16.mxu1 %v5010_v2 }
 0x308   :  { %5013 = vmatpush3.bf16.msra.mxu1 %v5012_v27  ;;  %v3960_v27 = vld [vmem:[%s7914_s14 + $0x1e0] sm:$0xff] }
 0x309   :  { %5015 = vmatprep.subr.bf16.mxu1 %v5014_v5  ;;  %v5050_v5 = vpack.c.bf16 %v3961_v3, %v3960_v27  ;;  %v4154_v27 = vld [vmem:[%s7915_s15 + $0x180] sm:$0xff]  ;;  %v4155_v3 = vld [vmem:[%s7915_s15 + $0x188] sm:$0xff] }
 0x30c   :  { %5017 = vmatpush3.bf16.msra.mxu1 %v5016_v12  ;;  %v3963_v12 = vld [vmem:[%s7914_s14 + $0x1f8] sm:$0xff] }
 0x30d   :  { %5019 = vmatprep.subr.bf16.mxu1 %v5018_v17  ;;  %v5054_v15 = vpack.c.bf16 %v3963_v12, %v3962_v10  ;;  %v3947_v17 = vld [vmem:[%s7914_s14 + $0x178] sm:$0xff]  ;;  %v4156_v10 = vld [vmem:[%s7915_s15 + $0x190] sm:$0xff] }
 0x30e   :  { %v4157_v12 = vld [vmem:[%s7915_s15 + $0x198] sm:$0xff] }
 0x310   :  { %5021 = vmatpush3.bf16.msra.mxu1 %v5020_v47  ;;  %v5056_v47 = vpack.c.bf16 %v3947_v17, %v3946_v16  ;;  %v4140_v16 = vld [vmem:[%s7915_s15 + $0x110] sm:$0xff]  ;;  %v4141_v17 = vld [vmem:[%s7915_s15 + $0x118] sm:$0xff] }
 0x311   :  { %5023 = vmatprep.subr.bf16.mxu1 %v5022_v19  ;;  %v5058_v19 = vpack.c.bf16 %v4123_v18, %v4122_v46  ;;  %v4158_v46 = vld [vmem:[%s7915_s15 + $0x1a0] sm:$0xff]  ;;  %v4159_v18 = vld [vmem:[%s7915_s15 + $0x1a8] sm:$0xff] }
 0x314   :  { %5025 = vmatpush3.bf16.msra.mxu1 %v5024_v30  ;;  %v4124_v30 = vld [vmem:[%s7915_s15 + $0x90] sm:$0xff] }
 0x315   :  { %5027 = vmatprep.subr.bf16.mxu1 %v5026_v34 }
 0x3ca   :  { %v3739_v54 = vpop.f32.mrb[16].mxu1  ;;  %v3821_v22 = vpop.f32.mrb[24].mxu0 }
 0x3cb   :  { %v3850_v51 = vmul.f32 %v3833_v37, %v3739_v54  ;;  %v3852_v44 = vmul.f32 %v3841_v20, %v3821_v22  ;;  %v3741_v45 = vpop.f32.mrb[17].mxu1  ;;  %v3823_v48 = vpop.f32.mrb[25].mxu0  ;;  %v3932_v37 = vld [vmem:[%s7914_s14 + $0x100] sm:$0xff]  ;;  %v3933_v20 = vld [vmem:[%s7914_s14 + $0x108] sm:$0xff] }
 0x3cc   :  { %v3851_v25 = vmul.f32 %v3837_v39, %v3741_v45  ;;  %v3853_v29 = vmul.f32 %v3845_v40, %v3823_v48  ;;  %v3743_v50 = vpop.f32.mrb[18].mxu1  ;;  %v3825_v55 = vpop.f32.mrb[26].mxu0  ;;  %v3950_v39 = vld [vmem:[%s7914_s14 + $0x190] sm:$0xff]  ;;  %v3951_v40 = vld [vmem:[%s7914_s14 + $0x198] sm:$0xff]  ;;  %v5028_v22 = vpack.c.bf16 %v3933_v20, %v3932_v37  ;;  %v3952_v45 = vld [vmem:[%s7914_s14 + $0x1a0] sm:$0xff] }
 0x3cd   :  { %v7505_v52 = vadd.f32 %v3859_v11, %v3850_v51  ;;  %v7507_v53 = vadd.f32 %v3867_v41, %v3852_v44  ;;  %v3744_v6 = vpop.f32.mrb[19].mxu1  ;;  %v3826_v21 = vpop.f32.mrb[27].mxu0  ;;  %v3935_v51 = vld [vmem:[%s7914_s14 + $0x118] sm:$0xff]  ;;  %v3953_v48 = vld [vmem:[%s7914_s14 + $0x1a8] sm:$0xff]  ;;  %v3936_v50 = vld [vmem:[%s7914_s14 + $0x120] sm:$0xff] }
 0x3ce   :  { %v7509_v56 = vadd.f32 %v3863_v42, %v3851_v25  ;;  %v7511_v57 = vadd.f32 %v3871_v14, %v3853_v29  ;;  %v5030_v42 = vpack.c.bf16 %v3951_v40, %v3950_v39  ;;  %v3934_v14 = vld [vmem:[%s7914_s14 + $0x110] sm:$0xff]  ;;  %v5034_v29 = vpack.c.bf16 %v3953_v48, %v3952_v45  ;;  %v3937_v55 = vld [vmem:[%s7914_s14 + $0x128] sm:$0xff]  ;;  %v3955_v21 = vld [vmem:[%s7914_s14 + $0x1b8] sm:$0xff] }
 0x3cf   :  { %v3880_v23 = vmul.f32 %v7505_v52, %v7505_v52  ;;  %v3882_v58 = vmul.f32 %v7507_v53, %v7507_v53  ;;  %v5032_v25 = vpack.c.bf16 %v3935_v51, %v3934_v14  ;;  %v3954_v6 = vld [vmem:[%s7914_s14 + $0x1b0] sm:$0xff]  ;;  %v4109_v37 = vld [vmem:[%s7915_s15 + $0x18] sm:$0xff]  ;;  %v4126_v20 = vld [vmem:[%s7915_s15 + $0xa0] sm:$0xff] }
 0x3d0   :  { %v3881_v24 = vmul.f32 %v7509_v56, %v7509_v56  ;;  %v3883_v60 = vmul.f32 %v7511_v57, %v7511_v57  ;;  %v4127_v39 = vld [vmem:[%s7915_s15 + $0xa8] sm:$0xff]  ;;  %v4112_v51 = vld [vmem:[%s7915_s15 + $0x30] sm:$0xff]  ;;  %v4130_v45 = vld [vmem:[%s7915_s15 + $0xc0] sm:$0xff] }
 0x3d1   :  { %v3885_v59 = vsel %vm3884_vm5, %v3880_v23, 0.0  ;;  %v3888_v62 = vsel %vm3884_vm5, %v3882_v58, 0.0  ;;  %v5036_v23 = vpack.c.bf16 %v3937_v55, %v3936_v50  ;;  %v3938_v58 = vld [vmem:[%s7914_s14 + $0x130] sm:$0xff]  ;;  %v4131_v48 = vld [vmem:[%s7915_s15 + $0xc8] sm:$0xff]  ;;  %v4114_v50 = vld [vmem:[%s7915_s15 + $0x40] sm:$0xff] }
 0x3d2   :  { %v3886_v43 = vsel %vm3884_vm5, %v3881_v24, 0.0  ;;  %v3890_v63 = vsel %vm3884_vm5, %v3883_v60, 0.0  ;;  %v5038_v24 = vpack.c.bf16 %v3955_v21, %v3954_v6  ;;  %v3956_v60 = vld [vmem:[%s7914_s14 + $0x1c0] sm:$0xff]  ;;  %v4115_v55 = vld [vmem:[%s7915_s15 + $0x48] sm:$0xff]  ;;  %v4132_v6 = vld [vmem:[%s7915_s15 + $0xd0] sm:$0xff] }
 0x3d3   :  { %v3887_v38 = vadd.f32 %v3886_v43, %v3885_v59  ;;  %v3939_v59 = vld [vmem:[%s7914_s14 + $0x138] sm:$0xff]  ;;  %v3957_v43 = vld [vmem:[%s7914_s14 + $0x1c8] sm:$0xff] }
 0x3d4   :  { %v4133_v21 = vld [vmem:[%s7915_s15 + $0xd8] sm:$0xff] }
 0x3d5   :  { %v3889_v49 = vadd.f32 %v3888_v62, %v3887_v38  ;;  %v5040_v38 = vpack.c.bf16 %v3939_v59, %v3938_v58  ;;  %v5042_v62 = vpack.c.bf16 %v3957_v43, %v3956_v60  ;;  %v4116_v58 = vld [vmem:[%s7915_s15 + $0x50] sm:$0xff]  ;;  %v4117_v59 = vld [vmem:[%s7915_s15 + $0x58] sm:$0xff]  ;;  %v4134_v60 = vld [vmem:[%s7915_s15 + $0xe0] sm:$0xff] }
 0x3d6   :  { %v4135_v43 = vld [vmem:[%s7915_s15 + $0xe8] sm:$0xff] }
 0x3d7   :  { %v3891_v1 = vadd.f32 %v3890_v63, %v3889_v49  ;;  %v3940_v49 = vld [vmem:[%s7914_s14 + $0x140] sm:$0xff]  ;;  %v3941_v63 = vld [vmem:[%s7914_s14 + $0x148] sm:$0xff] }
 0x3d8   :  { %v5044_v0 = vpack.c.bf16 %v3941_v63, %v3940_v49  ;;  %v4118_v49 = vld [vmem:[%s7915_s15 + $0x60] sm:$0xff]  ;;  %v4119_v63 = vld [vmem:[%s7915_s15 + $0x68] sm:$0xff] }
 0x3d9   :  { %3892 = vadd.xlane.f32.xlu0 %v3891_v1  ;;  %v3958_v1 = vld [vmem:[%s7914_s14 + $0x1d0] sm:$0xff] }
 0x3da   :  { %v5046_v2 = vpack.c.bf16 %v3959_v61, %v3958_v1  ;;  %v4136_v1 = vld [vmem:[%s7915_s15 + $0xf0] sm:$0xff]  ;;  %v4137_v61 = vld [vmem:[%s7915_s15 + $0xf8] sm:$0xff] }
 0x466   :  { %v3893_v35 = vpop.xlane.xlu0 %3892 }
 0x467   :  { %v3894_v36 = vadd.f32 1e-24, %v3893_v35  ;;  %v5062_v35 = vpack.c.bf16 %v4125_v31, %v4124_v30  ;;  %v4160_v30 = vld [vmem:[%s7915_s15 + $0x1b0] sm:$0xff] }
 0x469   :  { %5731 = vrsqrt.f32 %v3894_v36  ;;  %v4108_v36 = vld [vmem:[%s7915_s15 + $0x10] sm:$0xff] }
 0x46a   :  { %v5064_v40 = vpack.c.bf16 %v4109_v37, %v4108_v36  ;;  %v4163_v36 = vld [vmem:[%s7915_s15 + $0x1c8] sm:$0xff] }
 0x473   :  { %v7587_v11 = vpop.eup %5731 }
 0x474   :  { %v3897_v41 = vmul.f32 %v7587_v11, %v7509_v56  ;;  %v3896_v54 = vmul.f32 %v7587_v11, %v7505_v52  ;;  %v3899_v44 = vmul.f32 %v7587_v11, %v7511_v57  ;;  %v3898_v34 = vmul.f32 %v7587_v11, %v7507_v53 }
 0x475   :  { %v5066_v11 = vpack.c.bf16 %v4127_v39, %v4126_v20  ;;  %v4146_v39 = vld [vmem:[%s7915_s15 + $0x140] sm:$0xff] }
 0x476   :  { %4028 = vmatprep.mubr.f32.mxu1 %v3897_v41  ;;  %v4110_v41 = vld [vmem:[%s7915_s15 + $0x20] sm:$0xff] }
 0x477   :  { %4029 = vmatmul.mubr.f32.vlgmr.msra.gmra.mrb[10].mxu1 %v3896_v54  ;;  %v4111_v54 = vld [vmem:[%s7915_s15 + $0x28] sm:$0xff] }
 0x478   :  { %5029 = vmatpush3.bf16.msra.mxu1 %v5028_v22  ;;  %4098 = vmatprep.mubr.f32.mxu1 %v3899_v44  ;;  %v4128_v22 = vld [vmem:[%s7915_s15 + $0xb0] sm:$0xff]  ;;  %v4113_v44 = vld [vmem:[%s7915_s15 + $0x38] sm:$0xff] }
 0x479   :  { %5031 = vmatprep.subr.bf16.mxu1 %v5030_v42  ;;  %v4129_v42 = vld [vmem:[%s7915_s15 + $0xb8] sm:$0xff] }
 0x47a   :  { %v5070_v14 = vpack.c.bf16 %v4129_v42, %v4128_v22  ;;  %v4148_v42 = vld [vmem:[%s7915_s15 + $0x150] sm:$0xff] }
 0x47c   :  { %5033 = vmatpush3.bf16.msra.mxu1 %v5032_v25  ;;  %v5072_v25 = vpack.c.bf16 %v4113_v44, %v4112_v51  ;;  %v4167_v51 = vld [vmem:[%s7915_s15 + $0x1e8] sm:$0xff] }
 0x47d   :  { %5035 = vmatprep.subr.bf16.mxu1 %v5034_v29  ;;  %v5074_v29 = vpack.c.bf16 %v4131_v48, %v4130_v45  ;;  %v4150_v48 = vld [vmem:[%s7915_s15 + $0x160] sm:$0xff] }
 0x480   :  { %5037 = vmatpush3.bf16.msra.mxu1 %v5036_v23  ;;  %v5076_v23 = vpack.c.bf16 %v4115_v55, %v4114_v50  ;;  %v4169_v50 = vld [vmem:[%s7915_s15 + $0x1f8] sm:$0xff] }
 0x481   :  { %5039 = vmatprep.subr.bf16.mxu1 %v5038_v24  ;;  %v5078_v24 = vpack.c.bf16 %v4133_v21, %v4132_v6  ;;  %v4152_v21 = vld [vmem:[%s7915_s15 + $0x170] sm:$0xff] }
 0x484   :  { %5041 = vmatpush3.bf16.msra.mxu1 %v5040_v38  ;;  %v5080_v38 = vpack.c.bf16 %v4117_v59, %v4116_v58 }
 0x485   :  { %5043 = vmatprep.subr.bf16.mxu1 %v5042_v62  ;;  %v5082_v62 = vpack.c.bf16 %v4135_v43, %v4134_v60 }
 0x488   :  { %5045 = vmatpush3.bf16.msra.mxu1 %v5044_v0  ;;  %v5084_v0 = vpack.c.bf16 %v4119_v63, %v4118_v49 }
 0x489   :  { %5047 = vmatprep.subr.bf16.mxu1 %v5046_v2  ;;  %v5086_v2 = vpack.c.bf16 %v4137_v61, %v4136_v1 }
 0x48c   :  { %5049 = vmatpush3.bf16.msra.mxu1 %v5048_v4  ;;  %v5088_v4 = vpack.c.bf16 %v4121_v26, %v4120_v33 }
 0x48d   :  { %5051 = vmatprep.subr.bf16.mxu1 %v5050_v5  ;;  %v5090_v5 = vpack.c.bf16 %v4155_v3, %v4154_v27 }
 0x490   :  { %5053 = vmatpush3.bf16.msra.mxu1 %v5052_v13  ;;  %v5092_v13 = vpack.c.bf16 %v4139_v9, %v4138_v7 }
 0x491   :  { %5055 = vmatprep.subr.bf16.mxu1 %v5054_v15  ;;  %v5094_v15 = vpack.c.bf16 %v4157_v12, %v4156_v10 }
 0x494   :  { %5057 = vmatpush3.bf16.msra.mxu1 %v5056_v47  ;;  %v5096_v47 = vpack.c.bf16 %v4141_v17, %v4140_v16 }
 0x495   :  { %5059 = vmatprep.subr.bf16.mxu1 %v5058_v19  ;;  %v5098_v19 = vpack.c.bf16 %v4159_v18, %v4158_v46 }
 0x497   :  { %4099 = vmatmul.mubr.f32.vlgmr.msra.gmra.mrb[20].mxu1 %v3898_v34  ;;  %v4145_v34 = vld [vmem:[%s7915_s15 + $0x138] sm:$0xff] }
 0x498   :  { %5061 = vmatpush3.bf16.msra.mxu1 %v5060_v32  ;;  %4241 = vmatprep.mubr.f32.mxu1 %v7509_v56  ;;  %v5068_v56 = vpack.c.bf16 %v4111_v54, %v4110_v41  ;;  %v4144_v32 = vld [vmem:[%s7915_s15 + $0x130] sm:$0xff]  ;;  %v4165_v41 = vld [vmem:[%s7915_s15 + $0x1d8] sm:$0xff] }
 0x499   :  { %5063 = vmatprep.subr.bf16.mxu1 %v5062_v35  ;;  %v4162_v35 = vld [vmem:[%s7915_s15 + $0x1c0] sm:$0xff]  ;;  %v5104_v37 = vpack.c.bf16 %v4145_v34, %v4144_v32 }
 0x49a   :  { %v5106_v20 = vpack.c.bf16 %v4163_v36, %v4162_v35 }
 0x49c   :  { %5065 = vmatpush3.bf16.msra.mxu1 %v5064_v40  ;;  %v4147_v40 = vld [vmem:[%s7915_s15 + $0x148] sm:$0xff] }
 0x49d   :  { %5067 = vmatprep.subr.bf16.mxu1 %v5066_v11  ;;  %v4164_v11 = vld [vmem:[%s7915_s15 + $0x1d0] sm:$0xff]  ;;  %v5108_v54 = vpack.c.bf16 %v4147_v40, %v4146_v39 }
 0x49e   :  { %v5110_v22 = vpack.c.bf16 %v4165_v41, %v4164_v11 }
 0x4a0   :  { %5069 = vmatpush3.bf16.msra.mxu1 %v5068_v56  ;;  %v4149_v56 = vld [vmem:[%s7915_s15 + $0x158] sm:$0xff] }
 0x4a1   :  { %5071 = vmatprep.subr.bf16.mxu1 %v5070_v14  ;;  %v4166_v14 = vld [vmem:[%s7915_s15 + $0x1e0] sm:$0xff]  ;;  %v5112_v44 = vpack.c.bf16 %v4149_v56, %v4148_v42 }
 0x4a2   :  { %v5114_v45 = vpack.c.bf16 %v4167_v51, %v4166_v14 }
 0x4a4   :  { %5073 = vmatpush3.bf16.msra.mxu1 %v5072_v25  ;;  %v4151_v25 = vld [vmem:[%s7915_s15 + $0x168] sm:$0xff] }
 0x4a5   :  { %5075 = vmatprep.subr.bf16.mxu1 %v5074_v29  ;;  %v4168_v29 = vld [vmem:[%s7915_s15 + $0x1f0] sm:$0xff]  ;;  %v5116_v55 = vpack.c.bf16 %v4151_v25, %v4150_v48 }
 0x4a6   :  { %v5118_v6 = vpack.c.bf16 %v4169_v50, %v4168_v29 }
 0x4a8   :  { %5077 = vmatpush3.bf16.msra.mxu1 %v5076_v23  ;;  %v4153_v23 = vld [vmem:[%s7915_s15 + $0x178] sm:$0xff] }
 0x4a9   :  { %5079 = vmatprep.subr.bf16.mxu1 %v5078_v24  ;;  %v5120_v24 = vpack.c.bf16 %v4153_v23, %v4152_v21 }
 0x4ac   :  { %5081 = vmatpush3.bf16.msra.mxu1 %v5080_v38 }
 0x4ad   :  { %5083 = vmatprep.subr.bf16.mxu1 %v5082_v62 }
 0x4b0   :  { %5085 = vmatpush3.bf16.msra.mxu1 %v5084_v0 }
 0x4b1   :  { %5087 = vmatprep.subr.bf16.mxu1 %v5086_v2 }
 0x4b4   :  { %5089 = vmatpush3.bf16.msra.mxu1 %v5088_v4 }
 0x4b5   :  { %5091 = vmatprep.subr.bf16.mxu1 %v5090_v5 }
 0x4b7   :  { %4242 = vmatmul.mubr.f32.vlgmr.msra.gmra.mrb[22].mxu1 %v7505_v52  ;;  %v4161_v52 = vld [vmem:[%s7915_s15 + $0x1b8] sm:$0xff]  ;;  %s5733_s15 = scalar_lea.vmem %s4325_s19, 32 }
 0x4b8   :  { %5093 = vmatpush3.bf16.msra.mxu1 %v5092_v13  ;;  %4311 = vmatprep.mubr.f32.mxu1 %v7511_v57  ;;  %v5100_v57 = vpack.c.bf16 %v4143_v28, %v4142_v8  ;;  %v5102_v31 = vpack.c.bf16 %v4161_v52, %v4160_v30  ;;  %p5734_p0 = scmp.ne.s32.totalorder %s4325_s19, %s5733_s15  ;;  %p5739_p2 = scmp.lt.s32.totalorder %s5733_s15, %s5733_s15 }
 0x4b9   :  { %5095 = vmatprep.subr.bf16.mxu1 %v5094_v15 }
 0x4ba   :  { %p5740_p3 = por %p5739_p2, %p5738_p1 }
 0x4bc   :  { %5097 = vmatpush3.bf16.msra.mxu1 %v5096_v47  ;;  %p5741_p4 = pnand %p5740_p3, %p5734_p0 }
 0x4bd   :  { %5099 = vmatprep.subr.bf16.mxu1 %v5098_v19 }
 0x4c0   :  { %5101 = vmatpush3.bf16.msra.mxu1 %v5100_v57 }
 0x4c1   :  { %5103 = vmatprep.subr.bf16.mxu1 %v5102_v31 }
 0x4c4   :  { %5105 = vmatpush3.bf16.msra.mxu1 %v5104_v37 }
 0x4c5   :  { %5107 = vmatprep.subr.bf16.mxu1 %v5106_v20 }
 0x4c8   :  { %5109 = vmatpush3.bf16.msra.mxu1 %v5108_v54 }
 0x4c9   :  { %5111 = vmatprep.subr.bf16.mxu1 %v5110_v22 }
 0x4cc   :  { %5113 = vmatpush3.bf16.msra.mxu1 %v5112_v44 }
 0x4cd   :  { %5115 = vmatprep.subr.bf16.mxu1 %v5114_v45 }
 0x4d0   :  { %5117 = vmatpush3.bf16.msra.mxu1 %v5116_v55 }
 0x4d1   :  { %5119 = vmatprep.subr.bf16.mxu1 %v5118_v6 }
 0x4d4   :  { %5121 = vmatpush3.bf16.msra.mxu1 %v5120_v24 }
 0x4d7   :  { %4312 = vmatmul.mubr.f32.vlgmr.msra.gmra.mrb[24].mxu1 %v7507_v53 }
 0x54a   :  { %v4874_v58 = vpop.f32.mrb[10].mxu1 }
 0x54b   :  { %v4875_v59 = vpop.f32.mrb[11].mxu1 }
 0x54c   :  { %v4876_v60 = vadd.f32 %v4875_v59, %v4874_v58 }
 0x56a   :  { %v4909_v43 = vpop.f32.mrb[20].mxu1 }
 0x56b   :  { %v4910_v38 = vpop.f32.mrb[21].mxu1 }
 0x56c   :  { %v4911_v62 = vadd.f32 %v4910_v38, %v4909_v43 }
 0x56e   :  { %v4101_v49 = vadd.f32 %v4911_v62, %v4876_v60 }
 0x570   :  { %4105 = vst.msk [vmem:[#allocation2] sm:$0x3] %vm4104_vm6, %v4101_v49 }
 0x571   :  { %5744 = shalt.err (!%p5741_p4)
}
 0x572   :  { %s5745_s1 = scalar_lea.hbm %s7917_s17, 32 }
 0x573   :  { %p5746_p5 = scmp.ne.s32.totalorder %s7917_s17, %s5745_s1  ;;  %p5749_p6 = scmp.lt.u32.totalorder %s5745_s1, %s7917_s17 }
 0x575   :  { %p5751_p7 = pnand %p5749_p6, %p5746_p5 }
 0x577   :  { %5754 = shalt.err (!%p5751_p7)
}
 0x578   :  { %4327 = dma.vmem_to_hbm [thread:$0]  %s4325_s19, 32, %s7917_s17, [#allocation3]   ;;  %v4802_v61 = vld [vmem:[%s7916_s16] ss:$0 sm:$0xff] }
 0x579   :  { %s5785_s25 = smov [#allocation4]  }
 0x57a   :  { %s4334_s26 = sshll.u32 %s5785_s25, 4  ;;  %s4335_s26 = int_to_ptr.vmem [resolvable:$true] %s4334_s26 }
 0x57b   :  { %s5755_s14 = scalar_lea.vmem %s4335_s26, 32  ;;  %p5760_p9 = scmp.lt.s32.totalorder %s4335_s26, %s4335_s26 }
 0x57c   :  { %p5756_p8 = scmp.ne.s32.totalorder %s4335_s26, %s5755_s14  ;;  %p5761_p10 = scmp.lt.s32.totalorder %s5755_s14, %s5755_s14 }
 0x57e   :  { %p5762_p11 = por %p5761_p10, %p5760_p9 }
 0x580   :  { %p5763_p12 = pnand %p5762_p11, %p5756_p8 }
 0x58a   :  { %v4944_v53 = vpop.f32.mrb[22].mxu1 }
 0x58b   :  { %v4945_v63 = vpop.f32.mrb[23].mxu1 }
 0x58c   :  { %v4946_v1 = vadd.f32 %v4945_v63, %v4944_v53 }
 0x58e   :  { %v4244_v33 = vadd.f32 %v4946_v1, %v4802_v61 }
 0x5aa   :  { %v4979_v0 = vpop.f32.mrb[24].mxu1 }
 0x5ab   :  { %v4980_v2 = vpop.f32.mrb[25].mxu1 }
 0x5ac   :  { %v4981_v26 = vadd.f32 %v4980_v2, %v4979_v0 }
 0x5ae   :  { %v4314_v27 = vadd.f32 %v4981_v26, %v4244_v33 }
 0x5b0   :  { %4317 = vst.msk [vmem:[#allocation4] sm:$0x3] %vm4104_vm6, %v4314_v27 }
 0x5b1   :  { %5766 = shalt.err (!%p5763_p12)
}
 0x5b2   :  { %s5767_s16 = scalar_lea.hbm %s7918_s18, 32 }
 0x5b3   :  { %p5768_p13 = scmp.ne.s32.totalorder %s7918_s18, %s5767_s16  ;;  %p5771_p0 = scmp.lt.u32.totalorder %s5767_s16, %s7918_s18 }
 0x5b5   :  { %p5773_p1 = pnand %p5771_p0, %p5768_p13 }
 0x5b7   :  { %5776 = shalt.err (!%p5773_p1)
}
 0x5b8   :  { %4337 = dma.vmem_to_hbm [thread:$0]  %s4335_s26, 32, %s7918_s18, [#allocation5]  }
 0x5b9   :  { %5777 = dma.done.wait [#allocation3], 32  }
 0x5ba   :  { %5778 = vsyncadd [#allocation3], 4294967264 }
 0x5bb   :  { %5779 = dma.done.wait [#allocation5], 32  }
 0x5bc   :  { %5780 = vsyncadd [#allocation5], 4294967264 }
 0x5bd   :  { %4344 = vsyncpa [#allocation3], 1 }
 0x5be   :  { %4345 = vsyncpa [#allocation5], 1 }

</bundles_post_ra>
